<compile_context>
chip_gen: v5e
topology: v5e:2x2
jax: 0.10.0
libtpu: 0.0.40
codegen_flags: <defaults>
</compile_context>

<pallas_src>
import numpy as np
import jax
import jax.numpy as jnp
from jax import lax
from jax.experimental import pallas as pl
from jax.experimental.pallas import tpu as pltpu

H = 32       # hidden width of self.net (synthetic: 4 -> H -> H -> 5 MLP, tanh)
UNROLL = 2   # manual unroll factor of the RK4 time loop


# ----------------------------------------------------------------------------
# Pallas kernel: RK4 ODE integration + final head, all in VMEM/SMEM/vregs.
# ----------------------------------------------------------------------------
def m100_kernel(x0s_ref, x0w_ref, xf_ref, forc_ref, dts_ref,
                w1_ref, b1_ref, w2_ref, b2_ref, w3_ref, b3_ref,
                y_ref, sol_s_ref, sol_w_ref):
    # Loop-invariant weights: load / slice once, hoisted out of the time loop.
    w1r0 = w1_ref[0:1, :]          # (1, H) rows of the (4, H) first layer
    w1r1 = w1_ref[1:2, :]
    w1r2 = w1_ref[2:3, :]
    w1r3 = w1_ref[3:4, :]
    b1 = b1_ref[...]               # (1, H)
    W2 = w2_ref[...]               # (H, H)
    b2 = b2_ref[...]               # (1, H)
    W3 = w3_ref[...]               # (H, 5)
    b3 = b3_ref[...]               # (1, 5)

    def hidden(h1):
        # Hidden layers on the MXU (f32 accumulate).
        h2 = jnp.tanh(jnp.dot(h1, W2, preferred_element_type=jnp.float32) + b2)
        return jnp.dot(h2, W3, preferred_element_type=jnp.float32) + b3

    def rhs(s_sn, s_wa, precp, temp, lday, step_nt):
        # s_sn, s_wa: (1,1) vreg values; precp/temp/lday/step_nt: SMEM scalars.
        # First layer (K=4) as broadcast FMAs -- no tiny-K matmul.
        h1 = jnp.tanh(s_sn * w1r0 + s_wa * w1r1 + precp * w1r2 + temp * w1r3 + b1)
        out = hidden(h1)                         # (1, 5)

        # Lane-batched transcendentals: one exp / one exp(-.) covers every
        # sinh(out[2:5]) and exp(out[0:2]) term.
        e = jnp.exp(out)                         # (1, 5)
        em = jnp.exp(-out)                       # (1, 5) (exact; no approx recip)
        sh = 0.5 * (e - em)                      # sinh(out), all 5 lanes

        step_sn = 0.5 * (jnp.tanh(5.0 * s_sn) + 1.0)   # step_fct(S_snow)
        step_wa = 0.5 * (jnp.tanh(5.0 * s_wa) + 1.0)   # step_fct(S_water)

        # relu(step_fct(S_snow)) == step_fct(S_snow) since step in (0,1).
        melt = step_sn * sh[:, 2:3]
        d1 = jnp.maximum(sh[:, 3:4] * step_nt, 0.0) - melt
        d2 = (jnp.maximum(sh[:, 4:5], 0.0) + melt
              - step_wa * (lday * e[:, 0:1] + e[:, 1:2]))
        return d1, d2                            # each (1, 1)

    def one_step(i, carry):
        s_sn, s_wa = carry
        base = i * 12
        h = dts_ref[i]
        # Per-stage forcings as SMEM scalars: [precp, temp, lday, step_fct(-temp)]
        p0 = forc_ref[base + 0]; t0 = forc_ref[base + 1]
        l0 = forc_ref[base + 2]; n0 = forc_ref[base + 3]
        pm = forc_ref[base + 4]; tm = forc_ref[base + 5]
        lm = forc_ref[base + 6]; nm = forc_ref[base + 7]
        p1 = forc_ref[base + 8]; t1 = forc_ref[base + 9]
        l1 = forc_ref[base + 10]; n1 = forc_ref[base + 11]

        k1s, k1w = rhs(s_sn, s_wa, p0, t0, l0, n0)
        k2s, k2w = rhs(s_sn + 0.5 * h * k1s, s_wa + 0.5 * h * k1w, pm, tm, lm, nm)
        k3s, k3w = rhs(s_sn + 0.5 * h * k2s, s_wa + 0.5 * h * k2w, pm, tm, lm, nm)
        k4s, k4w = rhs(s_sn + h * k3s, s_wa + h * k3w, p1, t1, l1, n1)

        hh = h * (1.0 / 6.0)
        s_sn_n = s_sn + hh * (k1s + 2.0 * k2s + 2.0 * k3s + k4s)
        s_wa_n = s_wa + hh * (k1w + 2.0 * k2w + 2.0 * k3w + k4w)

        # Trajectory writes: off the critical path (nothing in-loop reads them).
        sol_s_ref[pl.ds(i + 1, 1), :] = s_sn_n
        sol_w_ref[pl.ds(i + 1, 1), :] = s_wa_n
        return (s_sn_n, s_wa_n)

    # --- RK4 integration over the t_eval grid, state carried in registers ---
    s_sn0 = x0s_ref[...]                         # (1, 1)
    s_wa0 = x0w_ref[...]                         # (1, 1)
    sol_s_ref[0:1, :] = s_sn0
    sol_w_ref[0:1, :] = s_wa0

    n_steps = dts_ref.shape[0]
    n_main = (n_steps // UNROLL) * UNROLL

    def unrolled_body(j, carry):
        i0 = j * UNROLL
        for u in range(UNROLL):                  # static unroll inside the body
            carry = one_step(i0 + u, carry)
        return carry

    carry = (s_sn0, s_wa0)
    carry = lax.fori_loop(0, n_steps // UNROLL, unrolled_body, carry)
    for i in range(n_main, n_steps):             # static remainder iterations
        carry = one_step(i, carry)

    # --- Final head (batched over all T rows): y_hat = exp(net(...)[:, 1:2]) ---
    S0 = sol_s_ref[...]                          # (T, 1)
    S1 = sol_w_ref[...]                          # (T, 1)
    XF = xf_ref[...]                             # (T, 2)
    h1 = jnp.tanh(S0 * w1r0 + S1 * w1r1
                  + XF[:, 0:1] * w1r2 + XF[:, 1:2] * w1r3 + b1)
    out = hidden(h1)                             # (T, 5)
    y_ref[...] = jnp.exp(out[:, 1:2])            # (T, 1)


# ----------------------------------------------------------------------------
# Wrapper (glue): forcing interpolation, RK4 stage precompute, pallas_call.
# ----------------------------------------------------------------------------
def m100_forward(params, interps_data, x, t_eval):
    w1, b1, w2, b2, w3, b3 = params
    t_data, precp_data, temp_data, lday_data = interps_data

    T = t_eval.shape[0]
    n_steps = T - 1

    t0 = t_eval[:-1]
    t1 = t_eval[1:]
    tmid = 0.5 * (t0 + t1)
    stage_t = jnp.stack([t0, tmid, t1], axis=1)                   # (n_steps, 3)

    def interp(d):
        return jnp.interp(stage_t.reshape(-1), t_data, d).reshape(n_steps, 3)

    p = interp(precp_data)
    te = interp(temp_data)
    ld = interp(lday_data)
    # step_fct(-temp) only depends on the interpolated forcing: precompute it
    # batched here instead of paying one tanh per rhs eval on the serial chain.
    stepnt = 0.5 * (jnp.tanh(-5.0 * te) + 1.0)
    forc = jnp.stack([p, te, ld, stepnt], axis=-1).astype(jnp.float32)  # (n_steps,3,4)
    forc_flat = forc.reshape(-1)                                  # 1-D for SMEM
    dts = (t1 - t0).astype(jnp.float32)                           # (n_steps,)

    x0 = x[0:1, 0:2].astype(jnp.float32)                          # (1, 2)
    x0s = x0[:, 0:1]                                              # (1, 1)
    x0w = x0[:, 1:2]                                              # (1, 1)
    xf = x[:, 2:4].astype(jnp.float32)                            # (T, 2)

    def vspec():
        return pl.BlockSpec(memory_space=pltpu.MemorySpace.VMEM)

    def sspec():
        return pl.BlockSpec(memory_space=pltpu.MemorySpace.SMEM)

    y = pl.pallas_call(
        m100_kernel,
        out_shape=jax.ShapeDtypeStruct((T, 1), jnp.float32),
        in_specs=[vspec(), vspec(), vspec(), sspec(), sspec(),
                  vspec(), vspec(), vspec(), vspec(), vspec(), vspec()],
        out_specs=vspec(),
        scratch_shapes=[pltpu.VMEM((T, 1), jnp.float32),     # S_snow trajectory
                        pltpu.VMEM((T, 1), jnp.float32)],    # S_water trajectory
    )(x0s, x0w, xf, forc_flat, dts, w1, b1, w2, b2, w3, b3)
    return y, (forc, dts, x0, xf)


# ----------------------------------------------------------------------------
# Pure-JAX reference (same fixed-step RK4) for a correctness sanity check.
# ----------------------------------------------------------------------------
def m100_reference(params, forc, dts, x0, xf):
    w1, b1, w2, b2, w3, b3 = params

    def mlp(v):  # (..., 4) -> (..., 5)
        h1 = jnp.tanh(v @ w1 + b1)
        h2 = jnp.tanh(h1 @ w2 + b2)
        return h2 @ w3 + b3

    def step_fct(v):
        return 0.5 * (jnp.tanh(5.0 * v) + 1.0)

    def rhs(s, frow):  # s: (2,), frow: (4,) = [precp, temp, lday, step(-temp)]
        temp, lday = frow[1], frow[2]
        out = mlp(jnp.concatenate([s, frow[0:2]]).reshape(1, 4))[0]
        melt = jax.nn.relu(step_fct(s[0])) * jnp.sinh(out[2])
        d1 = jax.nn.relu(jnp.sinh(out[3]) * step_fct(-temp)) - melt
        d2 = (jax.nn.relu(jnp.sinh(out[4])) + melt
              - step_fct(s[1]) * lday * jnp.exp(out[0])
              - step_fct(s[1]) * jnp.exp(out[1]))
        return jnp.array([d1, d2])

    def scan_body(s, inp):
        f, h = inp
        k1 = rhs(s, f[0])
        k2 = rhs(s + 0.5 * h * k1, f[1])
        k3 = rhs(s + 0.5 * h * k2, f[1])
        k4 = rhs(s + h * k3, f[2])
        s_new = s + (h / 6.0) * (k1 + 2.0 * k2 + 2.0 * k3 + k4)
        return s_new, s_new

    s0 = x0[0]
    _, traj = lax.scan(scan_body, s0, (forc, dts))
    sol = jnp.concatenate([s0[None, :], traj], axis=0)            # (T, 2)
    X = jnp.concatenate([sol, xf], axis=1)                        # (T, 4)
    return jnp.exp(mlp(X)[:, 1:2])


if __name__ == "__main__":
    key = jax.random.PRNGKey(0)
    ks = jax.random.split(key, 8)

    # Deterministic synthetic net parameters: 4 -> H -> H -> 5 MLP.
    w1 = 0.3 * jax.random.normal(ks[0], (4, H), jnp.float32)
    b1 = 0.1 * jax.random.normal(ks[1], (1, H), jnp.float32)
    w2 = 0.3 * jax.random.normal(ks[2], (H, H), jnp.float32)
    b2 = 0.1 * jax.random.normal(ks[3], (1, H), jnp.float32)
    w3 = 0.3 * jax.random.normal(ks[4], (H, 5), jnp.float32)
    b3 = 0.1 * jax.random.normal(ks[5], (1, 5), jnp.float32)
    params = (w1, b1, w2, b2, w3, b3)

    # Deterministic synthetic forcing "interpolator" data (precp / temp / lday).
    t_data = jnp.arange(16, dtype=jnp.float32)
    precp_data = 1.5 * jnp.abs(jnp.sin(0.7 * t_data))
    temp_data = 3.0 * jnp.sin(0.4 * t_data)
    lday_data = 0.4 + 0.1 * jnp.sin(0.2 * t_data + 1.0)
    interps_data = (t_data, precp_data, temp_data, lday_data)

    # Inputs: x is [T, 4] (x[0,0], x[0,1] = initial states; x[:,2:4] = features
    # used by the final head); t_eval is [T].
    T = 8
    x = 0.5 * jax.random.normal(ks[6], (T, 4), jnp.float32) + 0.5
    t_eval = jnp.arange(T, dtype=jnp.float32)

    y_hat, (forc, dts, x0, xf) = m100_forward(params, interps_data, x, t_eval)
    y_hat = jax.block_until_ready(y_hat)

    y_ref = jax.block_until_ready(m100_reference(params, forc, dts, x0, xf))

    assert y_hat.shape == (T, 1), y_hat.shape
    assert np.all(np.isfinite(np.asarray(y_hat)))
    assert np.allclose(np.asarray(y_hat), np.asarray(y_ref), rtol=5e-3, atol=5e-3), (
        np.asarray(y_hat), np.asarray(y_ref))

    print("KERNEL_OK")
</pallas_src>

<mosaic_0001>
module attributes {stable_mosaic.version = 11 : i64} {
  func.func @m100_kernel(%arg0: memref<1x1xf32, #tpu.memory_space<vmem>>, %arg1: memref<1x1xf32, #tpu.memory_space<vmem>>, %arg2: memref<8x2xf32, #tpu.memory_space<vmem>>, %arg3: memref<84xf32, #tpu.memory_space<smem>>, %arg4: memref<7xf32, #tpu.memory_space<smem>>, %arg5: memref<4x32xf32, #tpu.memory_space<vmem>>, %arg6: memref<1x32xf32, #tpu.memory_space<vmem>>, %arg7: memref<32x32xf32, #tpu.memory_space<vmem>>, %arg8: memref<1x32xf32, #tpu.memory_space<vmem>>, %arg9: memref<32x5xf32, #tpu.memory_space<vmem>>, %arg10: memref<1x5xf32, #tpu.memory_space<vmem>>, %arg11: memref<8x1xf32, #tpu.memory_space<vmem>>, %arg12: memref<8x1xf32, #tpu.memory_space<vmem>>, %arg13: memref<8x1xf32, #tpu.memory_space<vmem>>) attributes {dimension_semantics = [], scalar_prefetch = 0 : i64, scratch_operands = 2 : i64, tpu.core_type = #tpu.core_type<tc>} {
    %c0 = arith.constant 0 : index
    %c0_0 = arith.constant 0 : index
    %0 = vector.load %arg5[%c0, %c0_0] : memref<4x32xf32, #tpu.memory_space<vmem>>, vector<1x32xf32>
    %c1 = arith.constant 1 : index
    %c0_1 = arith.constant 0 : index
    %1 = vector.load %arg5[%c1, %c0_1] : memref<4x32xf32, #tpu.memory_space<vmem>>, vector<1x32xf32>
    %c2 = arith.constant 2 : index
    %c0_2 = arith.constant 0 : index
    %2 = vector.load %arg5[%c2, %c0_2] : memref<4x32xf32, #tpu.memory_space<vmem>>, vector<1x32xf32>
    %c3 = arith.constant 3 : index
    %c0_3 = arith.constant 0 : index
    %3 = vector.load %arg5[%c3, %c0_3] : memref<4x32xf32, #tpu.memory_space<vmem>>, vector<1x32xf32>
    %c0_4 = arith.constant 0 : index
    %c0_5 = arith.constant 0 : index
    %4 = vector.load %arg6[%c0_4, %c0_5] : memref<1x32xf32, #tpu.memory_space<vmem>>, vector<1x32xf32>
    %c0_6 = arith.constant 0 : index
    %c0_7 = arith.constant 0 : index
    %5 = vector.load %arg7[%c0_6, %c0_7] : memref<32x32xf32, #tpu.memory_space<vmem>>, vector<32x32xf32>
    %c0_8 = arith.constant 0 : index
    %c0_9 = arith.constant 0 : index
    %6 = vector.load %arg8[%c0_8, %c0_9] : memref<1x32xf32, #tpu.memory_space<vmem>>, vector<1x32xf32>
    %c0_10 = arith.constant 0 : index
    %c0_11 = arith.constant 0 : index
    %7 = vector.load %arg9[%c0_10, %c0_11] : memref<32x5xf32, #tpu.memory_space<vmem>>, vector<32x5xf32>
    %c0_12 = arith.constant 0 : index
    %c0_13 = arith.constant 0 : index
    %8 = vector.load %arg10[%c0_12, %c0_13] : memref<1x5xf32, #tpu.memory_space<vmem>>, vector<1x5xf32>
    %c0_14 = arith.constant 0 : index
    %c0_15 = arith.constant 0 : index
    %9 = vector.load %arg0[%c0_14, %c0_15] : memref<1x1xf32, #tpu.memory_space<vmem>>, vector<1x1xf32>
    %c0_16 = arith.constant 0 : index
    %c0_17 = arith.constant 0 : index
    %10 = vector.load %arg1[%c0_16, %c0_17] : memref<1x1xf32, #tpu.memory_space<vmem>>, vector<1x1xf32>
    %c0_18 = arith.constant 0 : index
    %c0_19 = arith.constant 0 : index
    %11 = vector.load %arg12[%c0_18, %c0_19] : memref<8x1xf32, #tpu.memory_space<vmem>>, vector<1x1xf32>
    tpu.vector_store %arg12[%c0_18, %c0_19], %9 {strides = array<i32>} : memref<8x1xf32, #tpu.memory_space<vmem>>, vector<1x1xf32>,
    %c0_20 = arith.constant 0 : index
    %c0_21 = arith.constant 0 : index
    %12 = vector.load %arg13[%c0_20, %c0_21] : memref<8x1xf32, #tpu.memory_space<vmem>>, vector<1x1xf32>
    tpu.vector_store %arg13[%c0_20, %c0_21], %10 {strides = array<i32>} : memref<8x1xf32, #tpu.memory_space<vmem>>, vector<1x1xf32>,
    %c0_i32 = arith.constant 0 : i32
    %c3_i32 = arith.constant 3 : i32
    %13 = arith.addi %c0_i32, %c3_i32 : i32
    %c1_i32 = arith.constant 1 : i32
    %14:2 = scf.for %arg14 = %c0_i32 to %13 step %c1_i32 iter_args(%arg15 = %9, %arg16 = %10) -> (vector<1x1xf32>, vector<1x1xf32>)  : i32 {
      %c2_i32 = arith.constant 2 : i32
      %338 = arith.muli %arg14, %c2_i32 : i32
      %c0_i32_92 = arith.constant 0 : i32
      %339 = arith.addi %338, %c0_i32_92 : i32
      %c12_i32 = arith.constant 12 : i32
      %340 = arith.muli %339, %c12_i32 : i32
      %341 = arith.index_cast %339 : i32 to index
      %342 = memref.load %arg4[%341] : memref<7xf32, #tpu.memory_space<smem>>
      %c0_i32_93 = arith.constant 0 : i32
      %343 = arith.addi %340, %c0_i32_93 : i32
      %344 = arith.index_cast %343 : i32 to index
      %345 = memref.load %arg3[%344] : memref<84xf32, #tpu.memory_space<smem>>
      %c1_i32_94 = arith.constant 1 : i32
      %346 = arith.addi %340, %c1_i32_94 : i32
      %347 = arith.index_cast %346 : i32 to index
      %348 = memref.load %arg3[%347] : memref<84xf32, #tpu.memory_space<smem>>
      %c2_i32_95 = arith.constant 2 : i32
      %349 = arith.addi %340, %c2_i32_95 : i32
      %350 = arith.index_cast %349 : i32 to index
      %351 = memref.load %arg3[%350] : memref<84xf32, #tpu.memory_space<smem>>
      %c3_i32_96 = arith.constant 3 : i32
      %352 = arith.addi %340, %c3_i32_96 : i32
      %353 = arith.index_cast %352 : i32 to index
      %354 = memref.load %arg3[%353] : memref<84xf32, #tpu.memory_space<smem>>
      %c4_i32 = arith.constant 4 : i32
      %355 = arith.addi %340, %c4_i32 : i32
      %356 = arith.index_cast %355 : i32 to index
      %357 = memref.load %arg3[%356] : memref<84xf32, #tpu.memory_space<smem>>
      %c5_i32 = arith.constant 5 : i32
      %358 = arith.addi %340, %c5_i32 : i32
      %359 = arith.index_cast %358 : i32 to index
      %360 = memref.load %arg3[%359] : memref<84xf32, #tpu.memory_space<smem>>
      %c6_i32 = arith.constant 6 : i32
      %361 = arith.addi %340, %c6_i32 : i32
      %362 = arith.index_cast %361 : i32 to index
      %363 = memref.load %arg3[%362] : memref<84xf32, #tpu.memory_space<smem>>
      %c7_i32 = arith.constant 7 : i32
      %364 = arith.addi %340, %c7_i32 : i32
      %365 = arith.index_cast %364 : i32 to index
      %366 = memref.load %arg3[%365] : memref<84xf32, #tpu.memory_space<smem>>
      %c8_i32 = arith.constant 8 : i32
      %367 = arith.addi %340, %c8_i32 : i32
      %368 = arith.index_cast %367 : i32 to index
      %369 = memref.load %arg3[%368] : memref<84xf32, #tpu.memory_space<smem>>
      %c9_i32 = arith.constant 9 : i32
      %370 = arith.addi %340, %c9_i32 : i32
      %371 = arith.index_cast %370 : i32 to index
      %372 = memref.load %arg3[%371] : memref<84xf32, #tpu.memory_space<smem>>
      %c10_i32 = arith.constant 10 : i32
      %373 = arith.addi %340, %c10_i32 : i32
      %374 = arith.index_cast %373 : i32 to index
      %375 = memref.load %arg3[%374] : memref<84xf32, #tpu.memory_space<smem>>
      %c11_i32 = arith.constant 11 : i32
      %376 = arith.addi %340, %c11_i32 : i32
      %377 = arith.index_cast %376 : i32 to index
      %378 = memref.load %arg3[%377] : memref<84xf32, #tpu.memory_space<smem>>
      %379 = vector.broadcast %arg15 : vector<1x1xf32> to vector<1x32xf32>
      %380 = arith.mulf %379, %0 : vector<1x32xf32>
      %381 = vector.broadcast %arg16 : vector<1x1xf32> to vector<1x32xf32>
      %382 = arith.mulf %381, %1 : vector<1x32xf32>
      %383 = arith.addf %380, %382 : vector<1x32xf32>
      %384 = vector.broadcast %345 : f32 to vector<1x32xf32>
      %385 = arith.mulf %384, %2 : vector<1x32xf32>
      %386 = arith.addf %383, %385 : vector<1x32xf32>
      %387 = vector.broadcast %348 : f32 to vector<1x32xf32>
      %388 = arith.mulf %387, %3 : vector<1x32xf32>
      %389 = arith.addf %386, %388 : vector<1x32xf32>
      %390 = arith.addf %389, %4 : vector<1x32xf32>
      %391 = math.tanh %390 : vector<1x32xf32>
      %cst_97 = arith.constant dense<0.000000e+00> : vector<1x32xf32>
      %392 = tpu.matmul %391, %5, %cst_97 {dimension_numbers = #tpu.dot_dimension_numbers<[1], [0], [0], [1], [0, 0, 1, 1], [], []>} : vector<1x32xf32>, vector<32x32xf32>, vector<1x32xf32> -> vector<1x32xf32>
      %393 = arith.addf %392, %6 : vector<1x32xf32>
      %394 = math.tanh %393 : vector<1x32xf32>
      %cst_98 = arith.constant dense<0.000000e+00> : vector<1x5xf32>
      %395 = tpu.matmul %394, %7, %cst_98 {dimension_numbers = #tpu.dot_dimension_numbers<[1], [0], [0], [1], [0, 0, 1, 1], [], []>} : vector<1x32xf32>, vector<32x5xf32>, vector<1x5xf32> -> vector<1x5xf32>
      %396 = arith.addf %395, %8 : vector<1x5xf32>
      %397 = math.exp %396 : vector<1x5xf32>
      %cst_99 = arith.constant 0.000000e+00 : f32
      %398 = vector.broadcast %cst_99 : f32 to vector<1x5xf32>
      %399 = arith.subf %398, %396 : vector<1x5xf32>
      %400 = math.exp %399 : vector<1x5xf32>
      %401 = arith.subf %397, %400 : vector<1x5xf32>
      %cst_100 = arith.constant 5.000000e-01 : f32
      %402 = vector.broadcast %cst_100 : f32 to vector<1x5xf32>
      %403 = arith.mulf %402, %401 : vector<1x5xf32>
      %cst_101 = arith.constant 5.000000e+00 : f32
      %404 = vector.broadcast %cst_101 : f32 to vector<1x1xf32>
      %405 = arith.mulf %404, %arg15 : vector<1x1xf32>
      %406 = math.tanh %405 : vector<1x1xf32>
      %cst_102 = arith.constant 1.000000e+00 : f32
      %407 = vector.broadcast %cst_102 : f32 to vector<1x1xf32>
      %408 = arith.addf %406, %407 : vector<1x1xf32>
      %cst_103 = arith.constant 5.000000e-01 : f32
      %409 = vector.broadcast %cst_103 : f32 to vector<1x1xf32>
      %410 = arith.mulf %409, %408 : vector<1x1xf32>
      %cst_104 = arith.constant 5.000000e+00 : f32
      %411 = vector.broadcast %cst_104 : f32 to vector<1x1xf32>
      %412 = arith.mulf %411, %arg16 : vector<1x1xf32>
      %413 = math.tanh %412 : vector<1x1xf32>
      %cst_105 = arith.constant 1.000000e+00 : f32
      %414 = vector.broadcast %cst_105 : f32 to vector<1x1xf32>
      %415 = arith.addf %413, %414 : vector<1x1xf32>
      %cst_106 = arith.constant 5.000000e-01 : f32
      %416 = vector.broadcast %cst_106 : f32 to vector<1x1xf32>
      %417 = arith.mulf %416, %415 : vector<1x1xf32>
      %418 = vector.extract_strided_slice %403 {offsets = [0, 2], sizes = [1, 1], strides = [1, 1]} : vector<1x5xf32> to vector<1x1xf32>
      %419 = arith.mulf %410, %418 : vector<1x1xf32>
      %420 = vector.extract_strided_slice %403 {offsets = [0, 3], sizes = [1, 1], strides = [1, 1]} : vector<1x5xf32> to vector<1x1xf32>
      %421 = vector.broadcast %354 : f32 to vector<1x1xf32>
      %422 = arith.mulf %420, %421 : vector<1x1xf32>
      %cst_107 = arith.constant 0.000000e+00 : f32
      %423 = vector.broadcast %cst_107 : f32 to vector<1x1xf32>
      %424 = arith.maximumf %422, %423 : vector<1x1xf32>
      %425 = arith.subf %424, %419 : vector<1x1xf32>
      %426 = vector.extract_strided_slice %403 {offsets = [0, 4], sizes = [1, 1], strides = [1, 1]} : vector<1x5xf32> to vector<1x1xf32>
      %cst_108 = arith.constant 0.000000e+00 : f32
      %427 = vector.broadcast %cst_108 : f32 to vector<1x1xf32>
      %428 = arith.maximumf %426, %427 : vector<1x1xf32>
      %429 = arith.addf %428, %419 : vector<1x1xf32>
      %430 = vector.extract_strided_slice %397 {offsets = [0, 0], sizes = [1, 1], strides = [1, 1]} : vector<1x5xf32> to vector<1x1xf32>
      %431 = vector.broadcast %351 : f32 to vector<1x1xf32>
      %432 = arith.mulf %431, %430 : vector<1x1xf32>
      %433 = vector.extract_strided_slice %397 {offsets = [0, 1], sizes = [1, 1], strides = [1, 1]} : vector<1x5xf32> to vector<1x1xf32>
      %434 = arith.addf %432, %433 : vector<1x1xf32>
      %435 = arith.mulf %417, %434 : vector<1x1xf32>
      %436 = arith.subf %429, %435 : vector<1x1xf32>
      %cst_109 = arith.constant 5.000000e-01 : f32
      %437 = arith.mulf %cst_109, %342 : f32
      %438 = vector.broadcast %437 : f32 to vector<1x1xf32>
      %439 = arith.mulf %438, %425 : vector<1x1xf32>
      %440 = arith.addf %arg15, %439 : vector<1x1xf32>
      %cst_110 = arith.constant 5.000000e-01 : f32
      %441 = arith.mulf %cst_110, %342 : f32
      %442 = vector.broadcast %441 : f32 to vector<1x1xf32>
      %443 = arith.mulf %442, %436 : vector<1x1xf32>
      %444 = arith.addf %arg16, %443 : vector<1x1xf32>
      %445 = vector.broadcast %440 : vector<1x1xf32> to vector<1x32xf32>
      %446 = arith.mulf %445, %0 : vector<1x32xf32>
      %447 = vector.broadcast %444 : vector<1x1xf32> to vector<1x32xf32>
      %448 = arith.mulf %447, %1 : vector<1x32xf32>
      %449 = arith.addf %446, %448 : vector<1x32xf32>
      %450 = vector.broadcast %357 : f32 to vector<1x32xf32>
      %451 = arith.mulf %450, %2 : vector<1x32xf32>
      %452 = arith.addf %449, %451 : vector<1x32xf32>
      %453 = vector.broadcast %360 : f32 to vector<1x32xf32>
      %454 = arith.mulf %453, %3 : vector<1x32xf32>
      %455 = arith.addf %452, %454 : vector<1x32xf32>
      %456 = arith.addf %455, %4 : vector<1x32xf32>
      %457 = math.tanh %456 : vector<1x32xf32>
      %cst_111 = arith.constant dense<0.000000e+00> : vector<1x32xf32>
      %458 = tpu.matmul %457, %5, %cst_111 {dimension_numbers = #tpu.dot_dimension_numbers<[1], [0], [0], [1], [0, 0, 1, 1], [], []>} : vector<1x32xf32>, vector<32x32xf32>, vector<1x32xf32> -> vector<1x32xf32>
      %459 = arith.addf %458, %6 : vector<1x32xf32>
      %460 = math.tanh %459 : vector<1x32xf32>
      %cst_112 = arith.constant dense<0.000000e+00> : vector<1x5xf32>
      %461 = tpu.matmul %460, %7, %cst_112 {dimension_numbers = #tpu.dot_dimension_numbers<[1], [0], [0], [1], [0, 0, 1, 1], [], []>} : vector<1x32xf32>, vector<32x5xf32>, vector<1x5xf32> -> vector<1x5xf32>
      %462 = arith.addf %461, %8 : vector<1x5xf32>
      %463 = math.exp %462 : vector<1x5xf32>
      %cst_113 = arith.constant 0.000000e+00 : f32
      %464 = vector.broadcast %cst_113 : f32 to vector<1x5xf32>
      %465 = arith.subf %464, %462 : vector<1x5xf32>
      %466 = math.exp %465 : vector<1x5xf32>
      %467 = arith.subf %463, %466 : vector<1x5xf32>
      %cst_114 = arith.constant 5.000000e-01 : f32
      %468 = vector.broadcast %cst_114 : f32 to vector<1x5xf32>
      %469 = arith.mulf %468, %467 : vector<1x5xf32>
      %cst_115 = arith.constant 5.000000e+00 : f32
      %470 = vector.broadcast %cst_115 : f32 to vector<1x1xf32>
      %471 = arith.mulf %470, %440 : vector<1x1xf32>
      %472 = math.tanh %471 : vector<1x1xf32>
      %cst_116 = arith.constant 1.000000e+00 : f32
      %473 = vector.broadcast %cst_116 : f32 to vector<1x1xf32>
      %474 = arith.addf %472, %473 : vector<1x1xf32>
      %cst_117 = arith.constant 5.000000e-01 : f32
      %475 = vector.broadcast %cst_117 : f32 to vector<1x1xf32>
      %476 = arith.mulf %475, %474 : vector<1x1xf32>
      %cst_118 = arith.constant 5.000000e+00 : f32
      %477 = vector.broadcast %cst_118 : f32 to vector<1x1xf32>
      %478 = arith.mulf %477, %444 : vector<1x1xf32>
      %479 = math.tanh %478 : vector<1x1xf32>
      %cst_119 = arith.constant 1.000000e+00 : f32
      %480 = vector.broadcast %cst_119 : f32 to vector<1x1xf32>
      %481 = arith.addf %479, %480 : vector<1x1xf32>
      %cst_120 = arith.constant 5.000000e-01 : f32
      %482 = vector.broadcast %cst_120 : f32 to vector<1x1xf32>
      %483 = arith.mulf %482, %481 : vector<1x1xf32>
      %484 = vector.extract_strided_slice %469 {offsets = [0, 2], sizes = [1, 1], strides = [1, 1]} : vector<1x5xf32> to vector<1x1xf32>
      %485 = arith.mulf %476, %484 : vector<1x1xf32>
      %486 = vector.extract_strided_slice %469 {offsets = [0, 3], sizes = [1, 1], strides = [1, 1]} : vector<1x5xf32> to vector<1x1xf32>
      %487 = vector.broadcast %366 : f32 to vector<1x1xf32>
      %488 = arith.mulf %486, %487 : vector<1x1xf32>
      %cst_121 = arith.constant 0.000000e+00 : f32
      %489 = vector.broadcast %cst_121 : f32 to vector<1x1xf32>
      %490 = arith.maximumf %488, %489 : vector<1x1xf32>
      %491 = arith.subf %490, %485 : vector<1x1xf32>
      %492 = vector.extract_strided_slice %469 {offsets = [0, 4], sizes = [1, 1], strides = [1, 1]} : vector<1x5xf32> to vector<1x1xf32>
      %cst_122 = arith.constant 0.000000e+00 : f32
      %493 = vector.broadcast %cst_122 : f32 to vector<1x1xf32>
      %494 = arith.maximumf %492, %493 : vector<1x1xf32>
      %495 = arith.addf %494, %485 : vector<1x1xf32>
      %496 = vector.extract_strided_slice %463 {offsets = [0, 0], sizes = [1, 1], strides = [1, 1]} : vector<1x5xf32> to vector<1x1xf32>
      %497 = vector.broadcast %363 : f32 to vector<1x1xf32>
      %498 = arith.mulf %497, %496 : vector<1x1xf32>
      %499 = vector.extract_strided_slice %463 {offsets = [0, 1], sizes = [1, 1], strides = [1, 1]} : vector<1x5xf32> to vector<1x1xf32>
      %500 = arith.addf %498, %499 : vector<1x1xf32>
      %501 = arith.mulf %483, %500 : vector<1x1xf32>
      %502 = arith.subf %495, %501 : vector<1x1xf32>
      %cst_123 = arith.constant 5.000000e-01 : f32
      %503 = arith.mulf %cst_123, %342 : f32
      %504 = vector.broadcast %503 : f32 to vector<1x1xf32>
      %505 = arith.mulf %504, %491 : vector<1x1xf32>
      %506 = arith.addf %arg15, %505 : vector<1x1xf32>
      %cst_124 = arith.constant 5.000000e-01 : f32
      %507 = arith.mulf %cst_124, %342 : f32
      %508 = vector.broadcast %507 : f32 to vector<1x1xf32>
      %509 = arith.mulf %508, %502 : vector<1x1xf32>
      %510 = arith.addf %arg16, %509 : vector<1x1xf32>
      %511 = vector.broadcast %506 : vector<1x1xf32> to vector<1x32xf32>
      %512 = arith.mulf %511, %0 : vector<1x32xf32>
      %513 = vector.broadcast %510 : vector<1x1xf32> to vector<1x32xf32>
      %514 = arith.mulf %513, %1 : vector<1x32xf32>
      %515 = arith.addf %512, %514 : vector<1x32xf32>
      %516 = vector.broadcast %357 : f32 to vector<1x32xf32>
      %517 = arith.mulf %516, %2 : vector<1x32xf32>
      %518 = arith.addf %515, %517 : vector<1x32xf32>
      %519 = vector.broadcast %360 : f32 to vector<1x32xf32>
      %520 = arith.mulf %519, %3 : vector<1x32xf32>
      %521 = arith.addf %518, %520 : vector<1x32xf32>
      %522 = arith.addf %521, %4 : vector<1x32xf32>
      %523 = math.tanh %522 : vector<1x32xf32>
      %cst_125 = arith.constant dense<0.000000e+00> : vector<1x32xf32>
      %524 = tpu.matmul %523, %5, %cst_125 {dimension_numbers = #tpu.dot_dimension_numbers<[1], [0], [0], [1], [0, 0, 1, 1], [], []>} : vector<1x32xf32>, vector<32x32xf32>, vector<1x32xf32> -> vector<1x32xf32>
      %525 = arith.addf %524, %6 : vector<1x32xf32>
      %526 = math.tanh %525 : vector<1x32xf32>
      %cst_126 = arith.constant dense<0.000000e+00> : vector<1x5xf32>
      %527 = tpu.matmul %526, %7, %cst_126 {dimension_numbers = #tpu.dot_dimension_numbers<[1], [0], [0], [1], [0, 0, 1, 1], [], []>} : vector<1x32xf32>, vector<32x5xf32>, vector<1x5xf32> -> vector<1x5xf32>
      %528 = arith.addf %527, %8 : vector<1x5xf32>
      %529 = math.exp %528 : vector<1x5xf32>
      %cst_127 = arith.constant 0.000000e+00 : f32
      %530 = vector.broadcast %cst_127 : f32 to vector<1x5xf32>
      %531 = arith.subf %530, %528 : vector<1x5xf32>
      %532 = math.exp %531 : vector<1x5xf32>
      %533 = arith.subf %529, %532 : vector<1x5xf32>
      %cst_128 = arith.constant 5.000000e-01 : f32
      %534 = vector.broadcast %cst_128 : f32 to vector<1x5xf32>
      %535 = arith.mulf %534, %533 : vector<1x5xf32>
      %cst_129 = arith.constant 5.000000e+00 : f32
      %536 = vector.broadcast %cst_129 : f32 to vector<1x1xf32>
      %537 = arith.mulf %536, %506 : vector<1x1xf32>
      %538 = math.tanh %537 : vector<1x1xf32>
      %cst_130 = arith.constant 1.000000e+00 : f32
      %539 = vector.broadcast %cst_130 : f32 to vector<1x1xf32>
      %540 = arith.addf %538, %539 : vector<1x1xf32>
      %cst_131 = arith.constant 5.000000e-01 : f32
      %541 = vector.broadcast %cst_131 : f32 to vector<1x1xf32>
      %542 = arith.mulf %541, %540 : vector<1x1xf32>
      %cst_132 = arith.constant 5.000000e+00 : f32
      %543 = vector.broadcast %cst_132 : f32 to vector<1x1xf32>
      %544 = arith.mulf %543, %510 : vector<1x1xf32>
      %545 = math.tanh %544 : vector<1x1xf32>
      %cst_133 = arith.constant 1.000000e+00 : f32
      %546 = vector.broadcast %cst_133 : f32 to vector<1x1xf32>
      %547 = arith.addf %545, %546 : vector<1x1xf32>
      %cst_134 = arith.constant 5.000000e-01 : f32
      %548 = vector.broadcast %cst_134 : f32 to vector<1x1xf32>
      %549 = arith.mulf %548, %547 : vector<1x1xf32>
      %550 = vector.extract_strided_slice %535 {offsets = [0, 2], sizes = [1, 1], strides = [1, 1]} : vector<1x5xf32> to vector<1x1xf32>
      %551 = arith.mulf %542, %550 : vector<1x1xf32>
      %552 = vector.extract_strided_slice %535 {offsets = [0, 3], sizes = [1, 1], strides = [1, 1]} : vector<1x5xf32> to vector<1x1xf32>
      %553 = vector.broadcast %366 : f32 to vector<1x1xf32>
      %554 = arith.mulf %552, %553 : vector<1x1xf32>
      %cst_135 = arith.constant 0.000000e+00 : f32
      %555 = vector.broadcast %cst_135 : f32 to vector<1x1xf32>
      %556 = arith.maximumf %554, %555 : vector<1x1xf32>
      %557 = arith.subf %556, %551 : vector<1x1xf32>
      %558 = vector.extract_strided_slice %535 {offsets = [0, 4], sizes = [1, 1], strides = [1, 1]} : vector<1x5xf32> to vector<1x1xf32>
      %cst_136 = arith.constant 0.000000e+00 : f32
      %559 = vector.broadcast %cst_136 : f32 to vector<1x1xf32>
      %560 = arith.maximumf %558, %559 : vector<1x1xf32>
      %561 = arith.addf %560, %551 : vector<1x1xf32>
      %562 = vector.extract_strided_slice %529 {offsets = [0, 0], sizes = [1, 1], strides = [1, 1]} : vector<1x5xf32> to vector<1x1xf32>
      %563 = vector.broadcast %363 : f32 to vector<1x1xf32>
      %564 = arith.mulf %563, %562 : vector<1x1xf32>
      %565 = vector.extract_strided_slice %529 {offsets = [0, 1], sizes = [1, 1], strides = [1, 1]} : vector<1x5xf32> to vector<1x1xf32>
      %566 = arith.addf %564, %565 : vector<1x1xf32>
      %567 = arith.mulf %549, %566 : vector<1x1xf32>
      %568 = arith.subf %561, %567 : vector<1x1xf32>
      %569 = vector.broadcast %342 : f32 to vector<1x1xf32>
      %570 = arith.mulf %569, %557 : vector<1x1xf32>
      %571 = arith.addf %arg15, %570 : vector<1x1xf32>
      %572 = vector.broadcast %342 : f32 to vector<1x1xf32>
      %573 = arith.mulf %572, %568 : vector<1x1xf32>
      %574 = arith.addf %arg16, %573 : vector<1x1xf32>
      %575 = vector.broadcast %571 : vector<1x1xf32> to vector<1x32xf32>
      %576 = arith.mulf %575, %0 : vector<1x32xf32>
      %577 = vector.broadcast %574 : vector<1x1xf32> to vector<1x32xf32>
      %578 = arith.mulf %577, %1 : vector<1x32xf32>
      %579 = arith.addf %576, %578 : vector<1x32xf32>
      %580 = vector.broadcast %369 : f32 to vector<1x32xf32>
      %581 = arith.mulf %580, %2 : vector<1x32xf32>
      %582 = arith.addf %579, %581 : vector<1x32xf32>
      %583 = vector.broadcast %372 : f32 to vector<1x32xf32>
      %584 = arith.mulf %583, %3 : vector<1x32xf32>
      %585 = arith.addf %582, %584 : vector<1x32xf32>
      %586 = arith.addf %585, %4 : vector<1x32xf32>
      %587 = math.tanh %586 : vector<1x32xf32>
      %cst_137 = arith.constant dense<0.000000e+00> : vector<1x32xf32>
      %588 = tpu.matmul %587, %5, %cst_137 {dimension_numbers = #tpu.dot_dimension_numbers<[1], [0], [0], [1], [0, 0, 1, 1], [], []>} : vector<1x32xf32>, vector<32x32xf32>, vector<1x32xf32> -> vector<1x32xf32>
      %589 = arith.addf %588, %6 : vector<1x32xf32>
      %590 = math.tanh %589 : vector<1x32xf32>
      %cst_138 = arith.constant dense<0.000000e+00> : vector<1x5xf32>
      %591 = tpu.matmul %590, %7, %cst_138 {dimension_numbers = #tpu.dot_dimension_numbers<[1], [0], [0], [1], [0, 0, 1, 1], [], []>} : vector<1x32xf32>, vector<32x5xf32>, vector<1x5xf32> -> vector<1x5xf32>
      %592 = arith.addf %591, %8 : vector<1x5xf32>
      %593 = math.exp %592 : vector<1x5xf32>
      %cst_139 = arith.constant 0.000000e+00 : f32
      %594 = vector.broadcast %cst_139 : f32 to vector<1x5xf32>
      %595 = arith.subf %594, %592 : vector<1x5xf32>
      %596 = math.exp %595 : vector<1x5xf32>
      %597 = arith.subf %593, %596 : vector<1x5xf32>
      %cst_140 = arith.constant 5.000000e-01 : f32
      %598 = vector.broadcast %cst_140 : f32 to vector<1x5xf32>
      %599 = arith.mulf %598, %597 : vector<1x5xf32>
      %cst_141 = arith.constant 5.000000e+00 : f32
      %600 = vector.broadcast %cst_141 : f32 to vector<1x1xf32>
      %601 = arith.mulf %600, %571 : vector<1x1xf32>
      %602 = math.tanh %601 : vector<1x1xf32>
      %cst_142 = arith.constant 1.000000e+00 : f32
      %603 = vector.broadcast %cst_142 : f32 to vector<1x1xf32>
      %604 = arith.addf %602, %603 : vector<1x1xf32>
      %cst_143 = arith.constant 5.000000e-01 : f32
      %605 = vector.broadcast %cst_143 : f32 to vector<1x1xf32>
      %606 = arith.mulf %605, %604 : vector<1x1xf32>
      %cst_144 = arith.constant 5.000000e+00 : f32
      %607 = vector.broadcast %cst_144 : f32 to vector<1x1xf32>
      %608 = arith.mulf %607, %574 : vector<1x1xf32>
      %609 = math.tanh %608 : vector<1x1xf32>
      %cst_145 = arith.constant 1.000000e+00 : f32
      %610 = vector.broadcast %cst_145 : f32 to vector<1x1xf32>
      %611 = arith.addf %609, %610 : vector<1x1xf32>
      %cst_146 = arith.constant 5.000000e-01 : f32
      %612 = vector.broadcast %cst_146 : f32 to vector<1x1xf32>
      %613 = arith.mulf %612, %611 : vector<1x1xf32>
      %614 = vector.extract_strided_slice %599 {offsets = [0, 2], sizes = [1, 1], strides = [1, 1]} : vector<1x5xf32> to vector<1x1xf32>
      %615 = arith.mulf %606, %614 : vector<1x1xf32>
      %616 = vector.extract_strided_slice %599 {offsets = [0, 3], sizes = [1, 1], strides = [1, 1]} : vector<1x5xf32> to vector<1x1xf32>
      %617 = vector.broadcast %378 : f32 to vector<1x1xf32>
      %618 = arith.mulf %616, %617 : vector<1x1xf32>
      %cst_147 = arith.constant 0.000000e+00 : f32
      %619 = vector.broadcast %cst_147 : f32 to vector<1x1xf32>
      %620 = arith.maximumf %618, %619 : vector<1x1xf32>
      %621 = arith.subf %620, %615 : vector<1x1xf32>
      %622 = vector.extract_strided_slice %599 {offsets = [0, 4], sizes = [1, 1], strides = [1, 1]} : vector<1x5xf32> to vector<1x1xf32>
      %cst_148 = arith.constant 0.000000e+00 : f32
      %623 = vector.broadcast %cst_148 : f32 to vector<1x1xf32>
      %624 = arith.maximumf %622, %623 : vector<1x1xf32>
      %625 = arith.addf %624, %615 : vector<1x1xf32>
      %626 = vector.extract_strided_slice %593 {offsets = [0, 0], sizes = [1, 1], strides = [1, 1]} : vector<1x5xf32> to vector<1x1xf32>
      %627 = vector.broadcast %375 : f32 to vector<1x1xf32>
      %628 = arith.mulf %627, %626 : vector<1x1xf32>
      %629 = vector.extract_strided_slice %593 {offsets = [0, 1], sizes = [1, 1], strides = [1, 1]} : vector<1x5xf32> to vector<1x1xf32>
      %630 = arith.addf %628, %629 : vector<1x1xf32>
      %631 = arith.mulf %613, %630 : vector<1x1xf32>
      %632 = arith.subf %625, %631 : vector<1x1xf32>
      %cst_149 = arith.constant 0.166666672 : f32
      %633 = arith.mulf %342, %cst_149 : f32
      %cst_150 = arith.constant 2.000000e+00 : f32
      %634 = vector.broadcast %cst_150 : f32 to vector<1x1xf32>
      %635 = arith.mulf %634, %491 : vector<1x1xf32>
      %636 = arith.addf %425, %635 : vector<1x1xf32>
      %cst_151 = arith.constant 2.000000e+00 : f32
      %637 = vector.broadcast %cst_151 : f32 to vector<1x1xf32>
      %638 = arith.mulf %637, %557 : vector<1x1xf32>
      %639 = arith.addf %636, %638 : vector<1x1xf32>
      %640 = arith.addf %639, %621 : vector<1x1xf32>
      %641 = vector.broadcast %633 : f32 to vector<1x1xf32>
      %642 = arith.mulf %641, %640 : vector<1x1xf32>
      %643 = arith.addf %arg15, %642 : vector<1x1xf32>
      %cst_152 = arith.constant 2.000000e+00 : f32
      %644 = vector.broadcast %cst_152 : f32 to vector<1x1xf32>
      %645 = arith.mulf %644, %502 : vector<1x1xf32>
      %646 = arith.addf %436, %645 : vector<1x1xf32>
      %cst_153 = arith.constant 2.000000e+00 : f32
      %647 = vector.broadcast %cst_153 : f32 to vector<1x1xf32>
      %648 = arith.mulf %647, %568 : vector<1x1xf32>
      %649 = arith.addf %646, %648 : vector<1x1xf32>
      %650 = arith.addf %649, %632 : vector<1x1xf32>
      %651 = vector.broadcast %633 : f32 to vector<1x1xf32>
      %652 = arith.mulf %651, %650 : vector<1x1xf32>
      %653 = arith.addf %arg16, %652 : vector<1x1xf32>
      %c1_i32_154 = arith.constant 1 : i32
      %654 = arith.addi %339, %c1_i32_154 : i32
      %655 = arith.index_cast %654 : i32 to index
      %c0_155 = arith.constant 0 : index
      %656 = vector.load %arg12[%655, %c0_155] : memref<8x1xf32, #tpu.memory_space<vmem>>, vector<1x1xf32>
      tpu.vector_store %arg12[%655, %c0_155], %643 {strides = array<i32>} : memref<8x1xf32, #tpu.memory_space<vmem>>, vector<1x1xf32>,
      %c1_i32_156 = arith.constant 1 : i32
      %657 = arith.addi %339, %c1_i32_156 : i32
      %658 = arith.index_cast %657 : i32 to index
      %c0_157 = arith.constant 0 : index
      %659 = vector.load %arg13[%658, %c0_157] : memref<8x1xf32, #tpu.memory_space<vmem>>, vector<1x1xf32>
      tpu.vector_store %arg13[%658, %c0_157], %653 {strides = array<i32>} : memref<8x1xf32, #tpu.memory_space<vmem>>, vector<1x1xf32>,
      %c1_i32_158 = arith.constant 1 : i32
      %660 = arith.addi %338, %c1_i32_158 : i32
      %c12_i32_159 = arith.constant 12 : i32
      %661 = arith.muli %660, %c12_i32_159 : i32
      %662 = arith.index_cast %660 : i32 to index
      %663 = memref.load %arg4[%662] : memref<7xf32, #tpu.memory_space<smem>>
      %c0_i32_160 = arith.constant 0 : i32
      %664 = arith.addi %661, %c0_i32_160 : i32
      %665 = arith.index_cast %664 : i32 to index
      %666 = memref.load %arg3[%665] : memref<84xf32, #tpu.memory_space<smem>>
      %c1_i32_161 = arith.constant 1 : i32
      %667 = arith.addi %661, %c1_i32_161 : i32
      %668 = arith.index_cast %667 : i32 to index
      %669 = memref.load %arg3[%668] : memref<84xf32, #tpu.memory_space<smem>>
      %c2_i32_162 = arith.constant 2 : i32
      %670 = arith.addi %661, %c2_i32_162 : i32
      %671 = arith.index_cast %670 : i32 to index
      %672 = memref.load %arg3[%671] : memref<84xf32, #tpu.memory_space<smem>>
      %c3_i32_163 = arith.constant 3 : i32
      %673 = arith.addi %661, %c3_i32_163 : i32
      %674 = arith.index_cast %673 : i32 to index
      %675 = memref.load %arg3[%674] : memref<84xf32, #tpu.memory_space<smem>>
      %c4_i32_164 = arith.constant 4 : i32
      %676 = arith.addi %661, %c4_i32_164 : i32
      %677 = arith.index_cast %676 : i32 to index
      %678 = memref.load %arg3[%677] : memref<84xf32, #tpu.memory_space<smem>>
      %c5_i32_165 = arith.constant 5 : i32
      %679 = arith.addi %661, %c5_i32_165 : i32
      %680 = arith.index_cast %679 : i32 to index
      %681 = memref.load %arg3[%680] : memref<84xf32, #tpu.memory_space<smem>>
      %c6_i32_166 = arith.constant 6 : i32
      %682 = arith.addi %661, %c6_i32_166 : i32
      %683 = arith.index_cast %682 : i32 to index
      %684 = memref.load %arg3[%683] : memref<84xf32, #tpu.memory_space<smem>>
      %c7_i32_167 = arith.constant 7 : i32
      %685 = arith.addi %661, %c7_i32_167 : i32
      %686 = arith.index_cast %685 : i32 to index
      %687 = memref.load %arg3[%686] : memref<84xf32, #tpu.memory_space<smem>>
      %c8_i32_168 = arith.constant 8 : i32
      %688 = arith.addi %661, %c8_i32_168 : i32
      %689 = arith.index_cast %688 : i32 to index
      %690 = memref.load %arg3[%689] : memref<84xf32, #tpu.memory_space<smem>>
      %c9_i32_169 = arith.constant 9 : i32
      %691 = arith.addi %661, %c9_i32_169 : i32
      %692 = arith.index_cast %691 : i32 to index
      %693 = memref.load %arg3[%692] : memref<84xf32, #tpu.memory_space<smem>>
      %c10_i32_170 = arith.constant 10 : i32
      %694 = arith.addi %661, %c10_i32_170 : i32
      %695 = arith.index_cast %694 : i32 to index
      %696 = memref.load %arg3[%695] : memref<84xf32, #tpu.memory_space<smem>>
      %c11_i32_171 = arith.constant 11 : i32
      %697 = arith.addi %661, %c11_i32_171 : i32
      %698 = arith.index_cast %697 : i32 to index
      %699 = memref.load %arg3[%698] : memref<84xf32, #tpu.memory_space<smem>>
      %700 = vector.broadcast %643 : vector<1x1xf32> to vector<1x32xf32>
      %701 = arith.mulf %700, %0 : vector<1x32xf32>
      %702 = vector.broadcast %653 : vector<1x1xf32> to vector<1x32xf32>
      %703 = arith.mulf %702, %1 : vector<1x32xf32>
      %704 = arith.addf %701, %703 : vector<1x32xf32>
      %705 = vector.broadcast %666 : f32 to vector<1x32xf32>
      %706 = arith.mulf %705, %2 : vector<1x32xf32>
      %707 = arith.addf %704, %706 : vector<1x32xf32>
      %708 = vector.broadcast %669 : f32 to vector<1x32xf32>
      %709 = arith.mulf %708, %3 : vector<1x32xf32>
      %710 = arith.addf %707, %709 : vector<1x32xf32>
      %711 = arith.addf %710, %4 : vector<1x32xf32>
      %712 = math.tanh %711 : vector<1x32xf32>
      %cst_172 = arith.constant dense<0.000000e+00> : vector<1x32xf32>
      %713 = tpu.matmul %712, %5, %cst_172 {dimension_numbers = #tpu.dot_dimension_numbers<[1], [0], [0], [1], [0, 0, 1, 1], [], []>} : vector<1x32xf32>, vector<32x32xf32>, vector<1x32xf32> -> vector<1x32xf32>
      %714 = arith.addf %713, %6 : vector<1x32xf32>
      %715 = math.tanh %714 : vector<1x32xf32>
      %cst_173 = arith.constant dense<0.000000e+00> : vector<1x5xf32>
      %716 = tpu.matmul %715, %7, %cst_173 {dimension_numbers = #tpu.dot_dimension_numbers<[1], [0], [0], [1], [0, 0, 1, 1], [], []>} : vector<1x32xf32>, vector<32x5xf32>, vector<1x5xf32> -> vector<1x5xf32>
      %717 = arith.addf %716, %8 : vector<1x5xf32>
      %718 = math.exp %717 : vector<1x5xf32>
      %cst_174 = arith.constant 0.000000e+00 : f32
      %719 = vector.broadcast %cst_174 : f32 to vector<1x5xf32>
      %720 = arith.subf %719, %717 : vector<1x5xf32>
      %721 = math.exp %720 : vector<1x5xf32>
      %722 = arith.subf %718, %721 : vector<1x5xf32>
      %cst_175 = arith.constant 5.000000e-01 : f32
      %723 = vector.broadcast %cst_175 : f32 to vector<1x5xf32>
      %724 = arith.mulf %723, %722 : vector<1x5xf32>
      %cst_176 = arith.constant 5.000000e+00 : f32
      %725 = vector.broadcast %cst_176 : f32 to vector<1x1xf32>
      %726 = arith.mulf %725, %643 : vector<1x1xf32>
      %727 = math.tanh %726 : vector<1x1xf32>
      %cst_177 = arith.constant 1.000000e+00 : f32
      %728 = vector.broadcast %cst_177 : f32 to vector<1x1xf32>
      %729 = arith.addf %727, %728 : vector<1x1xf32>
      %cst_178 = arith.constant 5.000000e-01 : f32
      %730 = vector.broadcast %cst_178 : f32 to vector<1x1xf32>
      %731 = arith.mulf %730, %729 : vector<1x1xf32>
      %cst_179 = arith.constant 5.000000e+00 : f32
      %732 = vector.broadcast %cst_179 : f32 to vector<1x1xf32>
      %733 = arith.mulf %732, %653 : vector<1x1xf32>
      %734 = math.tanh %733 : vector<1x1xf32>
      %cst_180 = arith.constant 1.000000e+00 : f32
      %735 = vector.broadcast %cst_180 : f32 to vector<1x1xf32>
      %736 = arith.addf %734, %735 : vector<1x1xf32>
      %cst_181 = arith.constant 5.000000e-01 : f32
      %737 = vector.broadcast %cst_181 : f32 to vector<1x1xf32>
      %738 = arith.mulf %737, %736 : vector<1x1xf32>
      %739 = vector.extract_strided_slice %724 {offsets = [0, 2], sizes = [1, 1], strides = [1, 1]} : vector<1x5xf32> to vector<1x1xf32>
      %740 = arith.mulf %731, %739 : vector<1x1xf32>
      %741 = vector.extract_strided_slice %724 {offsets = [0, 3], sizes = [1, 1], strides = [1, 1]} : vector<1x5xf32> to vector<1x1xf32>
      %742 = vector.broadcast %675 : f32 to vector<1x1xf32>
      %743 = arith.mulf %741, %742 : vector<1x1xf32>
      %cst_182 = arith.constant 0.000000e+00 : f32
      %744 = vector.broadcast %cst_182 : f32 to vector<1x1xf32>
      %745 = arith.maximumf %743, %744 : vector<1x1xf32>
      %746 = arith.subf %745, %740 : vector<1x1xf32>
      %747 = vector.extract_strided_slice %724 {offsets = [0, 4], sizes = [1, 1], strides = [1, 1]} : vector<1x5xf32> to vector<1x1xf32>
      %cst_183 = arith.constant 0.000000e+00 : f32
      %748 = vector.broadcast %cst_183 : f32 to vector<1x1xf32>
      %749 = arith.maximumf %747, %748 : vector<1x1xf32>
      %750 = arith.addf %749, %740 : vector<1x1xf32>
      %751 = vector.extract_strided_slice %718 {offsets = [0, 0], sizes = [1, 1], strides = [1, 1]} : vector<1x5xf32> to vector<1x1xf32>
      %752 = vector.broadcast %672 : f32 to vector<1x1xf32>
      %753 = arith.mulf %752, %751 : vector<1x1xf32>
      %754 = vector.extract_strided_slice %718 {offsets = [0, 1], sizes = [1, 1], strides = [1, 1]} : vector<1x5xf32> to vector<1x1xf32>
      %755 = arith.addf %753, %754 : vector<1x1xf32>
      %756 = arith.mulf %738, %755 : vector<1x1xf32>
      %757 = arith.subf %750, %756 : vector<1x1xf32>
      %cst_184 = arith.constant 5.000000e-01 : f32
      %758 = arith.mulf %cst_184, %663 : f32
      %759 = vector.broadcast %758 : f32 to vector<1x1xf32>
      %760 = arith.mulf %759, %746 : vector<1x1xf32>
      %761 = arith.addf %643, %760 : vector<1x1xf32>
      %cst_185 = arith.constant 5.000000e-01 : f32
      %762 = arith.mulf %cst_185, %663 : f32
      %763 = vector.broadcast %762 : f32 to vector<1x1xf32>
      %764 = arith.mulf %763, %757 : vector<1x1xf32>
      %765 = arith.addf %653, %764 : vector<1x1xf32>
      %766 = vector.broadcast %761 : vector<1x1xf32> to vector<1x32xf32>
      %767 = arith.mulf %766, %0 : vector<1x32xf32>
      %768 = vector.broadcast %765 : vector<1x1xf32> to vector<1x32xf32>
      %769 = arith.mulf %768, %1 : vector<1x32xf32>
      %770 = arith.addf %767, %769 : vector<1x32xf32>
      %771 = vector.broadcast %678 : f32 to vector<1x32xf32>
      %772 = arith.mulf %771, %2 : vector<1x32xf32>
      %773 = arith.addf %770, %772 : vector<1x32xf32>
      %774 = vector.broadcast %681 : f32 to vector<1x32xf32>
      %775 = arith.mulf %774, %3 : vector<1x32xf32>
      %776 = arith.addf %773, %775 : vector<1x32xf32>
      %777 = arith.addf %776, %4 : vector<1x32xf32>
      %778 = math.tanh %777 : vector<1x32xf32>
      %cst_186 = arith.constant dense<0.000000e+00> : vector<1x32xf32>
      %779 = tpu.matmul %778, %5, %cst_186 {dimension_numbers = #tpu.dot_dimension_numbers<[1], [0], [0], [1], [0, 0, 1, 1], [], []>} : vector<1x32xf32>, vector<32x32xf32>, vector<1x32xf32> -> vector<1x32xf32>
      %780 = arith.addf %779, %6 : vector<1x32xf32>
      %781 = math.tanh %780 : vector<1x32xf32>
      %cst_187 = arith.constant dense<0.000000e+00> : vector<1x5xf32>
      %782 = tpu.matmul %781, %7, %cst_187 {dimension_numbers = #tpu.dot_dimension_numbers<[1], [0], [0], [1], [0, 0, 1, 1], [], []>} : vector<1x32xf32>, vector<32x5xf32>, vector<1x5xf32> -> vector<1x5xf32>
      %783 = arith.addf %782, %8 : vector<1x5xf32>
      %784 = math.exp %783 : vector<1x5xf32>
      %cst_188 = arith.constant 0.000000e+00 : f32
      %785 = vector.broadcast %cst_188 : f32 to vector<1x5xf32>
      %786 = arith.subf %785, %783 : vector<1x5xf32>
      %787 = math.exp %786 : vector<1x5xf32>
      %788 = arith.subf %784, %787 : vector<1x5xf32>
      %cst_189 = arith.constant 5.000000e-01 : f32
      %789 = vector.broadcast %cst_189 : f32 to vector<1x5xf32>
      %790 = arith.mulf %789, %788 : vector<1x5xf32>
      %cst_190 = arith.constant 5.000000e+00 : f32
      %791 = vector.broadcast %cst_190 : f32 to vector<1x1xf32>
      %792 = arith.mulf %791, %761 : vector<1x1xf32>
      %793 = math.tanh %792 : vector<1x1xf32>
      %cst_191 = arith.constant 1.000000e+00 : f32
      %794 = vector.broadcast %cst_191 : f32 to vector<1x1xf32>
      %795 = arith.addf %793, %794 : vector<1x1xf32>
      %cst_192 = arith.constant 5.000000e-01 : f32
      %796 = vector.broadcast %cst_192 : f32 to vector<1x1xf32>
      %797 = arith.mulf %796, %795 : vector<1x1xf32>
      %cst_193 = arith.constant 5.000000e+00 : f32
      %798 = vector.broadcast %cst_193 : f32 to vector<1x1xf32>
      %799 = arith.mulf %798, %765 : vector<1x1xf32>
      %800 = math.tanh %799 : vector<1x1xf32>
      %cst_194 = arith.constant 1.000000e+00 : f32
      %801 = vector.broadcast %cst_194 : f32 to vector<1x1xf32>
      %802 = arith.addf %800, %801 : vector<1x1xf32>
      %cst_195 = arith.constant 5.000000e-01 : f32
      %803 = vector.broadcast %cst_195 : f32 to vector<1x1xf32>
      %804 = arith.mulf %803, %802 : vector<1x1xf32>
      %805 = vector.extract_strided_slice %790 {offsets = [0, 2], sizes = [1, 1], strides = [1, 1]} : vector<1x5xf32> to vector<1x1xf32>
      %806 = arith.mulf %797, %805 : vector<1x1xf32>
      %807 = vector.extract_strided_slice %790 {offsets = [0, 3], sizes = [1, 1], strides = [1, 1]} : vector<1x5xf32> to vector<1x1xf32>
      %808 = vector.broadcast %687 : f32 to vector<1x1xf32>
      %809 = arith.mulf %807, %808 : vector<1x1xf32>
      %cst_196 = arith.constant 0.000000e+00 : f32
      %810 = vector.broadcast %cst_196 : f32 to vector<1x1xf32>
      %811 = arith.maximumf %809, %810 : vector<1x1xf32>
      %812 = arith.subf %811, %806 : vector<1x1xf32>
      %813 = vector.extract_strided_slice %790 {offsets = [0, 4], sizes = [1, 1], strides = [1, 1]} : vector<1x5xf32> to vector<1x1xf32>
      %cst_197 = arith.constant 0.000000e+00 : f32
      %814 = vector.broadcast %cst_197 : f32 to vector<1x1xf32>
      %815 = arith.maximumf %813, %814 : vector<1x1xf32>
      %816 = arith.addf %815, %806 : vector<1x1xf32>
      %817 = vector.extract_strided_slice %784 {offsets = [0, 0], sizes = [1, 1], strides = [1, 1]} : vector<1x5xf32> to vector<1x1xf32>
      %818 = vector.broadcast %684 : f32 to vector<1x1xf32>
      %819 = arith.mulf %818, %817 : vector<1x1xf32>
      %820 = vector.extract_strided_slice %784 {offsets = [0, 1], sizes = [1, 1], strides = [1, 1]} : vector<1x5xf32> to vector<1x1xf32>
      %821 = arith.addf %819, %820 : vector<1x1xf32>
      %822 = arith.mulf %804, %821 : vector<1x1xf32>
      %823 = arith.subf %816, %822 : vector<1x1xf32>
      %cst_198 = arith.constant 5.000000e-01 : f32
      %824 = arith.mulf %cst_198, %663 : f32
      %825 = vector.broadcast %824 : f32 to vector<1x1xf32>
      %826 = arith.mulf %825, %812 : vector<1x1xf32>
      %827 = arith.addf %643, %826 : vector<1x1xf32>
      %cst_199 = arith.constant 5.000000e-01 : f32
      %828 = arith.mulf %cst_199, %663 : f32
      %829 = vector.broadcast %828 : f32 to vector<1x1xf32>
      %830 = arith.mulf %829, %823 : vector<1x1xf32>
      %831 = arith.addf %653, %830 : vector<1x1xf32>
      %832 = vector.broadcast %827 : vector<1x1xf32> to vector<1x32xf32>
      %833 = arith.mulf %832, %0 : vector<1x32xf32>
      %834 = vector.broadcast %831 : vector<1x1xf32> to vector<1x32xf32>
      %835 = arith.mulf %834, %1 : vector<1x32xf32>
      %836 = arith.addf %833, %835 : vector<1x32xf32>
      %837 = vector.broadcast %678 : f32 to vector<1x32xf32>
      %838 = arith.mulf %837, %2 : vector<1x32xf32>
      %839 = arith.addf %836, %838 : vector<1x32xf32>
      %840 = vector.broadcast %681 : f32 to vector<1x32xf32>
      %841 = arith.mulf %840, %3 : vector<1x32xf32>
      %842 = arith.addf %839, %841 : vector<1x32xf32>
      %843 = arith.addf %842, %4 : vector<1x32xf32>
      %844 = math.tanh %843 : vector<1x32xf32>
      %cst_200 = arith.constant dense<0.000000e+00> : vector<1x32xf32>
      %845 = tpu.matmul %844, %5, %cst_200 {dimension_numbers = #tpu.dot_dimension_numbers<[1], [0], [0], [1], [0, 0, 1, 1], [], []>} : vector<1x32xf32>, vector<32x32xf32>, vector<1x32xf32> -> vector<1x32xf32>
      %846 = arith.addf %845, %6 : vector<1x32xf32>
      %847 = math.tanh %846 : vector<1x32xf32>
      %cst_201 = arith.constant dense<0.000000e+00> : vector<1x5xf32>
      %848 = tpu.matmul %847, %7, %cst_201 {dimension_numbers = #tpu.dot_dimension_numbers<[1], [0], [0], [1], [0, 0, 1, 1], [], []>} : vector<1x32xf32>, vector<32x5xf32>, vector<1x5xf32> -> vector<1x5xf32>
      %849 = arith.addf %848, %8 : vector<1x5xf32>
      %850 = math.exp %849 : vector<1x5xf32>
      %cst_202 = arith.constant 0.000000e+00 : f32
      %851 = vector.broadcast %cst_202 : f32 to vector<1x5xf32>
      %852 = arith.subf %851, %849 : vector<1x5xf32>
      %853 = math.exp %852 : vector<1x5xf32>
      %854 = arith.subf %850, %853 : vector<1x5xf32>
      %cst_203 = arith.constant 5.000000e-01 : f32
      %855 = vector.broadcast %cst_203 : f32 to vector<1x5xf32>
      %856 = arith.mulf %855, %854 : vector<1x5xf32>
      %cst_204 = arith.constant 5.000000e+00 : f32
      %857 = vector.broadcast %cst_204 : f32 to vector<1x1xf32>
      %858 = arith.mulf %857, %827 : vector<1x1xf32>
      %859 = math.tanh %858 : vector<1x1xf32>
      %cst_205 = arith.constant 1.000000e+00 : f32
      %860 = vector.broadcast %cst_205 : f32 to vector<1x1xf32>
      %861 = arith.addf %859, %860 : vector<1x1xf32>
      %cst_206 = arith.constant 5.000000e-01 : f32
      %862 = vector.broadcast %cst_206 : f32 to vector<1x1xf32>
      %863 = arith.mulf %862, %861 : vector<1x1xf32>
      %cst_207 = arith.constant 5.000000e+00 : f32
      %864 = vector.broadcast %cst_207 : f32 to vector<1x1xf32>
      %865 = arith.mulf %864, %831 : vector<1x1xf32>
      %866 = math.tanh %865 : vector<1x1xf32>
      %cst_208 = arith.constant 1.000000e+00 : f32
      %867 = vector.broadcast %cst_208 : f32 to vector<1x1xf32>
      %868 = arith.addf %866, %867 : vector<1x1xf32>
      %cst_209 = arith.constant 5.000000e-01 : f32
      %869 = vector.broadcast %cst_209 : f32 to vector<1x1xf32>
      %870 = arith.mulf %869, %868 : vector<1x1xf32>
      %871 = vector.extract_strided_slice %856 {offsets = [0, 2], sizes = [1, 1], strides = [1, 1]} : vector<1x5xf32> to vector<1x1xf32>
      %872 = arith.mulf %863, %871 : vector<1x1xf32>
      %873 = vector.extract_strided_slice %856 {offsets = [0, 3], sizes = [1, 1], strides = [1, 1]} : vector<1x5xf32> to vector<1x1xf32>
      %874 = vector.broadcast %687 : f32 to vector<1x1xf32>
      %875 = arith.mulf %873, %874 : vector<1x1xf32>
      %cst_210 = arith.constant 0.000000e+00 : f32
      %876 = vector.broadcast %cst_210 : f32 to vector<1x1xf32>
      %877 = arith.maximumf %875, %876 : vector<1x1xf32>
      %878 = arith.subf %877, %872 : vector<1x1xf32>
      %879 = vector.extract_strided_slice %856 {offsets = [0, 4], sizes = [1, 1], strides = [1, 1]} : vector<1x5xf32> to vector<1x1xf32>
      %cst_211 = arith.constant 0.000000e+00 : f32
      %880 = vector.broadcast %cst_211 : f32 to vector<1x1xf32>
      %881 = arith.maximumf %879, %880 : vector<1x1xf32>
      %882 = arith.addf %881, %872 : vector<1x1xf32>
      %883 = vector.extract_strided_slice %850 {offsets = [0, 0], sizes = [1, 1], strides = [1, 1]} : vector<1x5xf32> to vector<1x1xf32>
      %884 = vector.broadcast %684 : f32 to vector<1x1xf32>
      %885 = arith.mulf %884, %883 : vector<1x1xf32>
      %886 = vector.extract_strided_slice %850 {offsets = [0, 1], sizes = [1, 1], strides = [1, 1]} : vector<1x5xf32> to vector<1x1xf32>
      %887 = arith.addf %885, %886 : vector<1x1xf32>
      %888 = arith.mulf %870, %887 : vector<1x1xf32>
      %889 = arith.subf %882, %888 : vector<1x1xf32>
      %890 = vector.broadcast %663 : f32 to vector<1x1xf32>
      %891 = arith.mulf %890, %878 : vector<1x1xf32>
      %892 = arith.addf %643, %891 : vector<1x1xf32>
      %893 = vector.broadcast %663 : f32 to vector<1x1xf32>
      %894 = arith.mulf %893, %889 : vector<1x1xf32>
      %895 = arith.addf %653, %894 : vector<1x1xf32>
      %896 = vector.broadcast %892 : vector<1x1xf32> to vector<1x32xf32>
      %897 = arith.mulf %896, %0 : vector<1x32xf32>
      %898 = vector.broadcast %895 : vector<1x1xf32> to vector<1x32xf32>
      %899 = arith.mulf %898, %1 : vector<1x32xf32>
      %900 = arith.addf %897, %899 : vector<1x32xf32>
      %901 = vector.broadcast %690 : f32 to vector<1x32xf32>
      %902 = arith.mulf %901, %2 : vector<1x32xf32>
      %903 = arith.addf %900, %902 : vector<1x32xf32>
      %904 = vector.broadcast %693 : f32 to vector<1x32xf32>
      %905 = arith.mulf %904, %3 : vector<1x32xf32>
      %906 = arith.addf %903, %905 : vector<1x32xf32>
      %907 = arith.addf %906, %4 : vector<1x32xf32>
      %908 = math.tanh %907 : vector<1x32xf32>
      %cst_212 = arith.constant dense<0.000000e+00> : vector<1x32xf32>
      %909 = tpu.matmul %908, %5, %cst_212 {dimension_numbers = #tpu.dot_dimension_numbers<[1], [0], [0], [1], [0, 0, 1, 1], [], []>} : vector<1x32xf32>, vector<32x32xf32>, vector<1x32xf32> -> vector<1x32xf32>
      %910 = arith.addf %909, %6 : vector<1x32xf32>
      %911 = math.tanh %910 : vector<1x32xf32>
      %cst_213 = arith.constant dense<0.000000e+00> : vector<1x5xf32>
      %912 = tpu.matmul %911, %7, %cst_213 {dimension_numbers = #tpu.dot_dimension_numbers<[1], [0], [0], [1], [0, 0, 1, 1], [], []>} : vector<1x32xf32>, vector<32x5xf32>, vector<1x5xf32> -> vector<1x5xf32>
      %913 = arith.addf %912, %8 : vector<1x5xf32>
      %914 = math.exp %913 : vector<1x5xf32>
      %cst_214 = arith.constant 0.000000e+00 : f32
      %915 = vector.broadcast %cst_214 : f32 to vector<1x5xf32>
      %916 = arith.subf %915, %913 : vector<1x5xf32>
      %917 = math.exp %916 : vector<1x5xf32>
      %918 = arith.subf %914, %917 : vector<1x5xf32>
      %cst_215 = arith.constant 5.000000e-01 : f32
      %919 = vector.broadcast %cst_215 : f32 to vector<1x5xf32>
      %920 = arith.mulf %919, %918 : vector<1x5xf32>
      %cst_216 = arith.constant 5.000000e+00 : f32
      %921 = vector.broadcast %cst_216 : f32 to vector<1x1xf32>
      %922 = arith.mulf %921, %892 : vector<1x1xf32>
      %923 = math.tanh %922 : vector<1x1xf32>
      %cst_217 = arith.constant 1.000000e+00 : f32
      %924 = vector.broadcast %cst_217 : f32 to vector<1x1xf32>
      %925 = arith.addf %923, %924 : vector<1x1xf32>
      %cst_218 = arith.constant 5.000000e-01 : f32
      %926 = vector.broadcast %cst_218 : f32 to vector<1x1xf32>
      %927 = arith.mulf %926, %925 : vector<1x1xf32>
      %cst_219 = arith.constant 5.000000e+00 : f32
      %928 = vector.broadcast %cst_219 : f32 to vector<1x1xf32>
      %929 = arith.mulf %928, %895 : vector<1x1xf32>
      %930 = math.tanh %929 : vector<1x1xf32>
      %cst_220 = arith.constant 1.000000e+00 : f32
      %931 = vector.broadcast %cst_220 : f32 to vector<1x1xf32>
      %932 = arith.addf %930, %931 : vector<1x1xf32>
      %cst_221 = arith.constant 5.000000e-01 : f32
      %933 = vector.broadcast %cst_221 : f32 to vector<1x1xf32>
      %934 = arith.mulf %933, %932 : vector<1x1xf32>
      %935 = vector.extract_strided_slice %920 {offsets = [0, 2], sizes = [1, 1], strides = [1, 1]} : vector<1x5xf32> to vector<1x1xf32>
      %936 = arith.mulf %927, %935 : vector<1x1xf32>
      %937 = vector.extract_strided_slice %920 {offsets = [0, 3], sizes = [1, 1], strides = [1, 1]} : vector<1x5xf32> to vector<1x1xf32>
      %938 = vector.broadcast %699 : f32 to vector<1x1xf32>
      %939 = arith.mulf %937, %938 : vector<1x1xf32>
      %cst_222 = arith.constant 0.000000e+00 : f32
      %940 = vector.broadcast %cst_222 : f32 to vector<1x1xf32>
      %941 = arith.maximumf %939, %940 : vector<1x1xf32>
      %942 = arith.subf %941, %936 : vector<1x1xf32>
      %943 = vector.extract_strided_slice %920 {offsets = [0, 4], sizes = [1, 1], strides = [1, 1]} : vector<1x5xf32> to vector<1x1xf32>
      %cst_223 = arith.constant 0.000000e+00 : f32
      %944 = vector.broadcast %cst_223 : f32 to vector<1x1xf32>
      %945 = arith.maximumf %943, %944 : vector<1x1xf32>
      %946 = arith.addf %945, %936 : vector<1x1xf32>
      %947 = vector.extract_strided_slice %914 {offsets = [0, 0], sizes = [1, 1], strides = [1, 1]} : vector<1x5xf32> to vector<1x1xf32>
      %948 = vector.broadcast %696 : f32 to vector<1x1xf32>
      %949 = arith.mulf %948, %947 : vector<1x1xf32>
      %950 = vector.extract_strided_slice %914 {offsets = [0, 1], sizes = [1, 1], strides = [1, 1]} : vector<1x5xf32> to vector<1x1xf32>
      %951 = arith.addf %949, %950 : vector<1x1xf32>
      %952 = arith.mulf %934, %951 : vector<1x1xf32>
      %953 = arith.subf %946, %952 : vector<1x1xf32>
      %cst_224 = arith.constant 0.166666672 : f32
      %954 = arith.mulf %663, %cst_224 : f32
      %cst_225 = arith.constant 2.000000e+00 : f32
      %955 = vector.broadcast %cst_225 : f32 to vector<1x1xf32>
      %956 = arith.mulf %955, %812 : vector<1x1xf32>
      %957 = arith.addf %746, %956 : vector<1x1xf32>
      %cst_226 = arith.constant 2.000000e+00 : f32
      %958 = vector.broadcast %cst_226 : f32 to vector<1x1xf32>
      %959 = arith.mulf %958, %878 : vector<1x1xf32>
      %960 = arith.addf %957, %959 : vector<1x1xf32>
      %961 = arith.addf %960, %942 : vector<1x1xf32>
      %962 = vector.broadcast %954 : f32 to vector<1x1xf32>
      %963 = arith.mulf %962, %961 : vector<1x1xf32>
      %964 = arith.addf %643, %963 : vector<1x1xf32>
      %cst_227 = arith.constant 2.000000e+00 : f32
      %965 = vector.broadcast %cst_227 : f32 to vector<1x1xf32>
      %966 = arith.mulf %965, %823 : vector<1x1xf32>
      %967 = arith.addf %757, %966 : vector<1x1xf32>
      %cst_228 = arith.constant 2.000000e+00 : f32
      %968 = vector.broadcast %cst_228 : f32 to vector<1x1xf32>
      %969 = arith.mulf %968, %889 : vector<1x1xf32>
      %970 = arith.addf %967, %969 : vector<1x1xf32>
      %971 = arith.addf %970, %953 : vector<1x1xf32>
      %972 = vector.broadcast %954 : f32 to vector<1x1xf32>
      %973 = arith.mulf %972, %971 : vector<1x1xf32>
      %974 = arith.addf %653, %973 : vector<1x1xf32>
      %c1_i32_229 = arith.constant 1 : i32
      %975 = arith.addi %660, %c1_i32_229 : i32
      %976 = arith.index_cast %975 : i32 to index
      %c0_230 = arith.constant 0 : index
      %977 = vector.load %arg12[%976, %c0_230] : memref<8x1xf32, #tpu.memory_space<vmem>>, vector<1x1xf32>
      tpu.vector_store %arg12[%976, %c0_230], %964 {strides = array<i32>} : memref<8x1xf32, #tpu.memory_space<vmem>>, vector<1x1xf32>,
      %c1_i32_231 = arith.constant 1 : i32
      %978 = arith.addi %660, %c1_i32_231 : i32
      %979 = arith.index_cast %978 : i32 to index
      %c0_232 = arith.constant 0 : index
      %980 = vector.load %arg13[%979, %c0_232] : memref<8x1xf32, #tpu.memory_space<vmem>>, vector<1x1xf32>
      tpu.vector_store %arg13[%979, %c0_232], %974 {strides = array<i32>} : memref<8x1xf32, #tpu.memory_space<vmem>>, vector<1x1xf32>,
      scf.yield %964, %974 : vector<1x1xf32>, vector<1x1xf32>
    }
    %c3_i32_22 = arith.constant 3 : i32
    %c6 = arith.constant 6 : index
    %15 = memref.load %arg4[%c6] : memref<7xf32, #tpu.memory_space<smem>>
    %c72 = arith.constant 72 : index
    %16 = memref.load %arg3[%c72] : memref<84xf32, #tpu.memory_space<smem>>
    %c73 = arith.constant 73 : index
    %17 = memref.load %arg3[%c73] : memref<84xf32, #tpu.memory_space<smem>>
    %c74 = arith.constant 74 : index
    %18 = memref.load %arg3[%c74] : memref<84xf32, #tpu.memory_space<smem>>
    %c75 = arith.constant 75 : index
    %19 = memref.load %arg3[%c75] : memref<84xf32, #tpu.memory_space<smem>>
    %c76 = arith.constant 76 : index
    %20 = memref.load %arg3[%c76] : memref<84xf32, #tpu.memory_space<smem>>
    %c77 = arith.constant 77 : index
    %21 = memref.load %arg3[%c77] : memref<84xf32, #tpu.memory_space<smem>>
    %c78 = arith.constant 78 : index
    %22 = memref.load %arg3[%c78] : memref<84xf32, #tpu.memory_space<smem>>
    %c79 = arith.constant 79 : index
    %23 = memref.load %arg3[%c79] : memref<84xf32, #tpu.memory_space<smem>>
    %c80 = arith.constant 80 : index
    %24 = memref.load %arg3[%c80] : memref<84xf32, #tpu.memory_space<smem>>
    %c81 = arith.constant 81 : index
    %25 = memref.load %arg3[%c81] : memref<84xf32, #tpu.memory_space<smem>>
    %c82 = arith.constant 82 : index
    %26 = memref.load %arg3[%c82] : memref<84xf32, #tpu.memory_space<smem>>
    %c83 = arith.constant 83 : index
    %27 = memref.load %arg3[%c83] : memref<84xf32, #tpu.memory_space<smem>>
    %28 = vector.broadcast %14#0 : vector<1x1xf32> to vector<1x32xf32>
    %29 = arith.mulf %28, %0 : vector<1x32xf32>
    %30 = vector.broadcast %14#1 : vector<1x1xf32> to vector<1x32xf32>
    %31 = arith.mulf %30, %1 : vector<1x32xf32>
    %32 = arith.addf %29, %31 : vector<1x32xf32>
    %33 = vector.broadcast %16 : f32 to vector<1x32xf32>
    %34 = arith.mulf %33, %2 : vector<1x32xf32>
    %35 = arith.addf %32, %34 : vector<1x32xf32>
    %36 = vector.broadcast %17 : f32 to vector<1x32xf32>
    %37 = arith.mulf %36, %3 : vector<1x32xf32>
    %38 = arith.addf %35, %37 : vector<1x32xf32>
    %39 = arith.addf %38, %4 : vector<1x32xf32>
    %40 = math.tanh %39 : vector<1x32xf32>
    %cst = arith.constant dense<0.000000e+00> : vector<1x32xf32>
    %41 = tpu.matmul %40, %5, %cst {dimension_numbers = #tpu.dot_dimension_numbers<[1], [0], [0], [1], [0, 0, 1, 1], [], []>} : vector<1x32xf32>, vector<32x32xf32>, vector<1x32xf32> -> vector<1x32xf32>
    %42 = arith.addf %41, %6 : vector<1x32xf32>
    %43 = math.tanh %42 : vector<1x32xf32>
    %cst_23 = arith.constant dense<0.000000e+00> : vector<1x5xf32>
    %44 = tpu.matmul %43, %7, %cst_23 {dimension_numbers = #tpu.dot_dimension_numbers<[1], [0], [0], [1], [0, 0, 1, 1], [], []>} : vector<1x32xf32>, vector<32x5xf32>, vector<1x5xf32> -> vector<1x5xf32>
    %45 = arith.addf %44, %8 : vector<1x5xf32>
    %46 = math.exp %45 : vector<1x5xf32>
    %cst_24 = arith.constant 0.000000e+00 : f32
    %47 = vector.broadcast %cst_24 : f32 to vector<1x5xf32>
    %48 = arith.subf %47, %45 : vector<1x5xf32>
    %49 = math.exp %48 : vector<1x5xf32>
    %50 = arith.subf %46, %49 : vector<1x5xf32>
    %cst_25 = arith.constant 5.000000e-01 : f32
    %51 = vector.broadcast %cst_25 : f32 to vector<1x5xf32>
    %52 = arith.mulf %51, %50 : vector<1x5xf32>
    %cst_26 = arith.constant 5.000000e+00 : f32
    %53 = vector.broadcast %cst_26 : f32 to vector<1x1xf32>
    %54 = arith.mulf %53, %14#0 : vector<1x1xf32>
    %55 = math.tanh %54 : vector<1x1xf32>
    %cst_27 = arith.constant 1.000000e+00 : f32
    %56 = vector.broadcast %cst_27 : f32 to vector<1x1xf32>
    %57 = arith.addf %55, %56 : vector<1x1xf32>
    %cst_28 = arith.constant 5.000000e-01 : f32
    %58 = vector.broadcast %cst_28 : f32 to vector<1x1xf32>
    %59 = arith.mulf %58, %57 : vector<1x1xf32>
    %cst_29 = arith.constant 5.000000e+00 : f32
    %60 = vector.broadcast %cst_29 : f32 to vector<1x1xf32>
    %61 = arith.mulf %60, %14#1 : vector<1x1xf32>
    %62 = math.tanh %61 : vector<1x1xf32>
    %cst_30 = arith.constant 1.000000e+00 : f32
    %63 = vector.broadcast %cst_30 : f32 to vector<1x1xf32>
    %64 = arith.addf %62, %63 : vector<1x1xf32>
    %cst_31 = arith.constant 5.000000e-01 : f32
    %65 = vector.broadcast %cst_31 : f32 to vector<1x1xf32>
    %66 = arith.mulf %65, %64 : vector<1x1xf32>
    %67 = vector.extract_strided_slice %52 {offsets = [0, 2], sizes = [1, 1], strides = [1, 1]} : vector<1x5xf32> to vector<1x1xf32>
    %68 = arith.mulf %59, %67 : vector<1x1xf32>
    %69 = vector.extract_strided_slice %52 {offsets = [0, 3], sizes = [1, 1], strides = [1, 1]} : vector<1x5xf32> to vector<1x1xf32>
    %70 = vector.broadcast %19 : f32 to vector<1x1xf32>
    %71 = arith.mulf %69, %70 : vector<1x1xf32>
    %cst_32 = arith.constant 0.000000e+00 : f32
    %72 = vector.broadcast %cst_32 : f32 to vector<1x1xf32>
    %73 = arith.maximumf %71, %72 : vector<1x1xf32>
    %74 = arith.subf %73, %68 : vector<1x1xf32>
    %75 = vector.extract_strided_slice %52 {offsets = [0, 4], sizes = [1, 1], strides = [1, 1]} : vector<1x5xf32> to vector<1x1xf32>
    %cst_33 = arith.constant 0.000000e+00 : f32
    %76 = vector.broadcast %cst_33 : f32 to vector<1x1xf32>
    %77 = arith.maximumf %75, %76 : vector<1x1xf32>
    %78 = arith.addf %77, %68 : vector<1x1xf32>
    %79 = vector.extract_strided_slice %46 {offsets = [0, 0], sizes = [1, 1], strides = [1, 1]} : vector<1x5xf32> to vector<1x1xf32>
    %80 = vector.broadcast %18 : f32 to vector<1x1xf32>
    %81 = arith.mulf %80, %79 : vector<1x1xf32>
    %82 = vector.extract_strided_slice %46 {offsets = [0, 1], sizes = [1, 1], strides = [1, 1]} : vector<1x5xf32> to vector<1x1xf32>
    %83 = arith.addf %81, %82 : vector<1x1xf32>
    %84 = arith.mulf %66, %83 : vector<1x1xf32>
    %85 = arith.subf %78, %84 : vector<1x1xf32>
    %cst_34 = arith.constant 5.000000e-01 : f32
    %86 = arith.mulf %cst_34, %15 : f32
    %87 = vector.broadcast %86 : f32 to vector<1x1xf32>
    %88 = arith.mulf %87, %74 : vector<1x1xf32>
    %89 = arith.addf %14#0, %88 : vector<1x1xf32>
    %cst_35 = arith.constant 5.000000e-01 : f32
    %90 = arith.mulf %cst_35, %15 : f32
    %91 = vector.broadcast %90 : f32 to vector<1x1xf32>
    %92 = arith.mulf %91, %85 : vector<1x1xf32>
    %93 = arith.addf %14#1, %92 : vector<1x1xf32>
    %94 = vector.broadcast %89 : vector<1x1xf32> to vector<1x32xf32>
    %95 = arith.mulf %94, %0 : vector<1x32xf32>
    %96 = vector.broadcast %93 : vector<1x1xf32> to vector<1x32xf32>
    %97 = arith.mulf %96, %1 : vector<1x32xf32>
    %98 = arith.addf %95, %97 : vector<1x32xf32>
    %99 = vector.broadcast %20 : f32 to vector<1x32xf32>
    %100 = arith.mulf %99, %2 : vector<1x32xf32>
    %101 = arith.addf %98, %100 : vector<1x32xf32>
    %102 = vector.broadcast %21 : f32 to vector<1x32xf32>
    %103 = arith.mulf %102, %3 : vector<1x32xf32>
    %104 = arith.addf %101, %103 : vector<1x32xf32>
    %105 = arith.addf %104, %4 : vector<1x32xf32>
    %106 = math.tanh %105 : vector<1x32xf32>
    %cst_36 = arith.constant dense<0.000000e+00> : vector<1x32xf32>
    %107 = tpu.matmul %106, %5, %cst_36 {dimension_numbers = #tpu.dot_dimension_numbers<[1], [0], [0], [1], [0, 0, 1, 1], [], []>} : vector<1x32xf32>, vector<32x32xf32>, vector<1x32xf32> -> vector<1x32xf32>
    %108 = arith.addf %107, %6 : vector<1x32xf32>
    %109 = math.tanh %108 : vector<1x32xf32>
    %cst_37 = arith.constant dense<0.000000e+00> : vector<1x5xf32>
    %110 = tpu.matmul %109, %7, %cst_37 {dimension_numbers = #tpu.dot_dimension_numbers<[1], [0], [0], [1], [0, 0, 1, 1], [], []>} : vector<1x32xf32>, vector<32x5xf32>, vector<1x5xf32> -> vector<1x5xf32>
    %111 = arith.addf %110, %8 : vector<1x5xf32>
    %112 = math.exp %111 : vector<1x5xf32>
    %cst_38 = arith.constant 0.000000e+00 : f32
    %113 = vector.broadcast %cst_38 : f32 to vector<1x5xf32>
    %114 = arith.subf %113, %111 : vector<1x5xf32>
    %115 = math.exp %114 : vector<1x5xf32>
    %116 = arith.subf %112, %115 : vector<1x5xf32>
    %cst_39 = arith.constant 5.000000e-01 : f32
    %117 = vector.broadcast %cst_39 : f32 to vector<1x5xf32>
    %118 = arith.mulf %117, %116 : vector<1x5xf32>
    %cst_40 = arith.constant 5.000000e+00 : f32
    %119 = vector.broadcast %cst_40 : f32 to vector<1x1xf32>
    %120 = arith.mulf %119, %89 : vector<1x1xf32>
    %121 = math.tanh %120 : vector<1x1xf32>
    %cst_41 = arith.constant 1.000000e+00 : f32
    %122 = vector.broadcast %cst_41 : f32 to vector<1x1xf32>
    %123 = arith.addf %121, %122 : vector<1x1xf32>
    %cst_42 = arith.constant 5.000000e-01 : f32
    %124 = vector.broadcast %cst_42 : f32 to vector<1x1xf32>
    %125 = arith.mulf %124, %123 : vector<1x1xf32>
    %cst_43 = arith.constant 5.000000e+00 : f32
    %126 = vector.broadcast %cst_43 : f32 to vector<1x1xf32>
    %127 = arith.mulf %126, %93 : vector<1x1xf32>
    %128 = math.tanh %127 : vector<1x1xf32>
    %cst_44 = arith.constant 1.000000e+00 : f32
    %129 = vector.broadcast %cst_44 : f32 to vector<1x1xf32>
    %130 = arith.addf %128, %129 : vector<1x1xf32>
    %cst_45 = arith.constant 5.000000e-01 : f32
    %131 = vector.broadcast %cst_45 : f32 to vector<1x1xf32>
    %132 = arith.mulf %131, %130 : vector<1x1xf32>
    %133 = vector.extract_strided_slice %118 {offsets = [0, 2], sizes = [1, 1], strides = [1, 1]} : vector<1x5xf32> to vector<1x1xf32>
    %134 = arith.mulf %125, %133 : vector<1x1xf32>
    %135 = vector.extract_strided_slice %118 {offsets = [0, 3], sizes = [1, 1], strides = [1, 1]} : vector<1x5xf32> to vector<1x1xf32>
    %136 = vector.broadcast %23 : f32 to vector<1x1xf32>
    %137 = arith.mulf %135, %136 : vector<1x1xf32>
    %cst_46 = arith.constant 0.000000e+00 : f32
    %138 = vector.broadcast %cst_46 : f32 to vector<1x1xf32>
    %139 = arith.maximumf %137, %138 : vector<1x1xf32>
    %140 = arith.subf %139, %134 : vector<1x1xf32>
    %141 = vector.extract_strided_slice %118 {offsets = [0, 4], sizes = [1, 1], strides = [1, 1]} : vector<1x5xf32> to vector<1x1xf32>
    %cst_47 = arith.constant 0.000000e+00 : f32
    %142 = vector.broadcast %cst_47 : f32 to vector<1x1xf32>
    %143 = arith.maximumf %141, %142 : vector<1x1xf32>
    %144 = arith.addf %143, %134 : vector<1x1xf32>
    %145 = vector.extract_strided_slice %112 {offsets = [0, 0], sizes = [1, 1], strides = [1, 1]} : vector<1x5xf32> to vector<1x1xf32>
    %146 = vector.broadcast %22 : f32 to vector<1x1xf32>
    %147 = arith.mulf %146, %145 : vector<1x1xf32>
    %148 = vector.extract_strided_slice %112 {offsets = [0, 1], sizes = [1, 1], strides = [1, 1]} : vector<1x5xf32> to vector<1x1xf32>
    %149 = arith.addf %147, %148 : vector<1x1xf32>
    %150 = arith.mulf %132, %149 : vector<1x1xf32>
    %151 = arith.subf %144, %150 : vector<1x1xf32>
    %cst_48 = arith.constant 5.000000e-01 : f32
    %152 = arith.mulf %cst_48, %15 : f32
    %153 = vector.broadcast %152 : f32 to vector<1x1xf32>
    %154 = arith.mulf %153, %140 : vector<1x1xf32>
    %155 = arith.addf %14#0, %154 : vector<1x1xf32>
    %cst_49 = arith.constant 5.000000e-01 : f32
    %156 = arith.mulf %cst_49, %15 : f32
    %157 = vector.broadcast %156 : f32 to vector<1x1xf32>
    %158 = arith.mulf %157, %151 : vector<1x1xf32>
    %159 = arith.addf %14#1, %158 : vector<1x1xf32>
    %160 = vector.broadcast %155 : vector<1x1xf32> to vector<1x32xf32>
    %161 = arith.mulf %160, %0 : vector<1x32xf32>
    %162 = vector.broadcast %159 : vector<1x1xf32> to vector<1x32xf32>
    %163 = arith.mulf %162, %1 : vector<1x32xf32>
    %164 = arith.addf %161, %163 : vector<1x32xf32>
    %165 = vector.broadcast %20 : f32 to vector<1x32xf32>
    %166 = arith.mulf %165, %2 : vector<1x32xf32>
    %167 = arith.addf %164, %166 : vector<1x32xf32>
    %168 = vector.broadcast %21 : f32 to vector<1x32xf32>
    %169 = arith.mulf %168, %3 : vector<1x32xf32>
    %170 = arith.addf %167, %169 : vector<1x32xf32>
    %171 = arith.addf %170, %4 : vector<1x32xf32>
    %172 = math.tanh %171 : vector<1x32xf32>
    %cst_50 = arith.constant dense<0.000000e+00> : vector<1x32xf32>
    %173 = tpu.matmul %172, %5, %cst_50 {dimension_numbers = #tpu.dot_dimension_numbers<[1], [0], [0], [1], [0, 0, 1, 1], [], []>} : vector<1x32xf32>, vector<32x32xf32>, vector<1x32xf32> -> vector<1x32xf32>
    %174 = arith.addf %173, %6 : vector<1x32xf32>
    %175 = math.tanh %174 : vector<1x32xf32>
    %cst_51 = arith.constant dense<0.000000e+00> : vector<1x5xf32>
    %176 = tpu.matmul %175, %7, %cst_51 {dimension_numbers = #tpu.dot_dimension_numbers<[1], [0], [0], [1], [0, 0, 1, 1], [], []>} : vector<1x32xf32>, vector<32x5xf32>, vector<1x5xf32> -> vector<1x5xf32>
    %177 = arith.addf %176, %8 : vector<1x5xf32>
    %178 = math.exp %177 : vector<1x5xf32>
    %cst_52 = arith.constant 0.000000e+00 : f32
    %179 = vector.broadcast %cst_52 : f32 to vector<1x5xf32>
    %180 = arith.subf %179, %177 : vector<1x5xf32>
    %181 = math.exp %180 : vector<1x5xf32>
    %182 = arith.subf %178, %181 : vector<1x5xf32>
    %cst_53 = arith.constant 5.000000e-01 : f32
    %183 = vector.broadcast %cst_53 : f32 to vector<1x5xf32>
    %184 = arith.mulf %183, %182 : vector<1x5xf32>
    %cst_54 = arith.constant 5.000000e+00 : f32
    %185 = vector.broadcast %cst_54 : f32 to vector<1x1xf32>
    %186 = arith.mulf %185, %155 : vector<1x1xf32>
    %187 = math.tanh %186 : vector<1x1xf32>
    %cst_55 = arith.constant 1.000000e+00 : f32
    %188 = vector.broadcast %cst_55 : f32 to vector<1x1xf32>
    %189 = arith.addf %187, %188 : vector<1x1xf32>
    %cst_56 = arith.constant 5.000000e-01 : f32
    %190 = vector.broadcast %cst_56 : f32 to vector<1x1xf32>
    %191 = arith.mulf %190, %189 : vector<1x1xf32>
    %cst_57 = arith.constant 5.000000e+00 : f32
    %192 = vector.broadcast %cst_57 : f32 to vector<1x1xf32>
    %193 = arith.mulf %192, %159 : vector<1x1xf32>
    %194 = math.tanh %193 : vector<1x1xf32>
    %cst_58 = arith.constant 1.000000e+00 : f32
    %195 = vector.broadcast %cst_58 : f32 to vector<1x1xf32>
    %196 = arith.addf %194, %195 : vector<1x1xf32>
    %cst_59 = arith.constant 5.000000e-01 : f32
    %197 = vector.broadcast %cst_59 : f32 to vector<1x1xf32>
    %198 = arith.mulf %197, %196 : vector<1x1xf32>
    %199 = vector.extract_strided_slice %184 {offsets = [0, 2], sizes = [1, 1], strides = [1, 1]} : vector<1x5xf32> to vector<1x1xf32>
    %200 = arith.mulf %191, %199 : vector<1x1xf32>
    %201 = vector.extract_strided_slice %184 {offsets = [0, 3], sizes = [1, 1], strides = [1, 1]} : vector<1x5xf32> to vector<1x1xf32>
    %202 = vector.broadcast %23 : f32 to vector<1x1xf32>
    %203 = arith.mulf %201, %202 : vector<1x1xf32>
    %cst_60 = arith.constant 0.000000e+00 : f32
    %204 = vector.broadcast %cst_60 : f32 to vector<1x1xf32>
    %205 = arith.maximumf %203, %204 : vector<1x1xf32>
    %206 = arith.subf %205, %200 : vector<1x1xf32>
    %207 = vector.extract_strided_slice %184 {offsets = [0, 4], sizes = [1, 1], strides = [1, 1]} : vector<1x5xf32> to vector<1x1xf32>
    %cst_61 = arith.constant 0.000000e+00 : f32
    %208 = vector.broadcast %cst_61 : f32 to vector<1x1xf32>
    %209 = arith.maximumf %207, %208 : vector<1x1xf32>
    %210 = arith.addf %209, %200 : vector<1x1xf32>
    %211 = vector.extract_strided_slice %178 {offsets = [0, 0], sizes = [1, 1], strides = [1, 1]} : vector<1x5xf32> to vector<1x1xf32>
    %212 = vector.broadcast %22 : f32 to vector<1x1xf32>
    %213 = arith.mulf %212, %211 : vector<1x1xf32>
    %214 = vector.extract_strided_slice %178 {offsets = [0, 1], sizes = [1, 1], strides = [1, 1]} : vector<1x5xf32> to vector<1x1xf32>
    %215 = arith.addf %213, %214 : vector<1x1xf32>
    %216 = arith.mulf %198, %215 : vector<1x1xf32>
    %217 = arith.subf %210, %216 : vector<1x1xf32>
    %218 = vector.broadcast %15 : f32 to vector<1x1xf32>
    %219 = arith.mulf %218, %206 : vector<1x1xf32>
    %220 = arith.addf %14#0, %219 : vector<1x1xf32>
    %221 = vector.broadcast %15 : f32 to vector<1x1xf32>
    %222 = arith.mulf %221, %217 : vector<1x1xf32>
    %223 = arith.addf %14#1, %222 : vector<1x1xf32>
    %224 = vector.broadcast %220 : vector<1x1xf32> to vector<1x32xf32>
    %225 = arith.mulf %224, %0 : vector<1x32xf32>
    %226 = vector.broadcast %223 : vector<1x1xf32> to vector<1x32xf32>
    %227 = arith.mulf %226, %1 : vector<1x32xf32>
    %228 = arith.addf %225, %227 : vector<1x32xf32>
    %229 = vector.broadcast %24 : f32 to vector<1x32xf32>
    %230 = arith.mulf %229, %2 : vector<1x32xf32>
    %231 = arith.addf %228, %230 : vector<1x32xf32>
    %232 = vector.broadcast %25 : f32 to vector<1x32xf32>
    %233 = arith.mulf %232, %3 : vector<1x32xf32>
    %234 = arith.addf %231, %233 : vector<1x32xf32>
    %235 = arith.addf %234, %4 : vector<1x32xf32>
    %236 = math.tanh %235 : vector<1x32xf32>
    %cst_62 = arith.constant dense<0.000000e+00> : vector<1x32xf32>
    %237 = tpu.matmul %236, %5, %cst_62 {dimension_numbers = #tpu.dot_dimension_numbers<[1], [0], [0], [1], [0, 0, 1, 1], [], []>} : vector<1x32xf32>, vector<32x32xf32>, vector<1x32xf32> -> vector<1x32xf32>
    %238 = arith.addf %237, %6 : vector<1x32xf32>
    %239 = math.tanh %238 : vector<1x32xf32>
    %cst_63 = arith.constant dense<0.000000e+00> : vector<1x5xf32>
    %240 = tpu.matmul %239, %7, %cst_63 {dimension_numbers = #tpu.dot_dimension_numbers<[1], [0], [0], [1], [0, 0, 1, 1], [], []>} : vector<1x32xf32>, vector<32x5xf32>, vector<1x5xf32> -> vector<1x5xf32>
    %241 = arith.addf %240, %8 : vector<1x5xf32>
    %242 = math.exp %241 : vector<1x5xf32>
    %cst_64 = arith.constant 0.000000e+00 : f32
    %243 = vector.broadcast %cst_64 : f32 to vector<1x5xf32>
    %244 = arith.subf %243, %241 : vector<1x5xf32>
    %245 = math.exp %244 : vector<1x5xf32>
    %246 = arith.subf %242, %245 : vector<1x5xf32>
    %cst_65 = arith.constant 5.000000e-01 : f32
    %247 = vector.broadcast %cst_65 : f32 to vector<1x5xf32>
    %248 = arith.mulf %247, %246 : vector<1x5xf32>
    %cst_66 = arith.constant 5.000000e+00 : f32
    %249 = vector.broadcast %cst_66 : f32 to vector<1x1xf32>
    %250 = arith.mulf %249, %220 : vector<1x1xf32>
    %251 = math.tanh %250 : vector<1x1xf32>
    %cst_67 = arith.constant 1.000000e+00 : f32
    %252 = vector.broadcast %cst_67 : f32 to vector<1x1xf32>
    %253 = arith.addf %251, %252 : vector<1x1xf32>
    %cst_68 = arith.constant 5.000000e-01 : f32
    %254 = vector.broadcast %cst_68 : f32 to vector<1x1xf32>
    %255 = arith.mulf %254, %253 : vector<1x1xf32>
    %cst_69 = arith.constant 5.000000e+00 : f32
    %256 = vector.broadcast %cst_69 : f32 to vector<1x1xf32>
    %257 = arith.mulf %256, %223 : vector<1x1xf32>
    %258 = math.tanh %257 : vector<1x1xf32>
    %cst_70 = arith.constant 1.000000e+00 : f32
    %259 = vector.broadcast %cst_70 : f32 to vector<1x1xf32>
    %260 = arith.addf %258, %259 : vector<1x1xf32>
    %cst_71 = arith.constant 5.000000e-01 : f32
    %261 = vector.broadcast %cst_71 : f32 to vector<1x1xf32>
    %262 = arith.mulf %261, %260 : vector<1x1xf32>
    %263 = vector.extract_strided_slice %248 {offsets = [0, 2], sizes = [1, 1], strides = [1, 1]} : vector<1x5xf32> to vector<1x1xf32>
    %264 = arith.mulf %255, %263 : vector<1x1xf32>
    %265 = vector.extract_strided_slice %248 {offsets = [0, 3], sizes = [1, 1], strides = [1, 1]} : vector<1x5xf32> to vector<1x1xf32>
    %266 = vector.broadcast %27 : f32 to vector<1x1xf32>
    %267 = arith.mulf %265, %266 : vector<1x1xf32>
    %cst_72 = arith.constant 0.000000e+00 : f32
    %268 = vector.broadcast %cst_72 : f32 to vector<1x1xf32>
    %269 = arith.maximumf %267, %268 : vector<1x1xf32>
    %270 = arith.subf %269, %264 : vector<1x1xf32>
    %271 = vector.extract_strided_slice %248 {offsets = [0, 4], sizes = [1, 1], strides = [1, 1]} : vector<1x5xf32> to vector<1x1xf32>
    %cst_73 = arith.constant 0.000000e+00 : f32
    %272 = vector.broadcast %cst_73 : f32 to vector<1x1xf32>
    %273 = arith.maximumf %271, %272 : vector<1x1xf32>
    %274 = arith.addf %273, %264 : vector<1x1xf32>
    %275 = vector.extract_strided_slice %242 {offsets = [0, 0], sizes = [1, 1], strides = [1, 1]} : vector<1x5xf32> to vector<1x1xf32>
    %276 = vector.broadcast %26 : f32 to vector<1x1xf32>
    %277 = arith.mulf %276, %275 : vector<1x1xf32>
    %278 = vector.extract_strided_slice %242 {offsets = [0, 1], sizes = [1, 1], strides = [1, 1]} : vector<1x5xf32> to vector<1x1xf32>
    %279 = arith.addf %277, %278 : vector<1x1xf32>
    %280 = arith.mulf %262, %279 : vector<1x1xf32>
    %281 = arith.subf %274, %280 : vector<1x1xf32>
    %cst_74 = arith.constant 0.166666672 : f32
    %282 = arith.mulf %15, %cst_74 : f32
    %cst_75 = arith.constant 2.000000e+00 : f32
    %283 = vector.broadcast %cst_75 : f32 to vector<1x1xf32>
    %284 = arith.mulf %283, %140 : vector<1x1xf32>
    %285 = arith.addf %74, %284 : vector<1x1xf32>
    %cst_76 = arith.constant 2.000000e+00 : f32
    %286 = vector.broadcast %cst_76 : f32 to vector<1x1xf32>
    %287 = arith.mulf %286, %206 : vector<1x1xf32>
    %288 = arith.addf %285, %287 : vector<1x1xf32>
    %289 = arith.addf %288, %270 : vector<1x1xf32>
    %290 = vector.broadcast %282 : f32 to vector<1x1xf32>
    %291 = arith.mulf %290, %289 : vector<1x1xf32>
    %292 = arith.addf %14#0, %291 : vector<1x1xf32>
    %cst_77 = arith.constant 2.000000e+00 : f32
    %293 = vector.broadcast %cst_77 : f32 to vector<1x1xf32>
    %294 = arith.mulf %293, %151 : vector<1x1xf32>
    %295 = arith.addf %85, %294 : vector<1x1xf32>
    %cst_78 = arith.constant 2.000000e+00 : f32
    %296 = vector.broadcast %cst_78 : f32 to vector<1x1xf32>
    %297 = arith.mulf %296, %217 : vector<1x1xf32>
    %298 = arith.addf %295, %297 : vector<1x1xf32>
    %299 = arith.addf %298, %281 : vector<1x1xf32>
    %300 = vector.broadcast %282 : f32 to vector<1x1xf32>
    %301 = arith.mulf %300, %299 : vector<1x1xf32>
    %302 = arith.addf %14#1, %301 : vector<1x1xf32>
    %c7 = arith.constant 7 : index
    %c0_79 = arith.constant 0 : index
    %303 = vector.load %arg12[%c7, %c0_79] : memref<8x1xf32, #tpu.memory_space<vmem>>, vector<1x1xf32>
    tpu.vector_store %arg12[%c7, %c0_79], %292 {strides = array<i32>} : memref<8x1xf32, #tpu.memory_space<vmem>>, vector<1x1xf32>,
    %c7_80 = arith.constant 7 : index
    %c0_81 = arith.constant 0 : index
    %304 = vector.load %arg13[%c7_80, %c0_81] : memref<8x1xf32, #tpu.memory_space<vmem>>, vector<1x1xf32>
    tpu.vector_store %arg13[%c7_80, %c0_81], %302 {strides = array<i32>} : memref<8x1xf32, #tpu.memory_space<vmem>>, vector<1x1xf32>,
    %c0_82 = arith.constant 0 : index
    %c0_83 = arith.constant 0 : index
    %305 = vector.load %arg12[%c0_82, %c0_83] : memref<8x1xf32, #tpu.memory_space<vmem>>, vector<8x1xf32>
    %c0_84 = arith.constant 0 : index
    %c0_85 = arith.constant 0 : index
    %306 = vector.load %arg13[%c0_84, %c0_85] : memref<8x1xf32, #tpu.memory_space<vmem>>, vector<8x1xf32>
    %c0_86 = arith.constant 0 : index
    %c0_87 = arith.constant 0 : index
    %307 = vector.load %arg2[%c0_86, %c0_87] : memref<8x2xf32, #tpu.memory_space<vmem>>, vector<8x2xf32>
    %308 = vector.broadcast %305 : vector<8x1xf32> to vector<8x32xf32>
    %309 = vector.broadcast %0 : vector<1x32xf32> to vector<8x32xf32>
    %310 = arith.mulf %308, %309 : vector<8x32xf32>
    %311 = vector.broadcast %306 : vector<8x1xf32> to vector<8x32xf32>
    %312 = vector.broadcast %1 : vector<1x32xf32> to vector<8x32xf32>
    %313 = arith.mulf %311, %312 : vector<8x32xf32>
    %314 = arith.addf %310, %313 : vector<8x32xf32>
    %315 = vector.extract_strided_slice %307 {offsets = [0, 0], sizes = [8, 1], strides = [1, 1]} : vector<8x2xf32> to vector<8x1xf32>
    %316 = vector.broadcast %315 : vector<8x1xf32> to vector<8x32xf32>
    %317 = vector.broadcast %2 : vector<1x32xf32> to vector<8x32xf32>
    %318 = arith.mulf %316, %317 : vector<8x32xf32>
    %319 = arith.addf %314, %318 : vector<8x32xf32>
    %320 = vector.extract_strided_slice %307 {offsets = [0, 1], sizes = [8, 1], strides = [1, 1]} : vector<8x2xf32> to vector<8x1xf32>
    %321 = vector.broadcast %320 : vector<8x1xf32> to vector<8x32xf32>
    %322 = vector.broadcast %3 : vector<1x32xf32> to vector<8x32xf32>
    %323 = arith.mulf %321, %322 : vector<8x32xf32>
    %324 = arith.addf %319, %323 : vector<8x32xf32>
    %325 = vector.broadcast %4 : vector<1x32xf32> to vector<8x32xf32>
    %326 = arith.addf %324, %325 : vector<8x32xf32>
    %327 = math.tanh %326 : vector<8x32xf32>
    %cst_88 = arith.constant dense<0.000000e+00> : vector<8x32xf32>
    %328 = tpu.matmul %327, %5, %cst_88 {dimension_numbers = #tpu.dot_dimension_numbers<[1], [0], [0], [1], [0, 0, 1, 1], [], []>} : vector<8x32xf32>, vector<32x32xf32>, vector<8x32xf32> -> vector<8x32xf32>
    %329 = vector.broadcast %6 : vector<1x32xf32> to vector<8x32xf32>
    %330 = arith.addf %328, %329 : vector<8x32xf32>
    %331 = math.tanh %330 : vector<8x32xf32>
    %cst_89 = arith.constant dense<0.000000e+00> : vector<8x5xf32>
    %332 = tpu.matmul %331, %7, %cst_89 {dimension_numbers = #tpu.dot_dimension_numbers<[1], [0], [0], [1], [0, 0, 1, 1], [], []>} : vector<8x32xf32>, vector<32x5xf32>, vector<8x5xf32> -> vector<8x5xf32>
    %333 = vector.broadcast %8 : vector<1x5xf32> to vector<8x5xf32>
    %334 = arith.addf %332, %333 : vector<8x5xf32>
    %335 = vector.extract_strided_slice %334 {offsets = [0, 1], sizes = [8, 1], strides = [1, 1]} : vector<8x5xf32> to vector<8x1xf32>
    %336 = math.exp %335 : vector<8x1xf32>
    %c0_90 = arith.constant 0 : index
    %c0_91 = arith.constant 0 : index
    %337 = vector.load %arg11[%c0_90, %c0_91] : memref<8x1xf32, #tpu.memory_space<vmem>>, vector<8x1xf32>
    tpu.vector_store %arg11[%c0_90, %c0_91], %336 {strides = array<i32>} : memref<8x1xf32, #tpu.memory_space<vmem>>, vector<8x1xf32>,
    return
  }
}

</mosaic_0001>

<bundles_post_ra>
// kernel: tpu_custom_call.1
= control target key start
LH: loop header
LB: loop body
LE: loop exit
PB: predicated region body
PF: predicated region fallthrough
CT: control target
= control target key end

     0   :  { %s2948_s0 = inlined_call_operand.<no memory space> [shape: f32[1,1], index: 0, kind: input, shape index: {}]   ;;  %s2949_s2 = inlined_call_operand.vmem [shape: f32[8,2], index: 2, kind: input, shape index: {}]   ;;  %s2950_s3 = inlined_call_operand.vmem [shape: f32[84], index: 3, kind: input, shape index: {}]   ;;  %s2951_s4 = inlined_call_operand.vmem [shape: f32[7], index: 4, kind: input, shape index: {}]   ;;  %s2952_s5 = inlined_call_operand.vmem [shape: f32[4,32], index: 5, kind: input, shape index: {}]   ;;  %s2953_s6 = inlined_call_operand.vmem [shape: f32[1,32], index: 6, kind: input, shape index: {}]   ;;  %s2954_s7 = inlined_call_operand.vmem [shape: f32[32,32], index: 7, kind: input, shape index: {}]   ;;  %s2955_s8 = inlined_call_operand.vmem [shape: f32[1,32], index: 8, kind: input, shape index: {}]   ;;  %s2956_s9 = inlined_call_operand.vmem [shape: f32[32,5], index: 9, kind: input, shape index: {}]   ;;  %s2957_s10 = inlined_call_operand.vmem [shape: f32[1,5], index: 10, kind: input, shape index: {}]   ;;  %s2958_s11 = inlined_call_operand.vmem [shape: f32[8,1], index: 11, kind: output, shape index: {}]   ;;  %s2959_s1 = inlined_call_operand.<no memory space> [shape: f32[1,1], index: 1, kind: input, shape index: {}]  }
   0x1   :  { %v16_v0 = vstv %s2948_s0  ;;  %v18_v1 = vstv %s2959_s1 }
   0x2   :  { %17 = vst [vmem:[#allocation4] sm:$0x1] %v16_v0 }
   0x3   :  { %19 = vst [vmem:[#allocation5] sm:$0x1] %v18_v1 }
   0x4   :  { %20 = vsyncpa [#allocation7], 0  ;;  %s33_s23 = sshll.u32 %s2950_s3, 4  ;;  %s34_s23 = int_to_ptr.vmem [resolvable:$true] %s33_s23 }
   0x5   :  { %21 = vsyncpa [#allocation9], 0  ;;  %s42_s26 = sshll.u32 %s2951_s4, 4  ;;  %s2185_s27 = smov [#allocation6]   ;;  %s43_s26 = int_to_ptr.vmem [resolvable:$true] %s42_s26 }
   0x6   :  { %36 = dma.vmem_to_smem %s34_s23, 16, %s2185_s27, [#allocation7]  }
   0x7   :  { %s2186_s0 = smov [#allocation8]  }
   0x8   :  { %45 = dma.vmem_to_smem %s43_s26, 16, %s2186_s0, [#allocation9]  }
   0x9   :  { %2169 = dma.done.wait [#allocation7], 16  }
   0xa   :  { %2170 = vsyncadd [#allocation7], 4294967280 }
   0xb   :  { %2171 = dma.done.wait [#allocation9], 16  }
   0xc   :  { %2172 = vsyncadd [#allocation9], 4294967280 }
   0xd   :  { %66 = sfence }
   0xe   :  { %v2277_v2 = vld [vmem:[%s2952_s5] sm:$0x1]  ;;  %v2282_v3 = vld [vmem:[%s2952_s5 + $0x1] sm:$0x1]  ;;  %v2287_v4 = vld [vmem:[%s2952_s5 + $0x2] sm:$0x1] }
   0xf   :  { %v2292_v5 = vld [vmem:[%s2952_s5 + $0x3] sm:$0x1]  ;;  %v2297_v6 = vld [vmem:[%s2953_s6] sm:$0x1]  ;;  %v2307_v8 = vld [vmem:[%s2954_s7 + $0x8] sm:$0xff]  ;;  %vm84_vm0 = vcmask 0  }
  0x10   :  { %v2302_v7 = vld [vmem:[%s2954_s7] sm:$0xff]  ;;  %v2312_v9 = vld [vmem:[%s2954_s7 + $0x10] sm:$0xff]  ;;  %v2317_v10 = vld [vmem:[%s2954_s7 + $0x18] sm:$0xff]  ;;  %s2355_s29 = smov 0  }
  0x11   :  { %v2322_v11 = vld [vmem:[%s2955_s8] sm:$0x1]  ;;  %v2332_v13 = vld [vmem:[%s2956_s9 + $0x8] sm:$0xff]  ;;  %v2337_v14 = vld [vmem:[%s2956_s9 + $0x10] sm:$0xff] }
  0x12   :  { %v2327_v12 = vld [vmem:[%s2956_s9] sm:$0xff]  ;;  %v2342_v15 = vld [vmem:[%s2956_s9 + $0x18] sm:$0xff]  ;;  %v82_v17 = vld [vmem:[#allocation4] sm:$0x1]  }
  0x13   :  { %v2347_v16 = vld [vmem:[%s2957_s10] sm:$0x1]  ;;  %v83_v18 = vld [vmem:[#allocation5] sm:$0x1]   ;;  %85 = vst.msk [vmem:[#allocation2] sm:$0x1] %vm84_vm0, %v82_v17 }
  0x14   :  { %86 = vst.msk [vmem:[#allocation3] sm:$0x1] %vm84_vm0, %v83_v18 }
  0x15 LB: > { %160 = vmatpush.msra.mxu0 %v2317_v10  ;;  %184 = vmatpush.msra.mxu1 %v2342_v15  ;;  %v2187_v19 = vmov 0   ;;  %s2401_s9 = smul.u32 24, %s2183_s29  ;;  %vm144_vm1 = vcmask 261120   ;;  %s2188_s12 = smov 126   ;;  %v199_v47 = vmul.f32 5.0, %v2179_v17  ;;  %v203_v49 = vmul.f32 5.0, %v2175_v18  ;;  %s2183_s29 = sphi %s2355_s29, %s92_s29   ;;  %v2179_v17 = vphi %v82_v17, %v2963_v17   ;;  %v2175_v18 = vphi %v83_v18, %v2962_v18  }
  0x16   : > { %1977 = vset.pattern.permute.xlu0 %v2187_v19  ;;  %1978 = vset.pattern.permute.xlu1 %v2187_v19  ;;  %s2189_s13 = smov 127   ;;  %s2190_s16 = smov 4  }
  0x17   : > { %123 = vperm.xlu0 %1977, %v2179_v17   ;;  %161 = vmatpush.msra.mxu0 %v2312_v9  ;;  %s99_s10 = sadd.s32 1, %s2401_s9  ;;  %s98_s4 = sld [smem:[#allocation6 + %s2401_s9]] }
  0x18   : > { %185 = vmatpush.msra.mxu1 %v2337_v14  ;;  %292 = vmatpush.msra.mxu2 %v2317_v10  ;;  %s100_s30 = sld [smem:[#allocation6 + %s99_s10]]  ;;  %s101_s14 = sadd.s32 2, %s2401_s9 }
  0x19   : > { %162 = vmatpush.msra.mxu0 %v2307_v8  ;;  %316 = vmatpush.msra.mxu3 %v2342_v15  ;;  %s102_s15 = sld [smem:[#allocation6 + %s101_s14]]  ;;  %s2191_s17 = smov 3  }
  0x1a   : > { %186 = vmatpush.msra.mxu1 %v2332_v13  ;;  %293 = vmatpush.msra.mxu2 %v2312_v9  ;;  %s103_s18 = sadd.s32 3, %s2401_s9  ;;  %s2432_s20 = sshll.u32 %s2183_s29, 1 }
  0x1b   : > { %163 = vmatpush.msra.mxu0 %v2302_v7  ;;  %317 = vmatpush.msra.mxu3 %v2337_v14  ;;  %s104_s19 = sld [smem:[#allocation6 + %s103_s18]]  ;;  %s2192_s22 = smov 125  }
  0x1c   : > { %187 = vmatpush.msra.mxu1 %v2327_v12  ;;  %294 = vmatpush.msra.mxu2 %v2307_v8  ;;  %s2435_s21 = sld [smem:[#allocation8 + %s2432_s20]]  ;;  %s2193_s6 = smov 124  }
  0x1d   : > { %318 = vmatpush.msra.mxu3 %v2332_v13  ;;  %418 = vmatpush.msrb.mxu0 %v2317_v10  ;;  %v136_v22 = vstv %s98_s4  ;;  %s105_s23 = sadd.s32 4, %s2401_s9  ;;  %s107_s24 = sadd.s32 5, %s2401_s9 }
  0x1e   : > { %295 = vmatpush.msra.mxu2 %v2302_v7  ;;  %442 = vmatpush.msrb.mxu1 %v2342_v15  ;;  %v139_v25 = vstv %s100_s30  ;;  %v137_v27 = vmul.f32 %v136_v22, %v2287_v4  ;;  %s106_s25 = sld [smem:[#allocation6 + %s105_s23]]  ;;  %s109_s27 = sadd.s32 6, %s2401_s9 }
  0x1f   : > { %130 = vperm.xlu0 %1977, %v2175_v18   ;;  %319 = vmatpush.msra.mxu3 %v2327_v12  ;;  %v140_v29 = vmul.f32 %v139_v25, %v2292_v5  ;;  %v226_v57 = vstv %s102_s15  ;;  %s108_s26 = sld [smem:[#allocation6 + %s107_s24]]  ;;  %s111_s1 = sadd.s32 7, %s2401_s9 }
  0x20   : > { %419 = vmatpush.msrb.mxu0 %v2312_v9  ;;  %443 = vmatpush.msrb.mxu1 %v2337_v14  ;;  %s2482_s0 = sld [smem:[#allocation6 + %s109_s27]]  ;;  %s113_s28 = sadd.s32 8, %s2401_s9 }
  0x21   : > { %547 = vmatpush.msrb.mxu2 %v2317_v10  ;;  %571 = vmatpush.msrb.mxu3 %v2342_v15  ;;  %v212_v1 = vstv %s104_s19  ;;  %s2489_s7 = sld [smem:[#allocation6 + %s111_s1]]  ;;  %s115_s8 = sadd.s32 9, %s2401_s9 }
  0x22   : > { %420 = vmatpush.msrb.mxu0 %v2307_v8  ;;  %444 = vmatpush.msrb.mxu1 %v2332_v13  ;;  %s240_s5 = smul.f32 0.5, %s2435_s21  ;;  %s114_s3 = sld [smem:[#allocation6 + %s113_s28]] }
  0x23   : > { %548 = vmatpush.msrb.mxu2 %v2312_v9  ;;  %572 = vmatpush.msrb.mxu3 %v2337_v14  ;;  %s116_s10 = sld [smem:[#allocation6 + %s115_s8]]  ;;  %s117_s4 = sadd.s32 10, %s2401_s9 }
  0x24   : > { %421 = vmatpush.msrb.mxu0 %v2302_v7  ;;  %445 = vmatpush.msrb.mxu1 %v2327_v12  ;;  %s118_s30 = sld [smem:[#allocation6 + %s117_s4]]  ;;  %s119_s14 = sadd.s32 11, %s2401_s9 }
  0x25   : > { %549 = vmatpush.msrb.mxu2 %v2307_v8  ;;  %573 = vmatpush.msrb.mxu3 %v2332_v13  ;;  %s120_s15 = sld [smem:[#allocation6 + %s119_s14]]  ;;  %s627_s18 = smul.f32 0.16666667, %s2435_s21 }
  0x26   : > { %s1866_s9 = scalar_lea.vmem [#allocation2], %s2432_s20  ;;  %s1869_s19 = scalar_lea.vmem [#allocation3], %s2432_s20 }
  0x27   : > { %550 = vmatpush.msrb.mxu2 %v2302_v7  ;;  %574 = vmatpush.msrb.mxu3 %v2327_v12  ;;  %s92_s29 = sadd.s32 1, %s2183_s29  }
  0x28   : > { %p89_p0 = scmp.ge.s32.totalorder %s92_s29, 3  }
  0x29   :  { %s1914_s29 = sld [smem:[#allocation6 + $0x48]] (%p89_p0)  ;;  %vm1857_vm2 = vcmask (%p89_p0), 7168  }
  0x89   : > { %v124_v20 = vpop.permute.xlu0 %123 }
  0x8a   : > { %v126_v21 = vperm.slane %v124_v20, 0 }
  0x8c   : > { %v127_v26 = vmul.f32 %v126_v21, %v2277_v2  ;;  %v2438_v21 = vstv %s240_s5 }
  0x91   : > { %v131_v23 = vpop.permute.xlu0 %130 }
  0x92   : > { %v133_v24 = vperm.slane %v131_v23, 0 }
  0x94   : > { %v134_v28 = vmul.f32 %v133_v24, %v2282_v3 }
  0x96   : > { %v135_v30 = vadd.f32 %v134_v28, %v127_v26 }
  0x98   : > { %v138_v31 = vadd.f32 %v137_v27, %v135_v30 }
  0x9a   : > { %v141_v32 = vadd.f32 %v140_v29, %v138_v31 }
  0x9c   : > { %v142_v33 = vadd.f32 %v141_v32, %v2297_v6 }
  0x9e   : > { %1979 = vtanh.f32 %v142_v33 }
  0xa4   : > { %v1980_v34 = vpop.eup %1979 }
  0xa5   : > { %1889 = vmatmul.msk.f32.vlgmr.msra.gmra.mxu0 %vm144_vm1, %v1980_v34 }
  0xa6   : > { %719 = vmatpush.msra.mxu0 %v2317_v10 }
  0xa8   : > { %720 = vmatpush.msra.mxu0 %v2312_v9 }
  0xaa   : > { %721 = vmatpush.msra.mxu0 %v2307_v8 }
  0xac   : > { %722 = vmatpush.msra.mxu0 %v2302_v7 }
 0x122   : > { %v165_v35 = vpop.f32.mrf.mxu0 }
 0x123   : > { %v166_v36 = vadd.f32 %v165_v35, %v2322_v11 }
 0x125   : > { %1981 = vtanh.f32 %v166_v36  ;;  %v269_v36 = vstv %s106_s25 }
 0x12b   : > { %v1982_v37 = vpop.eup %1981 }
 0x12c   : > { %1890 = vmatmul.msk.f32.vlgmr.msra.gmra.mxu1 %vm144_vm1, %v1982_v37 }
 0x12d   : > { %743 = vmatpush.msra.mxu1 %v2342_v15 }
 0x12f   : > { %744 = vmatpush.msra.mxu1 %v2337_v14 }
 0x131   : > { %745 = vmatpush.msra.mxu1 %v2332_v13 }
 0x133   : > { %746 = vmatpush.msra.mxu1 %v2327_v12 }
 0x1a9   : > { %v189_v38 = vpop.f32.mrf.mxu1 }
 0x1aa   : > { %v190_v39 = vadd.f32 %v189_v38, %v2347_v16 }
 0x1ac   : > { %v192_v40 = vmul.f32 1.442695, %v190_v39  ;;  %v194_v41 = vsub.f32 0.0, %v190_v39  ;;  %v272_v39 = vstv %s108_s26 }
 0x1ae   : > { %v195_v42 = vmul.f32 1.442695, %v194_v41  ;;  %1983 = vpow2.f32 %v192_v40  ;;  %v2456_v41 = vmul.f32 %v269_v36, %v2287_v4 }
 0x1b0   : > { %1985 = vpow2.f32 %v195_v42 }
 0x1b1   : > { %1987 = vtanh.f32 %v199_v47 }
 0x1b2   : > { %1989 = vtanh.f32 %v203_v49 }
 0x1b4   : > { %v1984_v43 = vpop.eup %1983 }
 0x1b5   : > { %v227_v58 = vmul.f32 %v1984_v43, %v226_v57 }
 0x1b6   : > { %v1986_v44 = vpop.eup %1985 }
 0x1b7   : > { %v197_v45 = vsub.f32 %v1984_v43, %v1986_v44  ;;  %v1988_v48 = vpop.eup %1987 }
 0x1b8   : > { %v201_v50 = vadd.f32 1.0, %v1988_v48  ;;  %v1990_v52 = vpop.eup %1989 }
 0x1b9   : > { %v198_v46 = vmul.f32 0.5, %v197_v45  ;;  %v205_v56 = vadd.f32 1.0, %v1990_v52 }
 0x1ba   : > { %v202_v51 = vmul.f32 0.5, %v201_v50 }
 0x1bb   : > { %208 = vrot.lane.b32.xlu1 %v198_v46, %s2188_s12  ;;  %v206_v59 = vmul.f32 0.5, %v205_v56  ;;  %v213_v19 = vmul.f32 %v212_v1, %v198_v46  ;;  %v221_v25 = vmax.f32 %v198_v46, 0.0 }
 0x1bd   : > { %v214_v20 = vmax.f32 %v213_v19, 0.0 }
 0x1c3   : > { %229 = vrot.lane.b32.xlu1 %v1984_v43, %s2189_s13  ;;  %v2460_v43 = vmul.f32 %v272_v39, %v2292_v5 }
 0x22d   : > { %v209_v53 = vpop.permute.xlu1 %208 }
 0x22e   : > { %v211_v54 = vmul.f32 %v209_v53, %v202_v51 }
 0x230   : > { %v216_v55 = vperm.slane %v211_v54, 0 }
 0x232   : > { %222 = vrot.lane.b32.xlu2 %v216_v55, %s2190_s16 }
 0x235   : > { %v230_v60 = vpop.permute.xlu1 %229 }
 0x236   : > { %v232_v61 = vadd.f32 %v230_v60, %v227_v58 }
 0x238   : > { %v233_v62 = vmul.f32 %v232_v61, %v206_v59 }
 0x23a   : > { %v235_v63 = vperm.slane %v233_v62, 0  ;;  %217 = vrot.lane.b32.xlu2 %v216_v55, %s2191_s17 }
 0x23c   : > { %236 = vrot.lane.b32.xlu0 %v235_v63, %s2190_s16 }
 0x28c   : > { %v223_v0 = vpop.permute.xlu2 %222 }
 0x28d   : > { %v225_v26 = vadd.f32 %v223_v0, %v221_v25  ;;  %v358_v25 = vstv %s2482_s0 }
 0x294   : > { %v218_v22 = vpop.permute.xlu2 %217 }
 0x295   : > { %v2440_v23 = vsub.f32 %v214_v20, %v218_v22 }
 0x297   : > { %v242_v24 = vmul.f32 %v2438_v21, %v2440_v23 }
 0x299   : > { %244 = vrot.lane.b32.xlu1 %v242_v24, %s2192_s22 }
 0x2ae   : > { %v237_v27 = vpop.permute.xlu0 %236 }
 0x2af   : > { %v2445_v28 = vsub.f32 %v225_v26, %v237_v27 }
 0x2b1   : > { %v248_v29 = vmul.f32 %v2438_v21, %v2445_v28 }
 0x2b3   : > { %250 = vrot.lane.b32.xlu2 %v248_v29, %s2193_s6 }
 0x30b   : > { %v245_v30 = vpop.permute.xlu1 %244 }
 0x30c   : > { %v247_v31 = vadd.f32 %v2179_v17, %v245_v30 }
 0x30d   : > { %v251_v32 = vpop.permute.xlu2 %250 }
 0x30e   : > { %v253_v33 = vadd.f32 %v2175_v18, %v251_v32  ;;  %256 = vperm.xlu0 %1977, %v247_v31   ;;  %v331_v61 = vmul.f32 5.0, %v247_v31 }
 0x310   : > { %263 = vperm.xlu1 %1978, %v253_v33   ;;  %v335_v20 = vmul.f32 5.0, %v253_v33 }
 0x380   : > { %v257_v34 = vpop.permute.xlu0 %256 }
 0x381   : > { %v259_v35 = vperm.slane %v257_v34, 0  ;;  %v344_v34 = vstv %s2489_s7 }
 0x382   : > { %v264_v37 = vpop.permute.xlu1 %263 }
 0x383   : > { %v266_v38 = vperm.slane %v264_v37, 0  ;;  %v260_v40 = vmul.f32 %v259_v35, %v2277_v2 }
 0x385   : > { %v267_v42 = vmul.f32 %v266_v38, %v2282_v3 }
 0x387   : > { %v268_v44 = vadd.f32 %v267_v42, %v260_v40 }
 0x389   : > { %v271_v45 = vadd.f32 %v2456_v41, %v268_v44 }
 0x38b   : > { %v274_v46 = vadd.f32 %v2460_v43, %v271_v45 }
 0x38d   : > { %v275_v47 = vadd.f32 %v274_v46, %v2297_v6 }
 0x38f   : > { %1991 = vtanh.f32 %v275_v47 }
 0x395   : > { %v1992_v48 = vpop.eup %1991 }
 0x396   : > { %1891 = vmatmul.msk.f32.vlgmr.msra.gmra.mxu2 %vm144_vm1, %v1992_v48 }
 0x397   : > { %851 = vmatpush.msra.mxu2 %v2317_v10 }
 0x399   : > { %852 = vmatpush.msra.mxu2 %v2312_v9 }
 0x39b   : > { %853 = vmatpush.msra.mxu2 %v2307_v8 }
 0x39d   : > { %854 = vmatpush.msra.mxu2 %v2302_v7 }
 0x419   : > { %v297_v49 = vpop.f32.mrf.mxu2 }
 0x41a   : > { %v298_v50 = vadd.f32 %v297_v49, %v2322_v11 }
 0x41c   : > { %1993 = vtanh.f32 %v298_v50 }
 0x422   : > { %v1994_v51 = vpop.eup %1993 }
 0x423   : > { %1892 = vmatmul.msk.f32.vlgmr.msra.gmra.mxu3 %vm144_vm1, %v1994_v51 }
 0x424   : > { %875 = vmatpush.msra.mxu3 %v2342_v15 }
 0x426   : > { %876 = vmatpush.msra.mxu3 %v2337_v14 }
 0x428   : > { %877 = vmatpush.msra.mxu3 %v2332_v13 }
 0x42a   : > { %878 = vmatpush.msra.mxu3 %v2327_v12 }
 0x4a6   : > { %v321_v52 = vpop.f32.mrf.mxu3 }
 0x4a7   : > { %v322_v53 = vadd.f32 %v321_v52, %v2347_v16 }
 0x4a9   : > { %v324_v54 = vmul.f32 1.442695, %v322_v53  ;;  %v326_v55 = vsub.f32 0.0, %v322_v53 }
 0x4ab   : > { %1995 = vpow2.f32 %v324_v54  ;;  %v327_v56 = vmul.f32 1.442695, %v326_v55 }
 0x4ad   : > { %1997 = vpow2.f32 %v327_v56 }
 0x4ae   : > { %1999 = vtanh.f32 %v331_v61 }
 0x4af   : > { %2001 = vtanh.f32 %v335_v20 }
 0x4b1   : > { %v1996_v57 = vpop.eup %1995 }
 0x4b2   : > { %361 = vrot.lane.b32.xlu0 %v1996_v57, %s2189_s13  ;;  %v359_v27 = vmul.f32 %v1996_v57, %v358_v25 }
 0x4b3   : > { %v1998_v58 = vpop.eup %1997 }
 0x4b4   : > { %v329_v59 = vsub.f32 %v1996_v57, %v1998_v58  ;;  %v2000_v62 = vpop.eup %1999 }
 0x4b5   : > { %v333_v63 = vadd.f32 1.0, %v2000_v62  ;;  %v2002_v24 = vpop.eup %2001 }
 0x4b6   : > { %v330_v60 = vmul.f32 0.5, %v329_v59  ;;  %v337_v26 = vadd.f32 1.0, %v2002_v24 }
 0x4b7   : > { %v334_v0 = vmul.f32 0.5, %v333_v63 }
 0x4b8   : > { %340 = vrot.lane.b32.xlu2 %v330_v60, %s2188_s12  ;;  %v338_v30 = vmul.f32 0.5, %v337_v26  ;;  %v345_v35 = vmul.f32 %v344_v34, %v330_v60  ;;  %v353_v42 = vmax.f32 %v330_v60, 0.0 }
 0x4ba   : > { %v346_v36 = vmax.f32 %v345_v35, 0.0 }
 0x512   : > { %v341_v1 = vpop.permute.xlu2 %340 }
 0x513   : > { %v343_v19 = vmul.f32 %v341_v1, %v334_v0 }
 0x515   : > { %v348_v22 = vperm.slane %v343_v19, 0 }
 0x517   : > { %349 = vrot.lane.b32.xlu2 %v348_v22, %s2191_s17  ;;  %354 = vrot.lane.b32.xlu1 %v348_v22, %s2190_s16 }
 0x524   : > { %v362_v29 = vpop.permute.xlu0 %361 }
 0x525   : > { %v364_v31 = vadd.f32 %v362_v29, %v359_v27 }
 0x527   : > { %v365_v32 = vmul.f32 %v364_v31, %v338_v30 }
 0x529   : > { %v367_v33 = vperm.slane %v365_v32, 0 }
 0x52b   : > { %368 = vrot.lane.b32.xlu0 %v367_v33, %s2190_s16 }
 0x571   : > { %v350_v37 = vpop.permute.xlu2 %349 }
 0x572   : > { %v2494_v38 = vsub.f32 %v346_v36, %v350_v37 }
 0x574   : > { %v372_v39 = vmul.f32 %v2494_v38, %v2438_v21 }
 0x576   : > { %374 = vrot.lane.b32.xlu1 %v372_v39, %s2192_s22 }
 0x589   : > { %v355_v40 = vpop.permute.xlu1 %354 }
 0x58a   : > { %v357_v44 = vadd.f32 %v355_v40, %v353_v42 }
 0x59d   : > { %v369_v45 = vpop.permute.xlu0 %368 }
 0x59e   : > { %v2499_v46 = vsub.f32 %v357_v44, %v369_v45 }
 0x5a0   : > { %v378_v47 = vmul.f32 %v2499_v46, %v2438_v21 }
 0x5a2   : > { %380 = vrot.lane.b32.xlu2 %v378_v47, %s2193_s6 }
 0x5e8   : > { %v375_v48 = vpop.permute.xlu1 %374 }
 0x5e9   : > { %v377_v49 = vadd.f32 %v2179_v17, %v375_v48 }
 0x5eb   : > { %386 = vperm.xlu0 %1977, %v377_v49   ;;  %v457_v29 = vmul.f32 5.0, %v377_v49 }
 0x5fc   : > { %v381_v50 = vpop.permute.xlu2 %380 }
 0x5fd   : > { %v383_v51 = vadd.f32 %v2175_v18, %v381_v50 }
 0x5ff   : > { %393 = vperm.xlu1 %1978, %v383_v51   ;;  %v461_v36 = vmul.f32 5.0, %v383_v51  ;;  %v628_v51 = vmul.f32 2.0, %v2494_v38 }
 0x65d   : > { %v387_v52 = vpop.permute.xlu0 %386 }
 0x65e   : > { %v389_v53 = vperm.slane %v387_v52, 0 }
 0x660   : > { %v390_v56 = vmul.f32 %v389_v53, %v2277_v2  ;;  %v496_v53 = vstv %s2435_s21  ;;  %s651_s21 = sadd.s32 1, %s2432_s20  ;;  %s2195_s20 = smov (%p89_p0), 126  }
 0x661   : > { %s2597_s5 = smul.u32 12, %s651_s21  ;;  %s2621_s7 = sld [smem:[#allocation8 + %s651_s21]] }
 0x663   : > { %s659_s23 = sadd.s32 1, %s2597_s5  ;;  %s658_s24 = sld [smem:[#allocation6 + %s2597_s5]] }
 0x664   : > { %s660_s25 = sld [smem:[#allocation6 + %s659_s23]]  ;;  %s661_s26 = sadd.s32 2, %s2597_s5 }
 0x665   : > { %s662_s27 = sld [smem:[#allocation6 + %s661_s26]]  ;;  %s663_s0 = sadd.s32 3, %s2597_s5 }
 0x666   : > { %s664_s1 = sld [smem:[#allocation6 + %s663_s0]]  ;;  %s665_s8 = sadd.s32 4, %s2597_s5 }
 0x667   : > { %s799_s28 = smul.f32 0.5, %s2621_s7  ;;  %s673_s21 = sadd.s32 8, %s2597_s5 }
 0x668   : > { %s675_s23 = sadd.s32 9, %s2597_s5  ;;  %s677_s26 = sadd.s32 10, %s2597_s5 }
 0x669   :  { %s2819_s0 = sld [smem:[#allocation8 + $0x6]] (%p89_p0) }
 0x671   : > { %v394_v54 = vpop.permute.xlu1 %393 }
 0x672   : > { %v396_v55 = vperm.slane %v394_v54, 0 }
 0x674   : > { %v397_v57 = vmul.f32 %v396_v55, %v2282_v3 }
 0x676   : > { %v398_v58 = vadd.f32 %v397_v57, %v390_v56  ;;  %v629_v56 = vadd.f32 %v628_v51, %v2440_v23 }
 0x678   : > { %v399_v21 = vadd.f32 %v398_v58, %v2456_v41 }
 0x67a   : > { %v400_v59 = vadd.f32 %v399_v21, %v2460_v43 }
 0x67c   : > { %v401_v60 = vadd.f32 %v400_v59, %v2297_v6 }
 0x67e   : > { %2003 = vtanh.f32 %v401_v60  ;;  %v640_v60 = vmul.f32 2.0, %v2499_v46 }
 0x684   : > { %v2004_v61 = vpop.eup %2003 }
 0x685   : > { %1893 = vmatmul.msk.f32.vlgmr.msrb.gmra.mxu0 %vm144_vm1, %v2004_v61 }
 0x686   : > { %977 = vmatpush.msrb.mxu0 %v2317_v10 }
 0x688   : > { %978 = vmatpush.msrb.mxu0 %v2312_v9 }
 0x68a   : > { %979 = vmatpush.msrb.mxu0 %v2307_v8 }
 0x68c   : > { %980 = vmatpush.msrb.mxu0 %v2302_v7 }
 0x702   : > { %v423_v62 = vpop.f32.mrf.mxu0 }
 0x703   : > { %v424_v63 = vadd.f32 %v423_v62, %v2322_v11  ;;  %v641_v62 = vadd.f32 %v640_v60, %v2445_v28 }
 0x705   : > { %2005 = vtanh.f32 %v424_v63 }
 0x70b   : > { %v2006_v41 = vpop.eup %2005 }
 0x70c   : > { %1894 = vmatmul.msk.f32.vlgmr.msrb.gmra.mxu1 %vm144_vm1, %v2006_v41 }
 0x70d   : > { %1001 = vmatpush.msrb.mxu1 %v2342_v15 }
 0x70f   : > { %1002 = vmatpush.msrb.mxu1 %v2337_v14 }
 0x711   : > { %1003 = vmatpush.msrb.mxu1 %v2332_v13 }
 0x713   : > { %1004 = vmatpush.msrb.mxu1 %v2327_v12 }
 0x789   : > { %v447_v43 = vpop.f32.mrf.mxu1 }
 0x78a   : > { %v448_v0 = vadd.f32 %v447_v43, %v2347_v16 }
 0x78c   : > { %v450_v1 = vmul.f32 1.442695, %v448_v0  ;;  %v452_v19 = vsub.f32 0.0, %v448_v0 }
 0x78e   : > { %2007 = vpow2.f32 %v450_v1  ;;  %v453_v20 = vmul.f32 1.442695, %v452_v19 }
 0x790   : > { %2009 = vpow2.f32 %v453_v20  ;;  %v524_v20 = vstv %s114_s3  ;;  %s667_s3 = sadd.s32 5, %s2597_s5 }
 0x791   : > { %2011 = vtanh.f32 %v457_v29  ;;  %v525_v29 = vmul.f32 %v524_v20, %v2287_v4  ;;  %s668_s4 = sld [smem:[#allocation6 + %s667_s3]] }
 0x792   : > { %2013 = vtanh.f32 %v461_v36  ;;  %s1919_s3 = sld [smem:[#allocation6 + $0x4d]] (%p89_p0) }
 0x794   : > { %v2008_v22 = vpop.eup %2007 }
 0x795   : > { %485 = vrot.lane.b32.xlu0 %v2008_v22, %s2189_s13  ;;  %v483_v42 = vmul.f32 %v2008_v22, %v358_v25 }
 0x796   : > { %v2010_v24 = vpop.eup %2009 }
 0x797   : > { %v455_v26 = vsub.f32 %v2008_v22, %v2010_v24  ;;  %v2012_v30 = vpop.eup %2011 }
 0x798   : > { %v459_v31 = vadd.f32 1.0, %v2012_v30  ;;  %v2014_v39 = vpop.eup %2013 }
 0x799   : > { %v456_v27 = vmul.f32 0.5, %v455_v26  ;;  %v463_v40 = vadd.f32 1.0, %v2014_v39  ;;  %v527_v26 = vstv %s116_s10  ;;  %s666_s10 = sld [smem:[#allocation6 + %s665_s8]] }
 0x79a   : > { %v460_v32 = vmul.f32 0.5, %v459_v31  ;;  %v528_v31 = vmul.f32 %v527_v26, %v2292_v5  ;;  %s1918_s8 = sld [smem:[#allocation6 + $0x4c]] (%p89_p0) }
 0x79b   : > { %466 = vrot.lane.b32.xlu2 %v456_v27, %s2188_s12  ;;  %v464_v45 = vmul.f32 0.5, %v463_v40  ;;  %v470_v50 = vmul.f32 %v456_v27, %v344_v34  ;;  %v478_v59 = vmax.f32 %v456_v27, 0.0 }
 0x79d   : > { %v471_v52 = vmax.f32 %v470_v50, 0.0 }
 0x7f5   : > { %v467_v33 = vpop.permute.xlu2 %466 }
 0x7f6   : > { %v469_v35 = vmul.f32 %v467_v33, %v460_v32 }
 0x7f8   : > { %v473_v37 = vperm.slane %v469_v35, 0 }
 0x7fa   : > { %474 = vrot.lane.b32.xlu2 %v473_v37, %s2191_s17  ;;  %479 = vrot.lane.b32.xlu1 %v473_v37, %s2190_s16 }
 0x807   : > { %v486_v44 = vpop.permute.xlu0 %485 }
 0x808   : > { %v488_v47 = vadd.f32 %v486_v44, %v483_v42 }
 0x80a   : > { %v489_v48 = vmul.f32 %v488_v47, %v464_v45 }
 0x80c   : > { %v491_v49 = vperm.slane %v489_v48, 0 }
 0x80e   : > { %492 = vrot.lane.b32.xlu0 %v491_v49, %s2190_s16 }
 0x854   : > { %v475_v54 = vpop.permute.xlu2 %474 }
 0x855   : > { %v477_v55 = vsub.f32 %v471_v52, %v475_v54 }
 0x857   : > { %v497_v57 = vmul.f32 %v496_v53, %v477_v55  ;;  %v630_v58 = vmul.f32 2.0, %v477_v55 }
 0x859   : > { %499 = vrot.lane.b32.xlu1 %v497_v57, %s2192_s22  ;;  %v2536_v25 = vadd.f32 %v630_v58, %v629_v56 }
 0x86c   : > { %v480_v21 = vpop.permute.xlu1 %479 }
 0x86d   : > { %v482_v34 = vadd.f32 %v480_v21, %v478_v59 }
 0x880   : > { %v493_v38 = vpop.permute.xlu0 %492 }
 0x881   : > { %v495_v61 = vsub.f32 %v482_v34, %v493_v38  ;;  %v613_v38 = vstv %s118_s30  ;;  %s669_s30 = sadd.s32 6, %s2597_s5 }
 0x882   : > { %s2660_s14 = sld [smem:[#allocation6 + %s669_s30]] }
 0x883   : > { %v503_v63 = vmul.f32 %v496_v53, %v495_v61  ;;  %v642_v41 = vmul.f32 2.0, %v495_v61  ;;  %s1922_s30 = sld [smem:[#allocation6 + $0x50]] (%p89_p0) }
 0x885   : > { %505 = vrot.lane.b32.xlu2 %v503_v63, %s2193_s6  ;;  %v2541_v23 = vadd.f32 %v642_v41, %v641_v62 }
 0x8cb   : > { %v500_v43 = vpop.permute.xlu1 %499 }
 0x8cc   : > { %v502_v0 = vadd.f32 %v2179_v17, %v500_v43 }
 0x8ce   : > { %511 = vperm.xlu0 %1977, %v502_v0   ;;  %v586_v54 = vmul.f32 5.0, %v502_v0 }
 0x8df   : > { %v506_v1 = vpop.permute.xlu2 %505 }
 0x8e0   : > { %v508_v19 = vadd.f32 %v2175_v18, %v506_v1 }
 0x8e2   : > { %518 = vperm.xlu1 %1978, %v508_v19   ;;  %v590_v59 = vmul.f32 5.0, %v508_v19  ;;  %v599_v19 = vstv %s120_s15  ;;  %s671_s15 = sadd.s32 7, %s2597_s5 }
 0x940   : > { %v512_v46 = vpop.permute.xlu0 %511 }
 0x941   : > { %v514_v28 = vperm.slane %v512_v46, 0 }
 0x943   : > { %v515_v27 = vmul.f32 %v514_v28, %v2277_v2 }
 0x954   : > { %v519_v22 = vpop.permute.xlu1 %518 }
 0x955   : > { %v521_v24 = vperm.slane %v519_v22, 0 }
 0x957   : > { %v522_v30 = vmul.f32 %v521_v24, %v2282_v3  ;;  %v633_v24 = vstv %s627_s18  ;;  %s2667_s18 = sld [smem:[#allocation6 + %s671_s15]] }
 0x958   :  { %s1924_s15 = sld [smem:[#allocation6 + $0x52]] (%p89_p0) }
 0x959   : > { %v523_v32 = vadd.f32 %v522_v30, %v515_v27 }
 0x95b   : > { %v526_v33 = vadd.f32 %v525_v29, %v523_v32 }
 0x95d   : > { %v529_v35 = vadd.f32 %v528_v31, %v526_v33 }
 0x95f   : > { %v530_v36 = vadd.f32 %v529_v35, %v2297_v6 }
 0x961   : > { %2015 = vtanh.f32 %v530_v36 }
 0x967   : > { %v2016_v37 = vpop.eup %2015 }
 0x968   : > { %1895 = vmatmul.msk.f32.vlgmr.msrb.gmra.mxu2 %vm144_vm1, %v2016_v37 }
 0x969   : > { %1106 = vmatpush.msrb.mxu2 %v2317_v10 }
 0x96b   : > { %1107 = vmatpush.msrb.mxu2 %v2312_v9 }
 0x96d   : > { %1108 = vmatpush.msrb.mxu2 %v2307_v8 }
 0x96f   : > { %1109 = vmatpush.msrb.mxu2 %v2302_v7 }
 0x9eb   : > { %v552_v39 = vpop.f32.mrf.mxu2 }
 0x9ec   : > { %v553_v40 = vadd.f32 %v552_v39, %v2322_v11 }
 0x9ee   : > { %2017 = vtanh.f32 %v553_v40 }
 0x9f4   : > { %v2018_v42 = vpop.eup %2017 }
 0x9f5   : > { %1896 = vmatmul.msk.f32.vlgmr.msrb.gmra.mxu3 %vm144_vm1, %v2018_v42 }
 0x9f6   : > { %1130 = vmatpush.msrb.mxu3 %v2342_v15 }
 0x9f8   : > { %1131 = vmatpush.msrb.mxu3 %v2337_v14 }
 0x9fa   : > { %1132 = vmatpush.msrb.mxu3 %v2332_v13 }
 0x9fc   : > { %1133 = vmatpush.msrb.mxu3 %v2327_v12 }
 0xa78   : > { %v576_v44 = vpop.f32.mrf.mxu3 }
 0xa79   : > { %v577_v45 = vadd.f32 %v576_v44, %v2347_v16 }
 0xa7b   : > { %v579_v47 = vmul.f32 1.442695, %v577_v45  ;;  %v581_v48 = vsub.f32 0.0, %v577_v45  ;;  %v699_v45 = vstv %s660_s25  ;;  %s676_s25 = sld [smem:[#allocation6 + %s675_s23]] }
 0xa7d   : > { %2019 = vpow2.f32 %v579_v47  ;;  %v582_v49 = vmul.f32 1.442695, %v581_v48 }
 0xa7f   : > { %2021 = vpow2.f32 %v582_v49 }
 0xa80   : > { %2023 = vtanh.f32 %v586_v54 }
 0xa81   : > { %2025 = vtanh.f32 %v590_v59 }
 0xa83   : > { %v2020_v50 = vpop.eup %2019 }
 0xa84   : > { %616 = vrot.lane.b32.xlu0 %v2020_v50, %s2189_s13  ;;  %v614_v62 = vmul.f32 %v2020_v50, %v613_v38 }
 0xa85   : > { %v2022_v51 = vpop.eup %2021 }
 0xa86   : > { %v584_v52 = vsub.f32 %v2020_v50, %v2022_v51  ;;  %v2024_v55 = vpop.eup %2023  ;;  %v700_v50 = vmul.f32 %v699_v45, %v2292_v5 }
 0xa87   : > { %v588_v56 = vadd.f32 1.0, %v2024_v55  ;;  %v2026_v34 = vpop.eup %2025 }
 0xa88   : > { %v585_v53 = vmul.f32 0.5, %v584_v52  ;;  %v592_v61 = vadd.f32 1.0, %v2026_v34 }
 0xa89   : > { %v589_v57 = vmul.f32 0.5, %v588_v56 }
 0xa8a   : > { %595 = vrot.lane.b32.xlu2 %v585_v53, %s2188_s12  ;;  %v593_v41 = vmul.f32 0.5, %v592_v61  ;;  %v600_v46 = vmul.f32 %v599_v19, %v585_v53  ;;  %v608_v30 = vmax.f32 %v585_v53, 0.0 }
 0xa8c   : > { %v601_v28 = vmax.f32 %v600_v46, 0.0 }
 0xae4   : > { %v596_v58 = vpop.permute.xlu2 %595 }
 0xae5   : > { %v598_v21 = vmul.f32 %v596_v58, %v589_v57 }
 0xae7   : > { %v603_v60 = vperm.slane %v598_v21, 0 }
 0xae9   : > { %604 = vrot.lane.b32.xlu2 %v603_v60, %s2191_s17  ;;  %609 = vrot.lane.b32.xlu1 %v603_v60, %s2190_s16 }
 0xaf6   : > { %v617_v63 = vpop.permute.xlu0 %616 }
 0xaf7   : > { %v619_v43 = vadd.f32 %v617_v63, %v614_v62 }
 0xaf9   : > { %v620_v0 = vmul.f32 %v619_v43, %v593_v41 }
 0xafb   : > { %v622_v1 = vperm.slane %v620_v0, 0 }
 0xafd   : > { %623 = vrot.lane.b32.xlu0 %v622_v1, %s2190_s16 }
 0xb43   : > { %v605_v20 = vpop.permute.xlu2 %604 }
 0xb44   : > { %v607_v22 = vsub.f32 %v601_v28, %v605_v20 }
 0xb46   : > { %v632_v26 = vadd.f32 %v2536_v25, %v607_v22 }
 0xb48   : > { %v634_v27 = vmul.f32 %v633_v24, %v632_v26  ;;  %v785_v26 = vstv %s662_s27 }
 0xb4a   : > { %636 = vrot.lane.b32.xlu1 %v634_v27, %s2192_s22 }
 0xb5b   : > { %v610_v29 = vpop.permute.xlu1 %609 }
 0xb5c   : > { %v612_v31 = vadd.f32 %v610_v29, %v608_v30 }
 0xb6f   : > { %v624_v32 = vpop.permute.xlu0 %623 }
 0xb70   : > { %v626_v33 = vsub.f32 %v612_v31, %v624_v32 }
 0xb72   : > { %v644_v35 = vadd.f32 %v2541_v23, %v626_v33 }
 0xb74   : > { %v645_v36 = vmul.f32 %v644_v35, %v633_v24 }
 0xb76   : > { %647 = vrot.lane.b32.xlu2 %v645_v36, %s2193_s6  ;;  %v771_v36 = vstv %s664_s1  ;;  %s1347_s1 = smul.f32 (%p89_p0), 0.5, %s2819_s0 }
 0xbbc   : > { %v637_v37 = vpop.permute.xlu1 %636 }
 0xbbd   : > { %v2577_v25 = vadd.f32 %v2179_v17, %v637_v37 }
 0xbbf   : > { %683 = vperm.xlu0 %1977, %v2577_v25   ;;  %1898 = vst.msk [vmem:[%s1866_s9 + $0x1] sm:$0x1] %vm84_vm0, %v2577_v25  ;;  %v758_v43 = vmul.f32 5.0, %v2577_v25 }
 0xbd0   : > { %v648_v39 = vpop.permute.xlu2 %647 }
 0xbd1   : > { %v2586_v40 = vadd.f32 %v2175_v18, %v648_v39  ;;  %v696_v18 = vstv %s658_s24  ;;  %s674_s24 = sld [smem:[#allocation6 + %s673_s21]]  ;;  %s1734_s21 = smul.f32 (%p89_p0), 0.16666667, %s2819_s0 }
 0xbd2   : > { %v697_v48 = vmul.f32 %v696_v18, %v2287_v4 }
 0xbd3   : > { %690 = vperm.xlu1 %1978, %v2586_v40   ;;  %1900 = vst.msk [vmem:[%s1869_s19 + $0x1] sm:$0x1] %vm84_vm0, %v2586_v40  ;;  %v762_v20 = vmul.f32 5.0, %v2586_v40 }
 0xc31   : > { %v684_v17 = vpop.permute.xlu0 %683 }
 0xc32   : > { %v686_v23 = vperm.slane %v684_v17, 0  ;;  %v2624_v17 = vstv %s799_s28  ;;  %s2200_s28 = smov (%p89_p0), 124  }
 0xc34   : > { %v687_v47 = vmul.f32 %v686_v23, %v2277_v2 }
 0xc45   : > { %v691_v42 = vpop.permute.xlu1 %690 }
 0xc46   : > { %v693_v44 = vperm.slane %v691_v42, 0 }
 0xc48   : > { %v694_v49 = vmul.f32 %v693_v44, %v2282_v3 }
 0xc4a   : > { %v695_v51 = vadd.f32 %v694_v49, %v687_v47 }
 0xc4c   : > { %v698_v52 = vadd.f32 %v697_v48, %v695_v51 }
 0xc4e   : > { %v701_v53 = vadd.f32 %v700_v50, %v698_v52 }
 0xc50   : > { %v702_v54 = vadd.f32 %v701_v53, %v2297_v6 }
 0xc52   : > { %2027 = vtanh.f32 %v702_v54 }
 0xc58   : > { %v2028_v55 = vpop.eup %2027 }
 0xc59   : > { %1901 = vmatmul.msk.f32.vlgmr.msra.gmra.mxu0 %vm144_vm1, %v2028_v55 }
 0xc5a   :  { %1267 = vmatpush.msra.mxu0 (%p89_p0), %v2317_v10 }
 0xc5c   :  { %1268 = vmatpush.msra.mxu0 (%p89_p0), %v2312_v9 }
 0xc5e   :  { %1269 = vmatpush.msra.mxu0 (%p89_p0), %v2307_v8 }
 0xc60   :  { %1270 = vmatpush.msra.mxu0 (%p89_p0), %v2302_v7 }
 0xcd6   : > { %v724_v56 = vpop.f32.mrf.mxu0 }
 0xcd7   : > { %v725_v57 = vadd.f32 %v724_v56, %v2322_v11 }
 0xcd9   : > { %2029 = vtanh.f32 %v725_v57  ;;  %v828_v57 = vstv %s666_s10  ;;  %s2855_s10 = sld [smem:[#allocation6 + $0x4e]] (%p89_p0) }
 0xcdf   : > { %v2030_v58 = vpop.eup %2029 }
 0xce0   : > { %1902 = vmatmul.msk.f32.vlgmr.msra.gmra.mxu1 %vm144_vm1, %v2030_v58 }
 0xce1   :  { %1291 = vmatpush.msra.mxu1 (%p89_p0), %v2342_v15 }
 0xce3   :  { %1292 = vmatpush.msra.mxu1 (%p89_p0), %v2337_v14 }
 0xce5   :  { %1293 = vmatpush.msra.mxu1 (%p89_p0), %v2332_v13 }
 0xce7   :  { %1294 = vmatpush.msra.mxu1 (%p89_p0), %v2327_v12 }
 0xd5d   : > { %v748_v21 = vpop.f32.mrf.mxu1 }
 0xd5e   : > { %v749_v59 = vadd.f32 %v748_v21, %v2347_v16 }
 0xd60   : > { %v751_v60 = vmul.f32 1.442695, %v749_v59  ;;  %v753_v34 = vsub.f32 0.0, %v749_v59  ;;  %v831_v59 = vstv %s668_s4  ;;  %s2861_s4 = sld [smem:[#allocation6 + $0x4f]] (%p89_p0) }
 0xd62   : > { %2031 = vpow2.f32 %v751_v60  ;;  %v754_v38 = vmul.f32 1.442695, %v753_v34  ;;  %v2642_v34 = vmul.f32 %v828_v57, %v2287_v4 }
 0xd64   : > { %2033 = vpow2.f32 %v754_v38 }
 0xd65   : > { %2035 = vtanh.f32 %v758_v43 }
 0xd66   : > { %2037 = vtanh.f32 %v762_v20 }
 0xd68   : > { %v2032_v61 = vpop.eup %2031 }
 0xd69   : > { %788 = vrot.lane.b32.xlu0 %v2032_v61, %s2189_s13  ;;  %v786_v29 = vmul.f32 %v2032_v61, %v785_v26 }
 0xd6a   : > { %v2034_v62 = vpop.eup %2033 }
 0xd6b   : > { %v756_v63 = vsub.f32 %v2032_v61, %v2034_v62  ;;  %v2036_v0 = vpop.eup %2035  ;;  %v2646_v61 = vmul.f32 %v831_v59, %v2292_v5 }
 0xd6c   : > { %v760_v1 = vadd.f32 1.0, %v2036_v0  ;;  %v2038_v24 = vpop.eup %2037 }
 0xd6d   : > { %v757_v41 = vmul.f32 0.5, %v756_v63  ;;  %v764_v27 = vadd.f32 1.0, %v2038_v24 }
 0xd6e   : > { %v761_v19 = vmul.f32 0.5, %v760_v1 }
 0xd6f   : > { %767 = vrot.lane.b32.xlu2 %v757_v41, %s2188_s12  ;;  %v765_v31 = vmul.f32 0.5, %v764_v27  ;;  %v772_v37 = vmul.f32 %v771_v36, %v757_v41  ;;  %v780_v45 = vmax.f32 %v757_v41, 0.0 }
 0xd71   : > { %v773_v39 = vmax.f32 %v772_v37, 0.0 }
 0xdc9   : > { %v768_v46 = vpop.permute.xlu2 %767 }
 0xdca   : > { %v770_v28 = vmul.f32 %v768_v46, %v761_v19 }
 0xdcc   : > { %v775_v22 = vperm.slane %v770_v28, 0 }
 0xdce   : > { %776 = vrot.lane.b32.xlu2 %v775_v22, %s2191_s17  ;;  %781 = vrot.lane.b32.xlu1 %v775_v22, %s2190_s16 }
 0xddb   : > { %v789_v30 = vpop.permute.xlu0 %788 }
 0xddc   : > { %v791_v32 = vadd.f32 %v789_v30, %v786_v29 }
 0xdde   : > { %v792_v33 = vmul.f32 %v791_v32, %v765_v31 }
 0xde0   : > { %v794_v35 = vperm.slane %v792_v33, 0 }
 0xde2   : > { %795 = vrot.lane.b32.xlu0 %v794_v35, %s2190_s16 }
 0xe28   : > { %v777_v23 = vpop.permute.xlu2 %776 }
 0xe29   : > { %v2626_v18 = vsub.f32 %v773_v39, %v777_v23 }
 0xe2b   : > { %v801_v42 = vmul.f32 %v2624_v17, %v2626_v18 }
 0xe2d   : > { %803 = vrot.lane.b32.xlu1 %v801_v42, %s2192_s22 }
 0xe40   : > { %v782_v44 = vpop.permute.xlu1 %781 }
 0xe41   : > { %v784_v47 = vadd.f32 %v782_v44, %v780_v45  ;;  %v917_v45 = vstv %s2660_s14  ;;  %s1923_s14 = sld [smem:[#allocation6 + $0x51]] (%p89_p0) }
 0xe54   : > { %v796_v48 = vpop.permute.xlu0 %795 }
 0xe55   : > { %v2631_v49 = vsub.f32 %v784_v47, %v796_v48 }
 0xe57   : > { %v807_v50 = vmul.f32 %v2624_v17, %v2631_v49 }
 0xe59   : > { %809 = vrot.lane.b32.xlu2 %v807_v50, %s2193_s6 }
 0xe9f   : > { %v804_v51 = vpop.permute.xlu1 %803 }
 0xea0   : > { %v806_v52 = vadd.f32 %v804_v51, %v2577_v25 }
 0xea2   : > { %815 = vperm.xlu0 %1977, %v806_v52   ;;  %v890_v32 = vmul.f32 5.0, %v806_v52 }
 0xeb3   : > { %v810_v53 = vpop.permute.xlu2 %809 }
 0xeb4   : > { %v812_v54 = vadd.f32 %v810_v53, %v2586_v40 }
 0xeb6   : > { %822 = vperm.xlu1 %1978, %v812_v54   ;;  %v894_v23 = vmul.f32 5.0, %v812_v54 }
 0xf14   : > { %v816_v55 = vpop.permute.xlu0 %815 }
 0xf15   : > { %v818_v56 = vperm.slane %v816_v55, 0  ;;  %v903_v55 = vstv %s2667_s18  ;;  %s1925_s18 = sld [smem:[#allocation6 + $0x53]] (%p89_p0) }
 0xf17   : > { %v819_v60 = vmul.f32 %v818_v56, %v2277_v2 }
 0xf28   : > { %v823_v58 = vpop.permute.xlu1 %822 }
 0xf29   : > { %v825_v21 = vperm.slane %v823_v58, 0 }
 0xf2b   : > { %v826_v38 = vmul.f32 %v825_v21, %v2282_v3 }
 0xf2d   : > { %v827_v62 = vadd.f32 %v826_v38, %v819_v60 }
 0xf2f   : > { %v830_v63 = vadd.f32 %v2642_v34, %v827_v62 }
 0xf31   : > { %v833_v41 = vadd.f32 %v2646_v61, %v830_v63 }
 0xf33   : > { %v834_v43 = vadd.f32 %v833_v41, %v2297_v6 }
 0xf35   : > { %2039 = vtanh.f32 %v834_v43 }
 0xf3b   : > { %v2040_v0 = vpop.eup %2039 }
 0xf3c   : > { %1903 = vmatmul.msk.f32.vlgmr.msra.gmra.mxu2 %vm144_vm1, %v2040_v0 }
 0xf3d   :  { %1399 = vmatpush.msra.mxu2 (%p89_p0), %v2317_v10 }
 0xf3f   :  { %1400 = vmatpush.msra.mxu2 (%p89_p0), %v2312_v9 }
 0xf41   :  { %1401 = vmatpush.msra.mxu2 (%p89_p0), %v2307_v8 }
 0xf43   :  { %1402 = vmatpush.msra.mxu2 (%p89_p0), %v2302_v7 }
 0xfbf   : > { %v856_v1 = vpop.f32.mrf.mxu2 }
 0xfc0   : > { %v857_v19 = vadd.f32 %v856_v1, %v2322_v11 }
 0xfc2   : > { %2041 = vtanh.f32 %v857_v19 }
 0xfc8   : > { %v2042_v46 = vpop.eup %2041 }
 0xfc9   : > { %1904 = vmatmul.msk.f32.vlgmr.msra.gmra.mxu3 %vm144_vm1, %v2042_v46 }
 0xfca   :  { %1423 = vmatpush.msra.mxu3 (%p89_p0), %v2342_v15 }
 0xfcc   :  { %1424 = vmatpush.msra.mxu3 (%p89_p0), %v2337_v14 }
 0xfce   :  { %1425 = vmatpush.msra.mxu3 (%p89_p0), %v2332_v13 }
 0xfd0   :  { %1426 = vmatpush.msra.mxu3 (%p89_p0), %v2327_v12 }
0x104c   : > { %v880_v28 = vpop.f32.mrf.mxu3 }
0x104d   : > { %v881_v20 = vadd.f32 %v880_v28, %v2347_v16 }
0x104f   : > { %v883_v22 = vmul.f32 1.442695, %v881_v20  ;;  %v885_v24 = vsub.f32 0.0, %v881_v20 }
0x1051   : > { %2043 = vpow2.f32 %v883_v22  ;;  %v886_v26 = vmul.f32 1.442695, %v885_v24 }
0x1053   : > { %2045 = vpow2.f32 %v886_v26 }
0x1054   : > { %2047 = vtanh.f32 %v890_v32 }
0x1055   : > { %2049 = vtanh.f32 %v894_v23 }
0x1057   : > { %v2044_v27 = vpop.eup %2043 }
0x1058   : > { %920 = vrot.lane.b32.xlu0 %v2044_v27, %s2189_s13  ;;  %v918_v48 = vmul.f32 %v2044_v27, %v917_v45 }
0x1059   : > { %v2046_v29 = vpop.eup %2045 }
0x105a   : > { %v888_v30 = vsub.f32 %v2044_v27, %v2046_v29  ;;  %v2048_v33 = vpop.eup %2047 }
0x105b   : > { %v892_v35 = vadd.f32 1.0, %v2048_v33  ;;  %v2050_v44 = vpop.eup %2049 }
0x105c   : > { %v889_v31 = vmul.f32 0.5, %v888_v30  ;;  %v896_v47 = vadd.f32 1.0, %v2050_v44 }
0x105d   : > { %v893_v36 = vmul.f32 0.5, %v892_v35 }
0x105e   : > { %899 = vrot.lane.b32.xlu2 %v889_v31, %s2188_s12  ;;  %v897_v51 = vmul.f32 0.5, %v896_v47  ;;  %v904_v56 = vmul.f32 %v903_v55, %v889_v31  ;;  %v912_v38 = vmax.f32 %v889_v31, 0.0 }
0x1060   : > { %v905_v57 = vmax.f32 %v904_v56, 0.0 }
0x10b8   : > { %v900_v37 = vpop.permute.xlu2 %899 }
0x10b9   : > { %v902_v39 = vmul.f32 %v900_v37, %v893_v36 }
0x10bb   : > { %v907_v42 = vperm.slane %v902_v39, 0 }
0x10bd   : > { %908 = vrot.lane.b32.xlu2 %v907_v42, %s2191_s17  ;;  %913 = vrot.lane.b32.xlu1 %v907_v42, %s2190_s16 }
0x10ca   : > { %v921_v50 = vpop.permute.xlu0 %920 }
0x10cb   : > { %v923_v52 = vadd.f32 %v921_v50, %v918_v48 }
0x10cd   : > { %v924_v53 = vmul.f32 %v923_v52, %v897_v51 }
0x10cf   : > { %v926_v54 = vperm.slane %v924_v53, 0 }
0x10d1   : > { %927 = vrot.lane.b32.xlu0 %v926_v54, %s2190_s16 }
0x1117   : > { %v909_v58 = vpop.permute.xlu2 %908 }
0x1118   : > { %v2672_v21 = vsub.f32 %v905_v57, %v909_v58 }
0x111a   : > { %v931_v59 = vmul.f32 %v2672_v21, %v2624_v17 }
0x111c   : > { %933 = vrot.lane.b32.xlu1 %v931_v59, %s2192_s22 }
0x112f   : > { %v914_v60 = vpop.permute.xlu1 %913 }
0x1130   : > { %v916_v62 = vadd.f32 %v914_v60, %v912_v38 }
0x1143   : > { %v928_v63 = vpop.permute.xlu0 %927 }
0x1144   : > { %v2677_v41 = vsub.f32 %v916_v62, %v928_v63 }
0x1146   : > { %v937_v43 = vmul.f32 %v2677_v41, %v2624_v17 }
0x1148   : > { %939 = vrot.lane.b32.xlu2 %v937_v43, %s2193_s6 }
0x118e   : > { %v934_v0 = vpop.permute.xlu1 %933 }
0x118f   : > { %v936_v1 = vadd.f32 %v934_v0, %v2577_v25 }
0x1191   : > { %945 = vperm.xlu0 %1977, %v936_v1   ;;  %v1016_v50 = vmul.f32 5.0, %v936_v1 }
0x11a2   : > { %v940_v19 = vpop.permute.xlu2 %939 }
0x11a3   : > { %v942_v46 = vadd.f32 %v940_v19, %v2586_v40 }
0x11a5   : > { %952 = vperm.xlu1 %1978, %v942_v46   ;;  %v1020_v57 = vmul.f32 5.0, %v942_v46  ;;  %v1187_v46 = vmul.f32 2.0, %v2672_v21 }
0x1203   : > { %v946_v28 = vpop.permute.xlu0 %945 }
0x1204   : > { %v948_v20 = vperm.slane %v946_v28, 0 }
0x1206   : > { %v949_v26 = vmul.f32 %v948_v20, %v2277_v2  ;;  %v1055_v20 = vstv %s2621_s7 }
0x1217   : > { %v953_v22 = vpop.permute.xlu1 %952 }
0x1218   : > { %v955_v24 = vperm.slane %v953_v22, 0 }
0x121a   : > { %v956_v27 = vmul.f32 %v955_v24, %v2282_v3 }
0x121c   : > { %v957_v29 = vadd.f32 %v956_v27, %v949_v26  ;;  %v1188_v26 = vadd.f32 %v1187_v46, %v2626_v18 }
0x121e   : > { %v958_v17 = vadd.f32 %v957_v29, %v2642_v34 }
0x1220   : > { %v959_v30 = vadd.f32 %v958_v17, %v2646_v61 }
0x1222   : > { %v960_v31 = vadd.f32 %v959_v30, %v2297_v6 }
0x1224   : > { %2051 = vtanh.f32 %v960_v31  ;;  %v1199_v31 = vmul.f32 2.0, %v2677_v41 }
0x122a   : > { %v2052_v32 = vpop.eup %2051 }
0x122b   : > { %1905 = vmatmul.msk.f32.vlgmr.msrb.gmra.mxu0 %vm144_vm1, %v2052_v32 }
0x122c   :  { %1525 = vmatpush.msrb.mxu0 (%p89_p0), %v2317_v10 }
0x122e   :  { %1526 = vmatpush.msrb.mxu0 (%p89_p0), %v2312_v9 }
0x1230   :  { %1527 = vmatpush.msrb.mxu0 (%p89_p0), %v2307_v8 }
0x1232   :  { %1528 = vmatpush.msrb.mxu0 (%p89_p0), %v2302_v7 }
0x12a8   : > { %v982_v33 = vpop.f32.mrf.mxu0 }
0x12a9   : > { %v983_v35 = vadd.f32 %v982_v33, %v2322_v11  ;;  %v1200_v33 = vadd.f32 %v1199_v31, %v2631_v49 }
0x12ab   : > { %2053 = vtanh.f32 %v983_v35 }
0x12b1   : > { %v2054_v36 = vpop.eup %2053 }
0x12b2   : > { %1906 = vmatmul.msk.f32.vlgmr.msrb.gmra.mxu1 %vm144_vm1, %v2054_v36 }
0x12b3   :  { %1549 = vmatpush.msrb.mxu1 (%p89_p0), %v2342_v15 }
0x12b5   :  { %1550 = vmatpush.msrb.mxu1 (%p89_p0), %v2337_v14 }
0x12b7   :  { %1551 = vmatpush.msrb.mxu1 (%p89_p0), %v2332_v13 }
0x12b9   :  { %1552 = vmatpush.msrb.mxu1 (%p89_p0), %v2327_v12 }
0x132f   : > { %v1006_v37 = vpop.f32.mrf.mxu1 }
0x1330   : > { %v1007_v39 = vadd.f32 %v1006_v37, %v2347_v16 }
0x1332   : > { %v1009_v23 = vmul.f32 1.442695, %v1007_v39  ;;  %v1011_v34 = vsub.f32 0.0, %v1007_v39 }
0x1334   : > { %2055 = vpow2.f32 %v1009_v23  ;;  %v1012_v61 = vmul.f32 1.442695, %v1011_v34 }
0x1336   : > { %2057 = vpow2.f32 %v1012_v61  ;;  %v1083_v61 = vstv %s674_s24 }
0x1337   : > { %2059 = vtanh.f32 %v1016_v50  ;;  %v1084_v50 = vmul.f32 %v1083_v61, %v2287_v4 }
0x1338   : > { %2061 = vtanh.f32 %v1020_v57 }
0x133a   : > { %v2056_v42 = vpop.eup %2055 }
0x133b   : > { %1044 = vrot.lane.b32.xlu0 %v2056_v42, %s2189_s13  ;;  %v1042_v38 = vmul.f32 %v2056_v42, %v917_v45 }
0x133c   : > { %v2058_v44 = vpop.eup %2057 }
0x133d   : > { %v1014_v47 = vsub.f32 %v2056_v42, %v2058_v44  ;;  %v2060_v51 = vpop.eup %2059 }
0x133e   : > { %v1018_v52 = vadd.f32 1.0, %v2060_v51  ;;  %v2062_v59 = vpop.eup %2061 }
0x133f   : > { %v1015_v48 = vmul.f32 0.5, %v1014_v47  ;;  %v1022_v60 = vadd.f32 1.0, %v2062_v59  ;;  %v1086_v47 = vstv %s676_s25 }
0x1340   : > { %v1019_v53 = vmul.f32 0.5, %v1018_v52  ;;  %v1087_v52 = vmul.f32 %v1086_v47, %v2292_v5 }
0x1341   : > { %1025 = vrot.lane.b32.xlu2 %v1015_v48, %s2188_s12  ;;  %v1023_v63 = vmul.f32 0.5, %v1022_v60  ;;  %v1029_v19 = vmul.f32 %v1015_v48, %v903_v55  ;;  %v1037_v30 = vmax.f32 %v1015_v48, 0.0 }
0x1343   : > { %v1030_v28 = vmax.f32 %v1029_v19, 0.0 }
0x139b   : > { %v1026_v54 = vpop.permute.xlu2 %1025 }
0x139c   : > { %v1028_v56 = vmul.f32 %v1026_v54, %v1019_v53 }
0x139e   : > { %v1032_v58 = vperm.slane %v1028_v56, 0 }
0x13a0   : > { %1033 = vrot.lane.b32.xlu2 %v1032_v58, %s2191_s17  ;;  %1038 = vrot.lane.b32.xlu1 %v1032_v58, %s2190_s16 }
0x13ad   : > { %v1045_v62 = vpop.permute.xlu0 %1044 }
0x13ae   : > { %v1047_v43 = vadd.f32 %v1045_v62, %v1042_v38 }
0x13b0   : > { %v1048_v0 = vmul.f32 %v1047_v43, %v1023_v63 }
0x13b2   : > { %v1050_v1 = vperm.slane %v1048_v0, 0 }
0x13b4   : > { %1051 = vrot.lane.b32.xlu0 %v1050_v1, %s2190_s16 }
0x13fa   : > { %v1034_v22 = vpop.permute.xlu2 %1033 }
0x13fb   : > { %v1036_v24 = vsub.f32 %v1030_v28, %v1034_v22 }
0x13fd   : > { %v1056_v27 = vmul.f32 %v1055_v20, %v1036_v24  ;;  %v1189_v29 = vmul.f32 2.0, %v1036_v24 }
0x13ff   : > { %1058 = vrot.lane.b32.xlu1 %v1056_v27, %s2192_s22  ;;  %v2706_v45 = vadd.f32 %v1189_v29, %v1188_v26 }
0x1412   : > { %v1039_v17 = vpop.permute.xlu1 %1038 }
0x1413   : > { %v1041_v55 = vadd.f32 %v1039_v17, %v1037_v30 }
0x1426   : > { %v1052_v21 = vpop.permute.xlu0 %1051 }
0x1427   : > { %v1054_v32 = vsub.f32 %v1041_v55, %v1052_v21 }
0x1429   : > { %v1062_v35 = vmul.f32 %v1055_v20, %v1054_v32  ;;  %v1201_v36 = vmul.f32 2.0, %v1054_v32 }
0x142b   : > { %1064 = vrot.lane.b32.xlu2 %v1062_v35, %s2193_s6  ;;  %v2711_v18 = vadd.f32 %v1201_v36, %v1200_v33 }
0x1471   : > { %v1059_v37 = vpop.permute.xlu1 %1058 }
0x1472   : > { %v1061_v39 = vadd.f32 %v1059_v37, %v2577_v25 }
0x1474   : > { %1070 = vperm.xlu0 %1977, %v1061_v39   ;;  %v1145_v22 = vmul.f32 5.0, %v1061_v39 }
0x1485   : > { %v1065_v23 = vpop.permute.xlu2 %1064 }
0x1486   : > { %v1067_v34 = vadd.f32 %v1065_v23, %v2586_v40 }
0x1488   : > { %1077 = vperm.xlu1 %1978, %v1067_v34   ;;  %v1149_v30 = vmul.f32 5.0, %v1067_v34 }
0x14e6   : > { %v1071_v41 = vpop.permute.xlu0 %1070 }
0x14e7   : > { %v1073_v49 = vperm.slane %v1071_v41, 0 }
0x14e9   : > { %v1074_v48 = vmul.f32 %v1073_v49, %v2277_v2 }
0x14fa   : > { %v1078_v42 = vpop.permute.xlu1 %1077 }
0x14fb   : > { %v1080_v44 = vperm.slane %v1078_v42, 0 }
0x14fd   : > { %v1081_v51 = vmul.f32 %v1080_v44, %v2282_v3 }
0x14ff   : > { %v1082_v53 = vadd.f32 %v1081_v51, %v1074_v48 }
0x1501   : > { %v1085_v54 = vadd.f32 %v1084_v50, %v1082_v53 }
0x1503   : > { %v1088_v56 = vadd.f32 %v1087_v52, %v1085_v54 }
0x1505   : > { %v1089_v57 = vadd.f32 %v1088_v56, %v2297_v6 }
0x1507   : > { %2063 = vtanh.f32 %v1089_v57 }
0x150d   : > { %v2064_v58 = vpop.eup %2063 }
0x150e   : > { %1907 = vmatmul.msk.f32.vlgmr.msrb.gmra.mxu2 %vm144_vm1, %v2064_v58 }
0x150f   :  { %1654 = vmatpush.msrb.mxu2 (%p89_p0), %v2317_v10 }
0x1511   :  { %1655 = vmatpush.msrb.mxu2 (%p89_p0), %v2312_v9 }
0x1513   :  { %1656 = vmatpush.msrb.mxu2 (%p89_p0), %v2307_v8 }
0x1515   :  { %1657 = vmatpush.msrb.mxu2 (%p89_p0), %v2302_v7 }
0x1591   : > { %v1111_v59 = vpop.f32.mrf.mxu2 }
0x1592   : > { %v1112_v60 = vadd.f32 %v1111_v59, %v2322_v11 }
0x1594   : > { %2065 = vtanh.f32 %v1112_v60 }
0x159a   : > { %v2066_v38 = vpop.eup %2065 }
0x159b   : > { %1908 = vmatmul.msk.f32.vlgmr.msrb.gmra.mxu3 %vm144_vm1, %v2066_v38 }
0x159c   :  { %1678 = vmatpush.msrb.mxu3 (%p89_p0), %v2342_v15 }
0x159e   :  { %1679 = vmatpush.msrb.mxu3 (%p89_p0), %v2337_v14 }
0x15a0   :  { %1680 = vmatpush.msrb.mxu3 (%p89_p0), %v2332_v13 }
0x15a2   :  { %1681 = vmatpush.msrb.mxu3 (%p89_p0), %v2327_v12 }
0x161e   : > { %v1135_v62 = vpop.f32.mrf.mxu3 }
0x161f   : > { %v1136_v63 = vadd.f32 %v1135_v62, %v2347_v16  ;;  %v1243_v62 = vstv (%p89_p0), %s1914_s29 }
0x1621   : > { %v1138_v43 = vmul.f32 1.442695, %v1136_v63  ;;  %v1140_v0 = vsub.f32 0.0, %v1136_v63 }
0x1623   : > { %2067 = vpow2.f32 %v1138_v43  ;;  %v1141_v1 = vmul.f32 1.442695, %v1140_v0 }
0x1625   : > { %2069 = vpow2.f32 %v1141_v1 }
0x1626   : > { %2071 = vtanh.f32 %v1145_v22 }
0x1627   : > { %2073 = vtanh.f32 %v1149_v30 }
0x1629   : > { %v2068_v19 = vpop.eup %2067 }
0x162a   : > { %1175 = vrot.lane.b32.xlu0 %v2068_v19, %s2189_s13  ;;  %s678_s13 = sld [smem:[#allocation6 + %s677_s26]] }
0x162b   : > { %v2070_v46 = vpop.eup %2069 }
0x162c   : > { %v1143_v28 = vsub.f32 %v2068_v19, %v2070_v46  ;;  %v2072_v24 = vpop.eup %2071 }
0x162d   : > { %v1147_v26 = vadd.f32 1.0, %v2072_v24  ;;  %v2074_v55 = vpop.eup %2073 }
0x162e   : > { %v1144_v20 = vmul.f32 0.5, %v1143_v28  ;;  %v1151_v32 = vadd.f32 1.0, %v2074_v55 }
0x162f   : > { %v1148_v27 = vmul.f32 0.5, %v1147_v26 }
0x1630   : > { %1154 = vrot.lane.b32.xlu2 %v1144_v20, %s2188_s12  ;;  %v1172_v21 = vstv %s678_s13  ;;  %v1152_v36 = vmul.f32 0.5, %v1151_v32  ;;  %s679_s12 = sadd.s32 11, %s2597_s5  ;;  %v1167_v51 = vmax.f32 %v1144_v20, 0.0  ;;  %s1917_s5 = sld [smem:[#allocation6 + $0x4b]] (%p89_p0) }
0x1631   : > { %v1173_v33 = vmul.f32 %v2068_v19, %v1172_v21  ;;  %s680_s27 = sld [smem:[#allocation6 + %s679_s12]]  ;;  %v1244_v19 = vmul.f32 (%p89_p0), %v1243_v62, %v2287_v4 }
0x1637   : > { %v1158_v34 = vstv %s680_s27 }
0x1638   : > { %v1159_v41 = vmul.f32 %v1158_v34, %v1144_v20 }
0x163a   : > { %v1160_v49 = vmax.f32 %v1159_v41, 0.0 }
0x168a   : > { %v1155_v29 = vpop.permute.xlu2 %1154 }
0x168b   : > { %v1157_v17 = vmul.f32 %v1155_v29, %v1148_v27 }
0x168d   : > { %v1162_v31 = vperm.slane %v1157_v17, 0 }
0x168f   : > { %1163 = vrot.lane.b32.xlu2 %v1162_v31, %s2191_s17  ;;  %1168 = vrot.lane.b32.xlu1 %v1162_v31, %s2190_s16  ;;  %s1186_s17 = smul.f32 0.16666667, %s2621_s7  ;;  %s2199_s7 = smov (%p89_p0), 125  }
0x1691   : > { %v1192_v44 = vstv %s1186_s17 }
0x169c   : > { %v1176_v35 = vpop.permute.xlu0 %1175 }
0x169d   : > { %v1178_v37 = vadd.f32 %v1176_v35, %v1173_v33 }
0x169f   : > { %v1179_v39 = vmul.f32 %v1178_v37, %v1152_v36 }
0x16a1   : > { %v1181_v23 = vperm.slane %v1179_v39, 0 }
0x16a3   : > { %1182 = vrot.lane.b32.xlu0 %v1181_v23, %s2190_s16  ;;  %s1915_s16 = sld [smem:[#allocation6 + $0x49]] (%p89_p0) }
0x16a9   :  { %v1246_v43 = vstv (%p89_p0), %s1915_s16 }
0x16aa   :  { %v1247_v28 = vmul.f32 (%p89_p0), %v1246_v43, %v2292_v5 }
0x16e9   : > { %v1164_v61 = vpop.permute.xlu2 %1163 }
0x16ea   : > { %v1166_v42 = vsub.f32 %v1160_v49, %v1164_v61 }
0x16ec   : > { %v1191_v47 = vadd.f32 %v2706_v45, %v1166_v42 }
0x16ee   : > { %v1193_v48 = vmul.f32 %v1192_v44, %v1191_v47 }
0x16f0   : > { %1195 = vrot.lane.b32.xlu1 %v1193_v48, %s2192_s22  ;;  %s2196_s22 = smov (%p89_p0), 127  }
0x1701   : > { %v1169_v50 = vpop.permute.xlu1 %1168 }
0x1702   : > { %v1171_v52 = vadd.f32 %v1169_v50, %v1167_v51  ;;  %v1319_v50 = vstv (%p89_p0), %s1917_s5 }
0x1715   : > { %v1183_v53 = vpop.permute.xlu0 %1182 }
0x1716   : > { %v1185_v54 = vsub.f32 %v1171_v52, %v1183_v53 }
0x1718   : > { %v1203_v56 = vadd.f32 %v2711_v18, %v1185_v54  ;;  %v2822_v54 = vstv (%p89_p0), %s1347_s1 }
0x171a   : > { %v1204_v57 = vmul.f32 %v1203_v56, %v1192_v44 }
0x171c   : > { %1206 = vrot.lane.b32.xlu2 %v1204_v57, %s2193_s6  ;;  %s1916_s6 = sld [smem:[#allocation6 + $0x4a]] (%p89_p0) }
0x1722   :  { %v1333_v34 = vstv (%p89_p0), %s1916_s6 }
0x1762   : > { %v1196_v58 = vpop.permute.xlu1 %1195 }
0x1763   : > { %v2739_v17 = vadd.f32 %v1196_v58, %v2577_v25   ;;  %v2194_v25 = vmov (%p89_p0), 0  }
0x1764   :  { %2075 = vset.pattern.permute.xlu0 (%p89_p0), %v2194_v25  ;;  %2076 = vset.pattern.permute.xlu1 (%p89_p0), %v2194_v25 }
0x1765   : > { %v2960_v59 = vmov %v2739_v17  ;;  %2077 = vset.pattern.permute.xlu2 (%p89_p0), %v2194_v25 }
0x1766   : > { %1910 = vst.msk [vmem:[%s1866_s9 + $0x2] sm:$0x1] %vm84_vm0, %v2960_v59  ;;  %v2963_v17 = vmov %v2960_v59  ;;  %1230 = vperm.xlu0 (%p89_p0), %2075, %v2960_v59   ;;  %s2197_s9 = smov (%p89_p0), 4  }
0x1776   : > { %v1207_v45 = vpop.permute.xlu2 %1206  ;;  %91 = sbr.rel (!%p89_p0) target bundleno = 21 (0x15), region = 83 }
0x1777   : > { %v2746_v18 = vadd.f32 %v1207_v45, %v2586_v40  }
0x1779   : > { %v2961_v60 = vmov %v2746_v18 }
0x177a   : > { %1912 = vst.msk [vmem:[%s1869_s19 + $0x2] sm:$0x1] %vm84_vm0, %v2961_v60  ;;  %v2962_v18 = vmov %v2961_v60  ;;  %1237 = vperm.xlu0 (%p89_p0), %2075, %v2961_v60   ;;  %s2198_s19 = smov (%p89_p0), 3  }
0x17d8   :  { %v1231_v40 = vpop.permute.xlu0 %1230 }
0x17d9   :  { %v1233_v18 = vperm.slane %v1231_v40, 0 }
0x17db   :  { %v1234_v0 = vmul.f32 %v1233_v18, %v2277_v2 }
0x17ec   :  { %v1238_v38 = vpop.permute.xlu0 %1237 }
0x17ed   :  { %v1240_v63 = vperm.slane %v1238_v38, 0 }
0x17ef   :  { %v1241_v1 = vmul.f32 %v1240_v63, %v2282_v3 }
0x17f1   :  { %v1242_v46 = vadd.f32 %v1241_v1, %v1234_v0 }
0x17f3   :  { %v1245_v20 = vadd.f32 %v1244_v19, %v1242_v46  ;;  %v1376_v19 = vstv %s1918_s8 }
0x17f5   :  { %v1248_v22 = vadd.f32 %v1247_v28, %v1245_v20  ;;  %v1379_v20 = vstv %s1919_s3 }
0x17f7   :  { %v1249_v24 = vadd.f32 %v1248_v22, %v2297_v6 }
0x17f9   :  { %2079 = vtanh.f32 %v1249_v24  ;;  %v2838_v24 = vmul.f32 %v1376_v19, %v2287_v4 }
0x17ff   :  { %v2080_v26 = vpop.eup %2079 }
0x1800   :  { %1926 = vmatmul.msk.f32.vlgmr.msra.gmra.mxu0 %vm144_vm1, %v2080_v26 }
0x1801   :  { %1816 = vmatpush.msra.mxu0 %v2317_v10 }
0x1803   :  { %1817 = vmatpush.msra.mxu0 %v2312_v9 }
0x1805   :  { %1818 = vmatpush.msra.mxu0 %v2307_v8 }
0x1807   :  { %1819 = vmatpush.msra.mxu0 %v2302_v7 }
0x187d   :  { %v1272_v27 = vpop.f32.mrf.mxu0 }
0x187e   :  { %v1273_v29 = vadd.f32 %v1272_v27, %v2322_v11  ;;  %v2842_v27 = vmul.f32 %v1379_v20, %v2292_v5 }
0x1880   :  { %2081 = vtanh.f32 %v1273_v29 }
0x1886   :  { %v2082_v17 = vpop.eup %2081 }
0x1887   :  { %1927 = vmatmul.msk.f32.vlgmr.msra.gmra.mxu1 %vm144_vm1, %v2082_v17 }
0x1888   :  { %1843 = vmatpush.msra.mxu1 %v2342_v15 }
0x188a   :  { %1844 = vmatpush.msra.mxu1 %v2337_v14  ;;  %v1310_v14 = vmul.f32 5.0, %v2961_v60 }
0x188c   :  { %1845 = vmatpush.msra.mxu1 %v2332_v13 }
0x188e   :  { %1846 = vmatpush.msra.mxu1 %v2327_v12  ;;  %v1306_v12 = vmul.f32 5.0, %v2960_v59 }
0x1904   :  { %v1296_v9 = vpop.f32.mrf.mxu1 }
0x1905   :  { %v1297_v8 = vadd.f32 %v1296_v9, %v2347_v16 }
0x1907   :  { %v1299_v10 = vmul.f32 1.442695, %v1297_v8  ;;  %v1301_v7 = vsub.f32 0.0, %v1297_v8 }
0x1909   :  { %v1302_v30 = vmul.f32 1.442695, %v1301_v7  ;;  %2083 = vpow2.f32 %v1299_v10 }
0x190b   :  { %2085 = vpow2.f32 %v1302_v30 }
0x190c   :  { %2087 = vtanh.f32 %v1306_v12 }
0x190d   :  { %2089 = vtanh.f32 %v1310_v14 }
0x190f   :  { %v2084_v31 = vpop.eup %2083 }
0x1910   :  { %v1334_v49 = vmul.f32 %v2084_v31, %v1333_v34 }
0x1911   :  { %v2086_v55 = vpop.eup %2085 }
0x1912   :  { %v1304_v21 = vsub.f32 %v2084_v31, %v2086_v55  ;;  %v2088_v13 = vpop.eup %2087 }
0x1913   :  { %v1308_v15 = vadd.f32 1.0, %v2088_v13  ;;  %v2090_v35 = vpop.eup %2089 }
0x1914   :  { %v1305_v32 = vmul.f32 0.5, %v1304_v21  ;;  %v1312_v23 = vadd.f32 1.0, %v2090_v35 }
0x1915   :  { %v1309_v33 = vmul.f32 0.5, %v1308_v15 }
0x1916   :  { %1315 = vrot.lane.b32.xlu1 %v1305_v32, %s2195_s20  ;;  %v1313_v41 = vmul.f32 0.5, %v1312_v23  ;;  %v1320_v51 = vmul.f32 %v1319_v50, %v1305_v32  ;;  %v1328_v58 = vmax.f32 %v1305_v32, 0.0 }
0x1918   :  { %v1321_v52 = vmax.f32 %v1320_v51, 0.0 }
0x191e   :  { %1336 = vrot.lane.b32.xlu1 %v2084_v31, %s2196_s22 }
0x1988   :  { %v1316_v36 = vpop.permute.xlu1 %1315 }
0x1989   :  { %v1318_v37 = vmul.f32 %v1316_v36, %v1309_v33 }
0x198b   :  { %v1323_v39 = vperm.slane %v1318_v37, 0 }
0x198d   :  { %1329 = vrot.lane.b32.xlu2 %v1323_v39, %s2197_s9 }
0x1990   :  { %v1337_v61 = vpop.permute.xlu1 %1336 }
0x1991   :  { %v1339_v42 = vadd.f32 %v1337_v61, %v1334_v49 }
0x1993   :  { %v1340_v44 = vmul.f32 %v1339_v42, %v1313_v41 }
0x1995   :  { %v1342_v47 = vperm.slane %v1340_v44, 0  ;;  %1324 = vrot.lane.b32.xlu2 %v1323_v39, %s2198_s19  ;;  %v1465_v44 = vstv %s2855_s10 }
0x1997   :  { %1343 = vrot.lane.b32.xlu0 %v1342_v47, %s2197_s9 }
0x19e7   :  { %v1330_v48 = vpop.permute.xlu2 %1329 }
0x19e8   :  { %v1332_v45 = vadd.f32 %v1330_v48, %v1328_v58  ;;  %v1451_v58 = vstv %s2861_s4 }
0x19ef   :  { %v1325_v53 = vpop.permute.xlu2 %1324 }
0x19f0   :  { %v2824_v56 = vsub.f32 %v1321_v52, %v1325_v53 }
0x19f2   :  { %v1349_v57 = vmul.f32 %v2822_v54, %v2824_v56 }
0x19f4   :  { %1351 = vrot.lane.b32.xlu1 %v1349_v57, %s2199_s7 }
0x1a09   :  { %v1344_v25 = vpop.permute.xlu0 %1343 }
0x1a0a   :  { %v2829_v40 = vsub.f32 %v1332_v45, %v1344_v25 }
0x1a0c   :  { %v1355_v18 = vmul.f32 %v2822_v54, %v2829_v40 }
0x1a0e   :  { %1357 = vrot.lane.b32.xlu2 %v1355_v18, %s2200_s28 }
0x1a66   :  { %v1352_v38 = vpop.permute.xlu1 %1351 }
0x1a67   :  { %v1354_v62 = vadd.f32 %v1352_v38, %v2960_v59 }
0x1a68   :  { %v1358_v63 = vpop.permute.xlu2 %1357 }
0x1a69   :  { %v1360_v43 = vadd.f32 %v1358_v63, %v2961_v60  ;;  %1363 = vperm.xlu0 %2075, %v1354_v62   ;;  %v1438_v36 = vmul.f32 5.0, %v1354_v62 }
0x1a6b   :  { %1370 = vperm.xlu1 %2076, %v1360_v43   ;;  %v1442_v49 = vmul.f32 5.0, %v1360_v43 }
0x1adb   :  { %v1364_v0 = vpop.permute.xlu0 %1363 }
0x1adc   :  { %v1366_v1 = vperm.slane %v1364_v0, 0 }
0x1add   :  { %v1371_v46 = vpop.permute.xlu1 %1370 }
0x1ade   :  { %v1373_v28 = vperm.slane %v1371_v46, 0  ;;  %v1367_v22 = vmul.f32 %v1366_v1, %v2277_v2 }
0x1ae0   :  { %v1374_v26 = vmul.f32 %v1373_v28, %v2282_v3 }
0x1ae2   :  { %v1375_v29 = vadd.f32 %v1374_v26, %v1367_v22 }
0x1ae4   :  { %v1378_v17 = vadd.f32 %v2838_v24, %v1375_v29 }
0x1ae6   :  { %v1381_v9 = vadd.f32 %v2842_v27, %v1378_v17 }
0x1ae8   :  { %v1382_v8 = vadd.f32 %v1381_v9, %v2297_v6 }
0x1aea   :  { %2091 = vtanh.f32 %v1382_v8 }
0x1af0   :  { %v2092_v10 = vpop.eup %2091 }
0x1af1   :  { %1928 = vmatmul.msk.f32.vlgmr.msra.gmra.mxu2 %vm144_vm1, %v2092_v10 }
0x1b74   :  { %v1404_v7 = vpop.f32.mrf.mxu2 }
0x1b75   :  { %v1405_v30 = vadd.f32 %v1404_v7, %v2322_v11 }
0x1b77   :  { %2093 = vtanh.f32 %v1405_v30 }
0x1b7d   :  { %v2094_v31 = vpop.eup %2093 }
0x1b7e   :  { %1929 = vmatmul.msk.f32.vlgmr.msra.gmra.mxu3 %vm144_vm1, %v2094_v31 }
0x1c01   :  { %v1428_v55 = vpop.f32.mrf.mxu3 }
0x1c02   :  { %v1429_v21 = vadd.f32 %v1428_v55, %v2347_v16 }
0x1c04   :  { %v1431_v32 = vmul.f32 1.442695, %v1429_v21  ;;  %v1433_v12 = vsub.f32 0.0, %v1429_v21 }
0x1c06   :  { %2095 = vpow2.f32 %v1431_v32  ;;  %v1434_v13 = vmul.f32 1.442695, %v1433_v12 }
0x1c08   :  { %2097 = vpow2.f32 %v1434_v13 }
0x1c09   :  { %2099 = vtanh.f32 %v1438_v36 }
0x1c0a   :  { %2101 = vtanh.f32 %v1442_v49 }
0x1c0c   :  { %v2096_v14 = vpop.eup %2095 }
0x1c0d   :  { %1468 = vrot.lane.b32.xlu0 %v2096_v14, %s2196_s22  ;;  %v1466_v48 = vmul.f32 %v2096_v14, %v1465_v44 }
0x1c0e   :  { %v2098_v15 = vpop.eup %2097 }
0x1c0f   :  { %v1436_v33 = vsub.f32 %v2096_v14, %v2098_v15  ;;  %v2100_v37 = vpop.eup %2099 }
0x1c10   :  { %v1440_v39 = vadd.f32 1.0, %v2100_v37  ;;  %v2102_v42 = vpop.eup %2101 }
0x1c11   :  { %v1437_v35 = vmul.f32 0.5, %v1436_v33  ;;  %v1444_v47 = vadd.f32 1.0, %v2102_v42 }
0x1c12   :  { %v1441_v23 = vmul.f32 0.5, %v1440_v39 }
0x1c13   :  { %1447 = vrot.lane.b32.xlu2 %v1437_v35, %s2195_s20  ;;  %v1445_v51 = vmul.f32 0.5, %v1444_v47  ;;  %v1452_v45 = vmul.f32 %v1451_v58, %v1437_v35  ;;  %v1460_v43 = vmax.f32 %v1437_v35, 0.0 }
0x1c15   :  { %v1453_v25 = vmax.f32 %v1452_v45, 0.0 }
0x1c6d   :  { %v1448_v34 = vpop.permute.xlu2 %1447 }
0x1c6e   :  { %v1450_v41 = vmul.f32 %v1448_v34, %v1441_v23 }
0x1c70   :  { %v1455_v61 = vperm.slane %v1450_v41, 0 }
0x1c72   :  { %1456 = vrot.lane.b32.xlu2 %v1455_v61, %s2198_s19  ;;  %1461 = vrot.lane.b32.xlu1 %v1455_v61, %s2197_s9 }
0x1c7f   :  { %v1469_v50 = vpop.permute.xlu0 %1468 }
0x1c80   :  { %v1471_v52 = vadd.f32 %v1469_v50, %v1466_v48 }
0x1c82   :  { %v1472_v53 = vmul.f32 %v1471_v52, %v1445_v51 }
0x1c84   :  { %v1474_v57 = vperm.slane %v1472_v53, 0 }
0x1c86   :  { %1475 = vrot.lane.b32.xlu0 %v1474_v57, %s2197_s9 }
0x1ccc   :  { %v1457_v18 = vpop.permute.xlu2 %1456 }
0x1ccd   :  { %v2866_v38 = vsub.f32 %v1453_v25, %v1457_v18 }
0x1ccf   :  { %v1479_v62 = vmul.f32 %v2866_v38, %v2822_v54 }
0x1cd1   :  { %1481 = vrot.lane.b32.xlu1 %v1479_v62, %s2199_s7 }
0x1ce4   :  { %v1462_v63 = vpop.permute.xlu1 %1461 }
0x1ce5   :  { %v1464_v0 = vadd.f32 %v1462_v63, %v1460_v43  ;;  %v1735_v63 = vmul.f32 2.0, %v2866_v38 }
0x1cf8   :  { %v1476_v1 = vpop.permute.xlu0 %1475 }
0x1cf9   :  { %v2871_v19 = vsub.f32 %v1464_v0, %v1476_v1  ;;  %v1603_v0 = vstv %s2819_s0 }
0x1cfb   :  { %v1485_v46 = vmul.f32 %v2871_v19, %v2822_v54 }
0x1cfd   :  { %1487 = vrot.lane.b32.xlu2 %v1485_v46, %s2200_s28 }
0x1d43   :  { %v1482_v28 = vpop.permute.xlu1 %1481 }
0x1d44   :  { %v1484_v20 = vadd.f32 %v1482_v28, %v2960_v59  ;;  %v1736_v28 = vadd.f32 %v1735_v63, %v2824_v56 }
0x1d46   :  { %1493 = vperm.xlu0 %2075, %v1484_v20   ;;  %v1564_v23 = vmul.f32 5.0, %v1484_v20 }
0x1d57   :  { %v1488_v22 = vpop.permute.xlu2 %1487 }
0x1d58   :  { %v1490_v26 = vadd.f32 %v1488_v22, %v2961_v60 }
0x1d5a   :  { %1500 = vperm.xlu1 %2076, %v1490_v26   ;;  %v1568_v47 = vmul.f32 5.0, %v1490_v26 }
0x1db8   :  { %v1494_v29 = vpop.permute.xlu0 %1493 }
0x1db9   :  { %v1496_v17 = vperm.slane %v1494_v29, 0 }
0x1dbb   :  { %v1497_v10 = vmul.f32 %v1496_v17, %v2277_v2  ;;  %v1747_v17 = vmul.f32 2.0, %v2871_v19 }
0x1dbd   :  { %v1748_v38 = vadd.f32 %v1747_v17, %v2829_v40 }
0x1dcc   :  { %v1501_v9 = vpop.permute.xlu1 %1500 }
0x1dcd   :  { %v1503_v8 = vperm.slane %v1501_v9, 0 }
0x1dcf   :  { %v1504_v7 = vmul.f32 %v1503_v8, %v2282_v3 }
0x1dd1   :  { %v1505_v30 = vadd.f32 %v1504_v7, %v1497_v10 }
0x1dd3   :  { %v1506_v54 = vadd.f32 %v1505_v30, %v2838_v24 }
0x1dd5   :  { %v1507_v31 = vadd.f32 %v1506_v54, %v2842_v27 }
0x1dd7   :  { %v1508_v55 = vadd.f32 %v1507_v31, %v2297_v6 }
0x1dd9   :  { %2103 = vtanh.f32 %v1508_v55 }
0x1ddf   :  { %v2104_v21 = vpop.eup %2103 }
0x1de0   :  { %1930 = vmatmul.msk.f32.vlgmr.msrb.gmra.mxu0 %vm144_vm1, %v2104_v21 }
0x1e5d   :  { %v1530_v32 = vpop.f32.mrf.mxu0 }
0x1e5e   :  { %v1531_v12 = vadd.f32 %v1530_v32, %v2322_v11  ;;  %v1631_v32 = vstv %s1922_s30 }
0x1e60   :  { %2105 = vtanh.f32 %v1531_v12 }
0x1e66   :  { %v2106_v13 = vpop.eup %2105 }
0x1e67   :  { %1931 = vmatmul.msk.f32.vlgmr.msrb.gmra.mxu1 %vm144_vm1, %v2106_v13  ;;  %v1634_v13 = vstv %s1923_s14 }
0x1ee4   :  { %v1554_v14 = vpop.f32.mrf.mxu1 }
0x1ee5   :  { %v1555_v15 = vadd.f32 %v1554_v14, %v2347_v16 }
0x1ee7   :  { %v1557_v33 = vmul.f32 1.442695, %v1555_v15  ;;  %v1559_v24 = vsub.f32 0.0, %v1555_v15  ;;  %v1632_v15 = vmul.f32 %v1631_v32, %v2287_v4 }
0x1ee9   :  { %2107 = vpow2.f32 %v1557_v33  ;;  %v1560_v27 = vmul.f32 1.442695, %v1559_v24  ;;  %v1635_v24 = vmul.f32 %v1634_v13, %v2292_v5 }
0x1eeb   :  { %2109 = vpow2.f32 %v1560_v27 }
0x1eec   :  { %2111 = vtanh.f32 %v1564_v23 }
0x1eed   :  { %2113 = vtanh.f32 %v1568_v47 }
0x1eef   :  { %v2108_v35 = vpop.eup %2107 }
0x1ef0   :  { %1592 = vrot.lane.b32.xlu0 %v2108_v35, %s2196_s22  ;;  %v1590_v52 = vmul.f32 %v2108_v35, %v1465_v44 }
0x1ef1   :  { %v2110_v36 = vpop.eup %2109 }
0x1ef2   :  { %v1562_v37 = vsub.f32 %v2108_v35, %v2110_v36  ;;  %v2112_v34 = vpop.eup %2111 }
0x1ef3   :  { %v1566_v41 = vadd.f32 1.0, %v2112_v34  ;;  %v2114_v50 = vpop.eup %2113 }
0x1ef4   :  { %v1563_v39 = vmul.f32 0.5, %v1562_v37  ;;  %v1570_v51 = vadd.f32 1.0, %v2114_v50 }
0x1ef5   :  { %v1567_v49 = vmul.f32 0.5, %v1566_v41 }
0x1ef6   :  { %1573 = vrot.lane.b32.xlu2 %v1563_v39, %s2195_s20  ;;  %v1571_v57 = vmul.f32 0.5, %v1570_v51  ;;  %v1577_v62 = vmul.f32 %v1563_v39, %v1451_v58  ;;  %v1585_v29 = vmax.f32 %v1563_v39, 0.0 }
0x1ef8   :  { %v1578_v43 = vmax.f32 %v1577_v62, 0.0 }
0x1f50   :  { %v1574_v61 = vpop.permute.xlu2 %1573 }
0x1f51   :  { %v1576_v42 = vmul.f32 %v1574_v61, %v1567_v49 }
0x1f53   :  { %v1580_v48 = vperm.slane %v1576_v42, 0 }
0x1f55   :  { %1581 = vrot.lane.b32.xlu2 %v1580_v48, %s2198_s19  ;;  %1586 = vrot.lane.b32.xlu1 %v1580_v48, %s2197_s9 }
0x1f62   :  { %v1593_v53 = vpop.permute.xlu0 %1592 }
0x1f63   :  { %v1595_v45 = vadd.f32 %v1593_v53, %v1590_v52 }
0x1f65   :  { %v1596_v25 = vmul.f32 %v1595_v45, %v1571_v57 }
0x1f67   :  { %v1598_v18 = vperm.slane %v1596_v25, 0 }
0x1f69   :  { %1599 = vrot.lane.b32.xlu0 %v1598_v18, %s2197_s9 }
0x1faf   :  { %v1582_v1 = vpop.permute.xlu2 %1581 }
0x1fb0   :  { %v1584_v46 = vsub.f32 %v1578_v43, %v1582_v1 }
0x1fb2   :  { %v1604_v20 = vmul.f32 %v1603_v0, %v1584_v46  ;;  %v1737_v22 = vmul.f32 2.0, %v1584_v46  ;;  %v1720_v46 = vstv %s1924_s15 }
0x1fb4   :  { %1606 = vrot.lane.b32.xlu1 %v1604_v20, %s2199_s7  ;;  %v2900_v44 = vadd.f32 %v1737_v22, %v1736_v28 }
0x1fc7   :  { %v1587_v26 = vpop.permute.xlu1 %1586 }
0x1fc8   :  { %v1589_v9 = vadd.f32 %v1587_v26, %v1585_v29 }
0x1fdb   :  { %v1600_v58 = vpop.permute.xlu0 %1599 }
0x1fdc   :  { %v1602_v8 = vsub.f32 %v1589_v9, %v1600_v58  ;;  %v1706_v58 = vstv %s1925_s18 }
0x1fde   :  { %v1610_v10 = vmul.f32 %v1603_v0, %v1602_v8  ;;  %v1749_v7 = vmul.f32 2.0, %v1602_v8 }
0x1fe0   :  { %1612 = vrot.lane.b32.xlu2 %v1610_v10, %s2200_s28  ;;  %v2905_v56 = vadd.f32 %v1749_v7, %v1748_v38 }
0x2026   :  { %v1607_v30 = vpop.permute.xlu1 %1606 }
0x2027   :  { %v1609_v54 = vadd.f32 %v1607_v30, %v2960_v59  ;;  %v1740_v30 = vstv %s1734_s21 }
0x2029   :  { %1618 = vperm.xlu0 %2075, %v1609_v54   ;;  %v1693_v57 = vmul.f32 5.0, %v1609_v54 }
0x203a   :  { %v1613_v31 = vpop.permute.xlu2 %1612 }
0x203b   :  { %v1615_v55 = vadd.f32 %v1613_v31, %v2961_v60 }
0x203d   :  { %1625 = vperm.xlu1 %2076, %v1615_v55   ;;  %v1697_v43 = vmul.f32 5.0, %v1615_v55 }
0x209b   :  { %v1619_v19 = vpop.permute.xlu0 %1618 }
0x209c   :  { %v1621_v21 = vperm.slane %v1619_v19, 0 }
0x209e   :  { %v1622_v14 = vmul.f32 %v1621_v21, %v2277_v2 }
0x20af   :  { %v1626_v40 = vpop.permute.xlu1 %1625 }
0x20b0   :  { %v1628_v12 = vperm.slane %v1626_v40, 0 }
0x20b2   :  { %v1629_v33 = vmul.f32 %v1628_v12, %v2282_v3 }
0x20b4   :  { %v1630_v27 = vadd.f32 %v1629_v33, %v1622_v14  ;;  %v1762_v14 = vld [vmem:[%s2949_s2] sm:$0xff] }
0x20b6   :  { %v1633_v35 = vadd.f32 %v1632_v15, %v1630_v27 }
0x20b8   :  { %v1636_v36 = vadd.f32 %v1635_v24, %v1633_v35  ;;  %v2201_v24 = vmov 1  }
0x20ba   :  { %v1637_v37 = vadd.f32 %v1636_v36, %v2297_v6 }
0x20bc   :  { %2115 = vtanh.f32 %v1637_v37  ;;  %v1768_v37 = vperm.slane %v2277_v2, 0 }
0x20c2   :  { %v2116_v39 = vpop.eup %2115 }
0x20c3   :  { %1932 = vmatmul.msk.f32.vlgmr.msrb.gmra.mxu2 %vm144_vm1, %v2116_v39  ;;  %v1775_v39 = vperm.slane %v2282_v3, 0  ;;  %v1799_v3 = vperm.slane %v2322_v11, 0 }
0x2146   :  { %v1659_v23 = vpop.f32.mrf.mxu2 }
0x2147   :  { %v1660_v34 = vadd.f32 %v1659_v23, %v2322_v11 }
0x2149   :  { %2117 = vtanh.f32 %v1660_v34  ;;  %v1790_v34 = vperm.slane %v2292_v5, 0 }
0x214f   :  { %v2118_v41 = vpop.eup %2117 }
0x2150   :  { %1933 = vmatmul.msk.f32.vlgmr.msrb.gmra.mxu3 %vm144_vm1, %v2118_v41 }
0x21d3   :  { %v1683_v49 = vpop.f32.mrf.mxu3 }
0x21d4   :  { %v1684_v61 = vadd.f32 %v1683_v49, %v2347_v16 }
0x21d6   :  { %v1686_v42 = vmul.f32 1.442695, %v1684_v61  ;;  %v1688_v47 = vsub.f32 0.0, %v1684_v61 }
0x21d8   :  { %2119 = vpow2.f32 %v1686_v42  ;;  %v1689_v48 = vmul.f32 1.442695, %v1688_v47 }
0x21da   :  { %2121 = vpow2.f32 %v1689_v48 }
0x21db   :  { %2123 = vtanh.f32 %v1693_v57 }
0x21dc   :  { %2125 = vtanh.f32 %v1697_v43 }
0x21de   :  { %v2120_v50 = vpop.eup %2119 }
0x21df   :  { %1723 = vrot.lane.b32.xlu0 %v2120_v50, %s2196_s22  ;;  %v1721_v20 = vmul.f32 %v2120_v50, %v1720_v46 }
0x21e0   :  { %v2122_v51 = vpop.eup %2121 }
0x21e1   :  { %v1691_v52 = vsub.f32 %v2120_v50, %v2122_v51  ;;  %v2124_v45 = vpop.eup %2123  ;;  %v1794_v51 = vperm.slane %v2297_v6, 0 }
0x21e2   :  { %v1695_v25 = vadd.f32 1.0, %v2124_v45  ;;  %v2126_v1 = vpop.eup %2125  ;;  %v1826_v45 = vperm.slane %v2347_v16, 0 }
0x21e3   :  { %v1692_v53 = vmul.f32 0.5, %v1691_v52  ;;  %v1699_v28 = vadd.f32 1.0, %v2126_v1 }
0x21e4   :  { %v1696_v18 = vmul.f32 0.5, %v1695_v25 }
0x21e5   :  { %1702 = vrot.lane.b32.xlu2 %v1692_v53, %s2195_s20  ;;  %v1700_v26 = vmul.f32 0.5, %v1699_v28  ;;  %v1707_v8 = vmul.f32 %v1706_v58, %v1692_v53  ;;  %v1715_v19 = vmax.f32 %v1692_v53, 0.0 }
0x21e7   :  { %v1708_v38 = vmax.f32 %v1707_v8, 0.0 }
0x223f   :  { %v1703_v62 = vpop.permute.xlu2 %1702 }
0x2240   :  { %v1705_v63 = vmul.f32 %v1703_v62, %v1696_v18 }
0x2242   :  { %v1710_v0 = vperm.slane %v1705_v63, 0 }
0x2244   :  { %1711 = vrot.lane.b32.xlu2 %v1710_v0, %s2198_s19  ;;  %1716 = vrot.lane.b32.xlu1 %v1710_v0, %s2197_s9 }
0x2251   :  { %v1724_v22 = vpop.permute.xlu0 %1723 }
0x2252   :  { %v1726_v29 = vadd.f32 %v1724_v22, %v1721_v20 }
0x2254   :  { %v1727_v17 = vmul.f32 %v1726_v29, %v1700_v26 }
0x2256   :  { %v1729_v9 = vperm.slane %v1727_v17, 0 }
0x2258   :  { %1730 = vrot.lane.b32.xlu0 %v1729_v9, %s2197_s9 }
0x229e   :  { %v1712_v10 = vpop.permute.xlu2 %1711 }
0x229f   :  { %v1714_v7 = vsub.f32 %v1708_v38, %v1712_v10 }
0x22a1   :  { %v1739_v54 = vadd.f32 %v2900_v44, %v1714_v7 }
0x22a3   :  { %v1741_v31 = vmul.f32 %v1740_v30, %v1739_v54 }
0x22a5   :  { %1743 = vrot.lane.b32.xlu1 %v1741_v31, %s2199_s7 }
0x22b6   :  { %v1717_v55 = vpop.permute.xlu1 %1716 }
0x22b7   :  { %v1719_v21 = vadd.f32 %v1717_v55, %v1715_v19 }
0x22ca   :  { %v1731_v32 = vpop.permute.xlu0 %1730 }
0x22cb   :  { %v1733_v40 = vsub.f32 %v1719_v21, %v1731_v32 }
0x22cd   :  { %v1751_v12 = vadd.f32 %v2905_v56, %v1733_v40 }
0x22cf   :  { %v1752_v13 = vmul.f32 %v1751_v12, %v1740_v30 }
0x22d1   :  { %1754 = vrot.lane.b32.xlu2 %v1752_v13, %s2200_s28 }
0x22d9   :  { %1780 = vperm.xlu2 %2077, %v1762_v14  }
0x2317   :  { %v1744_v15 = vpop.permute.xlu1 %1743 }
0x2318   :  { %v1746_v44 = vadd.f32 %v1744_v15, %v2960_v59  ;;  %v1783_v59 = vperm.slane %v2287_v4, 0 }
0x231a   :  { %1758 = vst.msk [vmem:[#allocation2 + $0x7] sm:$0x1] %vm84_vm0, %v1746_v44 }
0x2321   :  { %v1760_v33 = vld [vmem:[#allocation2] sm:$0xff] }
0x2322   :  { %1765 = vperm.xlu0 %2075, %v1760_v33  }
0x232a   :  { %2078 = vset.pattern.permute.xlu0 %v2201_v24 }
0x232b   :  { %v1755_v27 = vpop.permute.xlu2 %1754  ;;  %1787 = vperm.xlu0 %2078, %v1762_v14  }
0x232c   :  { %v1757_v56 = vadd.f32 %v1755_v27, %v2961_v60 }
0x232e   :  { %1759 = vst.msk [vmem:[#allocation3 + $0x7] sm:$0x1] %vm84_vm0, %v1757_v56 }
0x2333   :  { %v1781_v23 = vpop.permute.xlu2 %1780 }
0x2334   :  { %v1784_v47 = vmul.f32 %v1783_v59, %v1781_v23 }
0x2335   :  { %v1761_v35 = vld [vmem:[#allocation3] sm:$0xff] }
0x2336   :  { %1772 = vperm.xlu1 %2076, %v1761_v35  }
0x2394   :  { %v1766_v36 = vpop.permute.xlu0 %1765 }
0x2395   :  { %v1769_v61 = vmul.f32 %v1768_v37, %v1766_v36 }
0x239d   :  { %v1788_v49 = vpop.permute.xlu0 %1787 }
0x239e   :  { %v1791_v48 = vmul.f32 %v1790_v34, %v1788_v49 }
0x23a8   :  { %v1773_v41 = vpop.permute.xlu1 %1772 }
0x23a9   :  { %v1776_v42 = vmul.f32 %v1775_v39, %v1773_v41 }
0x23ab   :  { %v1777_v60 = vadd.f32 %v1776_v42, %v1769_v61 }
0x23ad   :  { %v1785_v50 = vadd.f32 %v1784_v47, %v1777_v60 }
0x23af   :  { %v1792_v52 = vadd.f32 %v1791_v48, %v1785_v50 }
0x23b1   :  { %v1796_v53 = vadd.f32 %v1794_v51, %v1792_v52 }
0x23b3   :  { %2127 = vtanh.f32 %v1796_v53 }
0x23b9   :  { %v2128_v2 = vpop.eup %2127 }
0x23ba   :  { %1934 = vmatmul.msk.f32.vlgmr.msra.gmra.mxu0 %vm144_vm1, %v2128_v2 }
0x2437   :  { %v1821_v4 = vpop.f32.mrf.mxu0 }
0x2438   :  { %v1822_v5 = vadd.f32 %v1821_v4, %v1799_v3 }
0x243a   :  { %2129 = vtanh.f32 %v1822_v5 }
0x2440   :  { %v2130_v57 = vpop.eup %2129 }
0x2441   :  { %1935 = vmatmul.msk.f32.vlgmr.msra.gmra.mxu1 %vm144_vm1, %v2130_v57 }
0x24be   :  { %v1848_v25 = vpop.f32.mrf.mxu1 }
0x24bf   :  { %v1849_v18 = vadd.f32 %v1848_v25, %v1826_v45 }
0x24c1   :  { %v1851_v62 = vmul.f32 1.442695, %v1849_v18 }
0x24c3   :  { %2131 = vpow2.f32 %v1851_v62 }
0x24c9   :  { %v2132_v6 = vpop.eup %2131 }
0x24ca   :  { %1854 = vrot.lane.b32.xlu1 %v2132_v6, %s2196_s22 }
0x253c   :  { %v1855_v63 = vpop.permute.xlu1 %1854 }
0x253d   :  { %1858 = vst.msk [vmem:[%s2958_s11] sm:$0xff] %vm1857_vm2, %v1855_v63 }
0x253e   :  { %1863 = vsyncpa [#allocation7], 1 }
0x253f   :  { %1864 = vsyncpa [#allocation9], 1 }

</bundles_post_ra>
